<compile_context>
chip_gen: v7x
topology: tpu7x:2x2x1
jax: 0.10.0
libtpu: 0.0.40
codegen_flags: <defaults>
</compile_context>

<pallas_src>
import functools

import jax
import jax.numpy as jnp
from jax.experimental import pallas as pl
from jax.experimental.pallas import tpu as pltpu

D_PER, D_POSE, D_EXPR = 64, 32, 32            # feature_dims
D_FEAT = D_PER + D_POSE + D_EXPR              # 128
IMG = 64 * 64                                 # 4096 pixels
HEAD_PAD = 128                                # lane-padded width per head
HEADS_W = 4 * HEAD_PAD                        # fused head output width (512)
DEC_W = HEADS_W + IMG                         # heads ++ image decoder (4608)
OFF_PER, OFF_AFF, OFF_LINE, OFF_EXPR = 0, 128, 256, 384
D_AFF, D_LINE, D_EXP_OUT = 6, 52, 84


def _round_up(v, m):
    return ((v + m - 1) // m) * m


def _vmem_limit_bytes(tb):
    """Scoped-VMEM need + headroom (computed, not a blanket 64 MiB)."""
    stream = 2 * tb * (IMG * 4 + HEADS_W * 4 + IMG * 2)   # x f32, heads f32, recon bf16 (double-buffered)
    weights = 2 * (IMG * D_FEAT + D_FEAT * DEC_W) * 2     # bf16 weights (double-buffered)
    weights += 2 * (D_FEAT + DEC_W) * 4                   # f32 biases
    interm = 2 * tb * DEC_W * 4                           # fused-dot f32 result + epilogue temps
    total = stream + weights + interm + (4 << 20)         # + Mosaic internal-scratch headroom
    return int(min(max(total, 16 << 20), 64 << 20))


def _ppes_kernel(n_person,
                 x_ref, we_ref, be_ref, wf_ref, bf_ref,
                 heads_ref, recon_ref):
    # ------------- encode: (TB,4096) f32 -> bf16 cast in-kernel, MXU, tanh ---
    x = x_ref[...].astype(jnp.bfloat16)                             # (TB, 4096)
    feats = jnp.tanh(
        jnp.dot(x, we_ref[...], preferred_element_type=jnp.float32)
        + be_ref[...]).astype(jnp.bfloat16)                         # (TB, 128)

    # ------------- decode: one fused (128, 4608) pass: heads ++ decoder ------
    out = (jnp.dot(feats, wf_ref[...], preferred_element_type=jnp.float32)
           + bf_ref[...])                                           # (TB, 4608) f32

    # person log-softmax lives in lanes [0, 128); padded columns are zero-weight
    logits = out[:, :HEAD_PAD]
    col = jax.lax.broadcasted_iota(jnp.int32, (1, HEAD_PAD), 1)     # broadcasts over TB
    logits = jnp.where(col < n_person, logits, jnp.float32(-1e30))
    m = jnp.max(logits, axis=-1, keepdims=True)
    z = logits - m
    lse = jnp.log(jnp.sum(jnp.exp(z), axis=-1, keepdims=True))      # exp(-1e30) -> 0
    # single lane-dense store: [log-softmax | aff | line | expr] (all 128-aligned)
    heads_ref[...] = jnp.concatenate([z - lse, out[:, HEAD_PAD:HEADS_W]], axis=-1)

    # reconstruction: sigmoid in f32 (v5e has no bf16 VPU/EUP), stored as bf16
    recon_ref[...] = jax.nn.sigmoid(out[:, HEADS_W:]).astype(jnp.bfloat16)


def init_params(key, n_person):
    """Deterministic synthetic parameters.

    Returns (kernel_params, ref_params):
      kernel_params: bf16 weights; heads + decoder fused into one (128, 4608).
      ref_params:    raw f32 per-head weights for the pure-JAX reference.
    """
    ks = jax.random.split(key, 12)

    def w(k, shape, scale):
        return scale * jax.random.normal(k, shape, dtype=jnp.float32)

    W_enc = w(ks[0], (IMG, D_FEAT), 0.02)
    b_enc = w(ks[1], (1, D_FEAT), 0.02)
    W_per = w(ks[2], (D_PER, n_person), 0.1)
    b_per = w(ks[3], (1, n_person), 0.1)
    W_aff = w(ks[4], (D_POSE, D_AFF), 0.1)
    b_aff = w(ks[5], (1, D_AFF), 0.1)
    W_line = w(ks[6], (D_POSE, D_LINE), 0.1)
    b_line = w(ks[7], (1, D_LINE), 0.1)
    W_expr = w(ks[8], (D_EXPR, D_EXP_OUT), 0.1)
    b_expr = w(ks[9], (1, D_EXP_OUT), 0.1)
    W_dec = w(ks[10], (D_FEAT, IMG), 0.05)
    b_dec = w(ks[11], (1, IMG), 0.05)

    ref_params = (W_enc, b_enc, W_per, b_per, W_aff, b_aff,
                  W_line, b_line, W_expr, b_expr, W_dec, b_dec)

    # Fused (128, 4608) decode weight: block-diagonal heads in cols [0,512),
    # image decoder in cols [512, 4608).
    W_fused = jnp.zeros((D_FEAT, DEC_W), jnp.float32)
    b_fused = jnp.zeros((1, DEC_W), jnp.float32)
    W_fused = W_fused.at[:D_PER, OFF_PER:OFF_PER + n_person].set(W_per)
    b_fused = b_fused.at[:, OFF_PER:OFF_PER + n_person].set(b_per)
    W_fused = W_fused.at[D_PER:D_PER + D_POSE, OFF_AFF:OFF_AFF + D_AFF].set(W_aff)
    b_fused = b_fused.at[:, OFF_AFF:OFF_AFF + D_AFF].set(b_aff)
    W_fused = W_fused.at[D_PER:D_PER + D_POSE, OFF_LINE:OFF_LINE + D_LINE].set(W_line)
    b_fused = b_fused.at[:, OFF_LINE:OFF_LINE + D_LINE].set(b_line)
    W_fused = W_fused.at[D_PER + D_POSE:, OFF_EXPR:OFF_EXPR + D_EXP_OUT].set(W_expr)
    b_fused = b_fused.at[:, OFF_EXPR:OFF_EXPR + D_EXP_OUT].set(b_expr)
    W_fused = W_fused.at[:, HEADS_W:].set(W_dec)
    b_fused = b_fused.at[:, HEADS_W:].set(b_dec)

    kernel_params = (W_enc.astype(jnp.bfloat16), b_enc,
                     W_fused.astype(jnp.bfloat16), b_fused)
    return kernel_params, ref_params


def ppes_forward(x, kernel_params, n_person, *, tb=256):
    """x: (B, 1, 64, 64) float32 in [0,1] — NCHW like the PyTorch module."""
    B = x.shape[0]
    assert x.shape[1:] == (1, 64, 64)
    assert n_person <= HEAD_PAD, "n_person must be <= 128 for this head padding"
    W_enc, b_enc, W_fused, b_fused = kernel_params

    # Batch tile: multiple of 8 sublanes, and aim for >=4 grid steps when B
    # allows it (both v7x TensorCores busy + real DMA/compute overlap).
    # Default 256 fits every generation's VMEM; v5e/v6e callers may pass 512.
    tb = max(8, min(tb, _round_up(pl.cdiv(B, 4), 8)))
    grid = (pl.cdiv(B, tb),)       # ragged last tile handled by Pallas (no jnp.pad)

    xf = x.reshape(B, IMG)         # stays f32; bf16 cast is fused into the kernel

    def const(i):                  # weights/biases: same block every grid step
        return (0, 0)
    # (optional) pipeline_mode=pl.Buffered(1) on the weight specs would
    # single-buffer them; skipped — VMEM fits comfortably at these tile sizes.

    heads_out, recon_out = pl.pallas_call(
        functools.partial(_ppes_kernel, n_person),
        out_shape=(
            jax.ShapeDtypeStruct((B, HEADS_W), jnp.float32),
            jax.ShapeDtypeStruct((B, IMG), jnp.bfloat16),
        ),
        grid=grid,
        in_specs=[
            pl.BlockSpec((tb, IMG), lambda i: (i, 0)),       # x f32 (pipelined)
            pl.BlockSpec((IMG, D_FEAT), const),              # W_enc (resident)
            pl.BlockSpec((1, D_FEAT), const),                # b_enc
            pl.BlockSpec((D_FEAT, DEC_W), const),            # W_fused (heads++dec)
            pl.BlockSpec((1, DEC_W), const),                 # b_fused
        ],
        out_specs=(
            pl.BlockSpec((tb, HEADS_W), lambda i: (i, 0)),   # fused heads (f32)
            pl.BlockSpec((tb, IMG), lambda i: (i, 0)),       # reconstruction (bf16)
        ),
        compiler_params=pltpu.CompilerParams(
            dimension_semantics=("parallel",),               # megacore sharding
            vmem_limit_bytes=_vmem_limit_bytes(tb)),
    )(xf, W_enc, b_enc, W_fused, b_fused)

    loglik = heads_out[:, OFF_PER:OFF_PER + n_person]
    aff = heads_out[:, OFF_AFF:OFF_AFF + D_AFF]
    line = heads_out[:, OFF_LINE:OFF_LINE + D_LINE]
    expr = heads_out[:, OFF_EXPR:OFF_EXPR + D_EXP_OUT]
    recon = recon_out.reshape(B, 1, 64, 64)                  # bf16 (see header note)
    return loglik, aff, line, expr, recon


def ppes_forward_ref(x, ref_params, n_person):
    """Pure-JAX f32 reference for validation."""
    (W_enc, b_enc, W_per, b_per, W_aff, b_aff,
     W_line, b_line, W_expr, b_expr, W_dec, b_dec) = ref_params
    B = x.shape[0]
    xf = x.reshape(B, IMG).astype(jnp.float32)
    feats = jnp.tanh(xf @ W_enc + b_enc)
    x_per = feats[:, :D_PER]
    x_pose = feats[:, D_PER:D_PER + D_POSE]
    x_expr = feats[:, D_PER + D_POSE:]
    loglik = jax.nn.log_softmax(x_per @ W_per + b_per, axis=-1)
    aff = x_pose @ W_aff + b_aff
    line = x_pose @ W_line + b_line
    expr = x_expr @ W_expr + b_expr
    recon = jax.nn.sigmoid(feats @ W_dec + b_dec).reshape(B, 1, 64, 64)
    return loglik, aff, line, expr, recon


if __name__ == "__main__":
    n_person = 10
    batch = 2

    key = jax.random.PRNGKey(0)
    kx, kp = jax.random.split(key)
    x = jax.random.uniform(kx, (batch, 1, 64, 64), dtype=jnp.float32)  # [0,1] image
    kernel_params, ref_params = init_params(kp, n_person)

    outs = ppes_forward(x, kernel_params, n_person)
    outs = jax.block_until_ready(outs)

    refs = ppes_forward_ref(x, ref_params, n_person)
    for o, r in zip(outs, refs):
        assert o.shape == r.shape, (o.shape, r.shape)
        # bf16 matmul operands + bf16 recon store (f32 accumulation) -> few e-3 max
        assert jnp.allclose(o, r, atol=2e-2, rtol=2e-2)

    print("KERNEL_OK")
</pallas_src>

<mosaic_0001>
module attributes {stable_mosaic.version = 11 : i64} {
  func.func @_ppes_kernel(%arg0: i32, %arg1: memref<8x4096xf32, #tpu.memory_space<vmem>>, %arg2: memref<4096x128xbf16, #tpu.memory_space<vmem>>, %arg3: memref<1x128xf32, #tpu.memory_space<vmem>>, %arg4: memref<128x4608xbf16, #tpu.memory_space<vmem>>, %arg5: memref<1x4608xf32, #tpu.memory_space<vmem>>, %arg6: memref<8x512xf32, #tpu.memory_space<vmem>>, %arg7: memref<8x4096xbf16, #tpu.memory_space<vmem>>) attributes {dimension_semantics = [#tpu.dimension_semantics<parallel>], iteration_bounds = array<i64: 1>, scalar_prefetch = 0 : i64, scratch_operands = 0 : i64, tpu.core_type = #tpu.core_type<tc>, window_params = [{transform_indices = @transform_0, window_bounds = array<i64: 8, 4096>}, {pipeline_mode = #tpu.pipeline_mode<synchronous>, transform_indices = @transform_1, window_bounds = array<i64: 4096, 128>}, {pipeline_mode = #tpu.pipeline_mode<synchronous>, transform_indices = @transform_2, window_bounds = array<i64: 1, 128>}, {pipeline_mode = #tpu.pipeline_mode<synchronous>, transform_indices = @transform_3, window_bounds = array<i64: 128, 4608>}, {pipeline_mode = #tpu.pipeline_mode<synchronous>, transform_indices = @transform_4, window_bounds = array<i64: 1, 4608>}, {transform_indices = @transform_5, window_bounds = array<i64: 8, 512>}, {transform_indices = @transform_6, window_bounds = array<i64: 8, 4096>}]} {
    %c0 = arith.constant 0 : index
    %c0_0 = arith.constant 0 : index
    %0 = vector.load %arg1[%c0, %c0_0] : memref<8x4096xf32, #tpu.memory_space<vmem>>, vector<8x4096xf32>
    %1 = arith.truncf %0 : vector<8x4096xf32> to vector<8x4096xbf16>
    %c0_1 = arith.constant 0 : index
    %c0_2 = arith.constant 0 : index
    %2 = vector.load %arg2[%c0_1, %c0_2] : memref<4096x128xbf16, #tpu.memory_space<vmem>>, vector<4096x128xbf16>
    %cst = arith.constant dense<0.000000e+00> : vector<8x128xf32>
    %3 = tpu.matmul %1, %2, %cst {dimension_numbers = #tpu.dot_dimension_numbers<[1], [0], [0], [1], [0, 0, 1, 1], [], []>} : vector<8x4096xbf16>, vector<4096x128xbf16>, vector<8x128xf32> -> vector<8x128xf32>
    %c0_3 = arith.constant 0 : index
    %c0_4 = arith.constant 0 : index
    %4 = vector.load %arg3[%c0_3, %c0_4] : memref<1x128xf32, #tpu.memory_space<vmem>>, vector<1x128xf32>
    %5 = vector.broadcast %4 : vector<1x128xf32> to vector<8x128xf32>
    %6 = arith.addf %3, %5 : vector<8x128xf32>
    %7 = math.tanh %6 : vector<8x128xf32>
    %8 = arith.truncf %7 : vector<8x128xf32> to vector<8x128xbf16>
    %c0_5 = arith.constant 0 : index
    %c0_6 = arith.constant 0 : index
    %9 = vector.load %arg4[%c0_5, %c0_6] : memref<128x4608xbf16, #tpu.memory_space<vmem>>, vector<128x4608xbf16>
    %cst_7 = arith.constant dense<0.000000e+00> : vector<8x4608xf32>
    %10 = tpu.matmul %8, %9, %cst_7 {dimension_numbers = #tpu.dot_dimension_numbers<[1], [0], [0], [1], [0, 0, 1, 1], [], []>} : vector<8x128xbf16>, vector<128x4608xbf16>, vector<8x4608xf32> -> vector<8x4608xf32>
    %c0_8 = arith.constant 0 : index
    %c0_9 = arith.constant 0 : index
    %11 = vector.load %arg5[%c0_8, %c0_9] : memref<1x4608xf32, #tpu.memory_space<vmem>>, vector<1x4608xf32>
    %12 = vector.broadcast %11 : vector<1x4608xf32> to vector<8x4608xf32>
    %13 = arith.addf %10, %12 : vector<8x4608xf32>
    %14 = vector.extract_strided_slice %13 {offsets = [0, 0], sizes = [8, 128], strides = [1, 1]} : vector<8x4608xf32> to vector<8x128xf32>
    %15 = tpu.iota {dimensions = array<i32: 1>} : vector<1x128xi32>
    %c10_i32 = arith.constant 10 : i32
    %16 = vector.broadcast %c10_i32 : i32 to vector<1x128xi32>
    %17 = arith.cmpi slt, %15, %16 : vector<1x128xi32>
    %cst_10 = arith.constant -1.000000e+30 : f32
    %18 = vector.shape_cast %17 : vector<1x128xi1> to vector<1x128xi1>
    %19 = vector.broadcast %18 : vector<1x128xi1> to vector<8x128xi1>
    %20 = vector.broadcast %cst_10 : f32 to vector<8x128xf32>
    %21 = arith.select %19, %14, %20 : vector<8x128xi1>, vector<8x128xf32>
    %cst_11 = arith.constant dense<0xFF800000> : vector<8xf32>
    %22 = vector.multi_reduction <maximumf>, %21, %cst_11 [1] : vector<8x128xf32> to vector<8xf32>
    %23 = vector.shape_cast %22 : vector<8xf32> to vector<8x1xf32>
    %24 = vector.broadcast %23 : vector<8x1xf32> to vector<8x128xf32>
    %25 = arith.subf %21, %24 : vector<8x128xf32>
    %26 = math.exp %25 : vector<8x128xf32>
    %cst_12 = arith.constant dense<0.000000e+00> : vector<8xf32>
    %27 = vector.multi_reduction <add>, %26, %cst_12 [1] : vector<8x128xf32> to vector<8xf32>
    %28 = vector.shape_cast %27 : vector<8xf32> to vector<8x1xf32>
    %29 = math.log %28 : vector<8x1xf32>
    %30 = vector.broadcast %29 : vector<8x1xf32> to vector<8x128xf32>
    %31 = arith.subf %25, %30 : vector<8x128xf32>
    %32 = vector.extract_strided_slice %13 {offsets = [0, 128], sizes = [8, 384], strides = [1, 1]} : vector<8x4608xf32> to vector<8x384xf32>
    %33 = tpu.concatenate %31, %32 in 1 : vector<8x128xf32>, vector<8x384xf32> -> vector<8x512xf32>
    %c0_13 = arith.constant 0 : index
    %c0_14 = arith.constant 0 : index
    %34 = vector.load %arg6[%c0_13, %c0_14] : memref<8x512xf32, #tpu.memory_space<vmem>>, vector<8x512xf32>
    tpu.vector_store %arg6[%c0_13, %c0_14], %33 {strides = array<i32>} : memref<8x512xf32, #tpu.memory_space<vmem>>, vector<8x512xf32>,
    %35 = vector.extract_strided_slice %13 {offsets = [0, 512], sizes = [8, 4096], strides = [1, 1]} : vector<8x4608xf32> to vector<8x4096xf32>
    %36 = arith.negf %35 : vector<8x4096xf32>
    %37 = math.exp %36 : vector<8x4096xf32>
    %cst_15 = arith.constant 1.000000e+00 : f32
    %38 = vector.broadcast %cst_15 : f32 to vector<8x4096xf32>
    %39 = arith.addf %38, %37 : vector<8x4096xf32>
    %40 = arith.divf %38, %39 : vector<8x4096xf32>
    %41 = arith.truncf %40 : vector<8x4096xf32> to vector<8x4096xbf16>
    %c0_16 = arith.constant 0 : index
    %c0_17 = arith.constant 0 : index
    %42 = vector.load %arg7[%c0_16, %c0_17] : memref<8x4096xbf16, #tpu.memory_space<vmem>>, vector<8x4096xbf16>
    tpu.vector_store %arg7[%c0_16, %c0_17], %41 {strides = array<i32>} : memref<8x4096xbf16, #tpu.memory_space<vmem>>, vector<8x4096xbf16>,
    return
  }
  func.func @transform_0(%arg0: i32) -> (i32, i32) {
    %c0_i32 = arith.constant 0 : i32
    %c0_i32_0 = arith.constant 0 : i32
    return %arg0, %c0_i32 : i32, i32
  }
  func.func @transform_1(%arg0: i32) -> (i32, i32) {
    %c0_i32 = arith.constant 0 : i32
    %c0_i32_0 = arith.constant 0 : i32
    %c0_i32_1 = arith.constant 0 : i32
    return %c0_i32, %c0_i32_0 : i32, i32
  }
  func.func @transform_2(%arg0: i32) -> (i32, i32) {
    %c0_i32 = arith.constant 0 : i32
    %c0_i32_0 = arith.constant 0 : i32
    %c0_i32_1 = arith.constant 0 : i32
    return %c0_i32, %c0_i32_0 : i32, i32
  }
  func.func @transform_3(%arg0: i32) -> (i32, i32) {
    %c0_i32 = arith.constant 0 : i32
    %c0_i32_0 = arith.constant 0 : i32
    %c0_i32_1 = arith.constant 0 : i32
    return %c0_i32, %c0_i32_0 : i32, i32
  }
  func.func @transform_4(%arg0: i32) -> (i32, i32) {
    %c0_i32 = arith.constant 0 : i32
    %c0_i32_0 = arith.constant 0 : i32
    %c0_i32_1 = arith.constant 0 : i32
    return %c0_i32, %c0_i32_0 : i32, i32
  }
  func.func @transform_5(%arg0: i32) -> (i32, i32) {
    %c0_i32 = arith.constant 0 : i32
    %c0_i32_0 = arith.constant 0 : i32
    return %arg0, %c0_i32 : i32, i32
  }
  func.func @transform_6(%arg0: i32) -> (i32, i32) {
    %c0_i32 = arith.constant 0 : i32
    %c0_i32_0 = arith.constant 0 : i32
    return %arg0, %c0_i32 : i32, i32
  }
}

</mosaic_0001>

<bundles_post_ra>
// kernel: tpu_custom_call.1
= control target key start
LH: loop header
LB: loop body
LE: loop exit
PB: predicated region body
PF: predicated region fallthrough
CT: control target
= control target key end

     0   :  { %12 = vsyncpa [#allocation3], 0  ;;  %s8867_s0 = inlined_call_operand.hbm [shape: f32[2,4096], index: 0, kind: input, shape index: {}]   ;;  %s8868_s1 = inlined_call_operand.hbm [shape: bf16[4096,128], index: 1, kind: input, shape index: {}]   ;;  %s8869_s2 = inlined_call_operand.hbm [shape: f32[1,128], index: 2, kind: input, shape index: {}]   ;;  %s8870_s3 = inlined_call_operand.hbm [shape: bf16[128,4608], index: 3, kind: input, shape index: {}]   ;;  %s8871_s4 = inlined_call_operand.hbm [shape: f32[1,4608], index: 4, kind: input, shape index: {}]   ;;  %s8872_s5 = inlined_call_operand.hbm [shape: f32[2,512], index: 5, kind: output, shape index: {0}]   ;;  %s8873_s6 = inlined_call_operand.hbm [shape: bf16[2,4096], index: 6, kind: output, shape index: {1}]  }
   0x1   :  { %13 = vsyncpa [#allocation6], 0 }
   0x2   :  { %14 = vsyncpa [#allocation9], 0 }
   0x3   :  { %15 = vsyncpa [#allocation4], 0 }
   0x4   :  { %16 = vsyncpa [#allocation13], 0 }
   0x5   :  { %21 = vsyncadd [#allocation3], 3072  ;;  %s8467_s21 = smov [#allocation5]   ;;  %s8303_s25 = scalar_lea.hbm %s8868_s1, 32768 }
   0x6   :  { %s34_s22 = sshll.u32 %s8467_s21, 4  ;;  %p8304_p0 = scmp.ne.s32.totalorder %s8868_s1, %s8303_s25  ;;  %s35_s22 = int_to_ptr.vmem [resolvable:$true] %s34_s22 }
   0x7   :  { %p8307_p1 = scmp.lt.u32.totalorder %s8303_s25, %s8868_s1 }
   0x9   :  { %p8309_p2 = pnand %p8307_p1, %p8304_p0 }
   0xb   :  { %8312 = shalt.err (!%p8309_p2)
}
   0xc   :  { %s8313_s30 = scalar_lea.vmem %s35_s22, 32768  ;;  %p8318_p4 = scmp.lt.s32.totalorder %s35_s22, %s35_s22 }
   0xd   :  { %p8314_p3 = scmp.ne.s32.totalorder %s35_s22, %s8313_s30  ;;  %p8319_p5 = scmp.lt.s32.totalorder %s8313_s30, %s8313_s30 }
   0xf   :  { %p8320_p6 = por %p8319_p5, %p8318_p4 }
  0x11   :  { %p8321_p7 = pnand %p8320_p6, %p8314_p3 }
  0x13   :  { %8324 = shalt.err (!%p8321_p7)
}
  0x14   :  { %s8468_s7 = smov 64   ;;  %s8469_s8 = smov 4  }
  0x15   :  { %40 = dma.hbm_to_vmem [thread:$0]  %s8868_s1, 32768, %s35_s22, [#allocation6], %s8468_s7, %s8468_s7, %s8469_s8  }
  0x16   :  { %s8470_s11 = smov [#allocation8]   ;;  %s8325_s15 = scalar_lea.hbm %s8870_s3, 36864 }
  0x17   :  { %s56_s12 = sshll.u32 %s8470_s11, 4  ;;  %p8326_p8 = scmp.ne.s32.totalorder %s8870_s3, %s8325_s15  ;;  %s57_s12 = int_to_ptr.vmem [resolvable:$true] %s56_s12 }
  0x18   :  { %p8329_p9 = scmp.lt.u32.totalorder %s8325_s15, %s8870_s3 }
  0x1a   :  { %p8331_p10 = pnand %p8329_p9, %p8326_p8 }
  0x1c   :  { %8334 = shalt.err (!%p8331_p10)
}
  0x1d   :  { %s8335_s20 = scalar_lea.vmem %s57_s12, 36864  ;;  %p8340_p12 = scmp.lt.s32.totalorder %s57_s12, %s57_s12 }
  0x1e   :  { %p8336_p11 = scmp.ne.s32.totalorder %s57_s12, %s8335_s20  ;;  %p8341_p13 = scmp.lt.s32.totalorder %s8335_s20, %s8335_s20 }
  0x20   :  { %p8342_p0 = por %p8341_p13, %p8340_p12 }
  0x22   :  { %p8343_p1 = pnand %p8342_p0, %p8336_p11 }
  0x24   :  { %8346 = shalt.err (!%p8343_p1)
}
  0x25   :  { %s8471_s1 = smov 2304   ;;  %s8472_s21 = smov 144  }
  0x26   :  { %62 = dma.hbm_to_vmem [thread:$0]  %s8870_s3, 36864, %s57_s12, [#allocation9], %s8471_s1, %s8471_s1, %s8472_s21  }
  0x27   :  { %s8473_s24 = smov [#allocation2]   ;;  %s8474_s26 = smov [#allocation7]  }
  0x28   :  { %s22_s25 = sshll.u32 %s8473_s24, 4  ;;  %s47_s27 = sshll.u32 %s8474_s26, 4  ;;  %s23_s25 = int_to_ptr.vmem [resolvable:$true] %s22_s25  ;;  %s48_s27 = int_to_ptr.vmem [resolvable:$true] %s47_s27 }
  0x29   :  { %s8347_s30 = scalar_lea.hbm %s8867_s0, 1024 }
  0x2a   :  { %p8348_p2 = scmp.ne.s32.totalorder %s8867_s0, %s8347_s30  ;;  %p8351_p3 = scmp.lt.u32.totalorder %s8347_s30, %s8867_s0 }
  0x2c   :  { %p8353_p4 = pnand %p8351_p3, %p8348_p2 }
  0x2e   :  { %8356 = shalt.err (!%p8353_p4)
}
  0x2f   :  { %s8357_s3 = scalar_lea.vmem %s23_s25, 1024  ;;  %s8361_s12 = scalar_lea.vmem %s23_s25, 4096 }
  0x30   :  { %p8358_p5 = scmp.ne.s32.totalorder %s23_s25, %s8357_s3  ;;  %p8362_p6 = scmp.lt.s32.totalorder %s23_s25, %s23_s25 }
  0x31   :  { %p8363_p7 = scmp.lt.s32.totalorder %s8361_s12, %s8357_s3 }
  0x33   :  { %p8364_p8 = por %p8363_p7, %p8362_p6 }
  0x35   :  { %p8365_p9 = pnand %p8364_p8, %p8358_p5 }
  0x37   :  { %8368 = shalt.err (!%p8365_p9)
}
  0x38   :  { %s8475_s13 = smov 1024   ;;  %s8369_s18 = scalar_lea.hbm %s8869_s2, 16 }
  0x39   :  { %28 = dma.hbm_to_vmem [thread:$0]  %s8867_s0, 1024, %s23_s25, [#allocation3], %s8475_s13, %s8475_s13, %s8468_s7  }
  0x3a   :  { %p8370_p10 = scmp.ne.s32.totalorder %s8869_s2, %s8369_s18  ;;  %p8373_p11 = scmp.lt.u32.totalorder %s8369_s18, %s8869_s2 }
  0x3c   :  { %p8375_p12 = pnand %p8373_p11, %p8370_p10 }
  0x3e   :  { %8378 = shalt.err (!%p8375_p12)
}
  0x3f   :  { %s8379_s22 = scalar_lea.vmem %s48_s27, 16  ;;  %s8383_s23 = scalar_lea.vmem %s48_s27, 32 }
  0x40   :  { %p8380_p13 = scmp.ne.s32.totalorder %s48_s27, %s8379_s22  ;;  %p8384_p0 = scmp.lt.s32.totalorder %s48_s27, %s48_s27 }
  0x41   :  { %p8385_p1 = scmp.lt.s32.totalorder %s8383_s23, %s8379_s22 }
  0x43   :  { %p8386_p2 = por %p8385_p1, %p8384_p0 }
  0x45   :  { %p8387_p3 = pnand %p8386_p2, %p8380_p13 }
  0x47   :  { %8390 = shalt.err (!%p8387_p3)
}
  0x48   :  { %50 = dma.hbm_to_vmem [thread:$0]  %s8869_s2, 16, %s48_s27, [#allocation6]  }
  0x49   :  { %s8476_s24 = smov [#allocation10]   ;;  %s8391_s29 = scalar_lea.hbm %s8871_s4, 576 }
  0x4a   :  { %s69_s25 = sshll.u32 %s8476_s24, 4  ;;  %p8392_p4 = scmp.ne.s32.totalorder %s8871_s4, %s8391_s29  ;;  %s70_s25 = int_to_ptr.vmem [resolvable:$true] %s69_s25 }
  0x4b   :  { %p8395_p5 = scmp.lt.u32.totalorder %s8391_s29, %s8871_s4 }
  0x4d   :  { %p8397_p6 = pnand %p8395_p5, %p8392_p4 }
  0x4f   :  { %8400 = shalt.err (!%p8397_p6)
}
  0x50   :  { %s8401_s11 = scalar_lea.vmem %s70_s25, 576  ;;  %p8406_p8 = scmp.lt.s32.totalorder %s70_s25, %s70_s25 }
  0x51   :  { %p8402_p7 = scmp.ne.s32.totalorder %s70_s25, %s8401_s11  ;;  %p8407_p9 = scmp.lt.s32.totalorder %s8401_s11, %s8401_s11 }
  0x53   :  { %p8408_p10 = por %p8407_p9, %p8406_p8 }
  0x55   :  { %p8409_p11 = pnand %p8408_p10, %p8402_p7 }
  0x57   :  { %8412 = shalt.err (!%p8409_p11)
}
  0x58   :  { %72 = dma.hbm_to_vmem [thread:$0]  %s8871_s4, 576, %s70_s25, [#allocation9]  }
  0x59   :  { %8457 = dma.done.wait [#allocation3], 4096  }
  0x5a   :  { %8458 = vsyncadd [#allocation3], 4294963200 }
  0x5b   :  { %8459 = dma.done.wait [#allocation6], 32784  }
  0x5c   :  { %8460 = vsyncadd [#allocation6], 4294934512 }
  0x5d   :  { %8461 = dma.done.wait [#allocation9], 37440  }
  0x5e   :  { %8462 = vsyncadd [#allocation9], 4294929856  ;;  %v7481_v0 = vld [vmem:[#allocation5 + $0x40] sm:$0xff]   ;;  %v7485_v4 = vld [vmem:[#allocation5 + $0x48] sm:$0xff]   ;;  %v8477_v24 = vmov 1983009808   ;;  %v160_v26 = vlaneseq }
  0x5f   :  { %v7482_v1 = vld [vmem:[#allocation5 + $0xc0] sm:$0xff]   ;;  %7110 = vmatprep.subr.bf16.mxu0 %v7481_v0  ;;  %v7486_v5 = vld [vmem:[#allocation5 + $0xc8] sm:$0xff]   ;;  %v7489_v8 = vld [vmem:[#allocation5 + $0x50] sm:$0xff]   ;;  %v158_v25 = vunpack.c.l.s4 %v8477_v24 }
  0x60   :  { %v7483_v2 = vld [vmem:[#allocation5] sm:$0xff]   ;;  %7132 = vmatprep.subr.bf16.mxu1 %v7482_v1  ;;  %v7487_v6 = vld [vmem:[#allocation5 + $0x8] sm:$0xff]   ;;  %v7490_v9 = vld [vmem:[#allocation5 + $0xd0] sm:$0xff]   ;;  %v8585_v32 = vshrl.u32 %v160_v26, 7 }
  0x61   :  { %v7484_v3 = vld [vmem:[#allocation5 + $0x80] sm:$0xff]   ;;  %7111 = vmatpush3.bf16.msra.mxu0 %v7483_v2  ;;  %v7488_v7 = vld [vmem:[#allocation5 + $0x88] sm:$0xff]   ;;  %v7491_v10 = vld [vmem:[#allocation5 + $0x10] sm:$0xff]   ;;  %v159_v31 = vunpack.c.0.s8 %v158_v25 }
  0x62   :  { %7133 = vmatpush3.bf16.msra.mxu1 %v7484_v3  ;;  %7112 = vmatprep.subr.bf16.mxu0 %v7485_v4  ;;  %v7492_v11 = vld [vmem:[#allocation5 + $0x90] sm:$0xff]   ;;  %v7493_v12 = vld [vmem:[#allocation5 + $0x58] sm:$0xff]   ;;  %v7497_v16 = vld [vmem:[#allocation5 + $0x60] sm:$0xff]  }
  0x63   :  { %7134 = vmatprep.subr.bf16.mxu1 %v7486_v5  ;;  %v7494_v13 = vld [vmem:[#allocation5 + $0xd8] sm:$0xff]   ;;  %v7498_v17 = vld [vmem:[#allocation5 + $0xe0] sm:$0xff]   ;;  %v7501_v20 = vld [vmem:[#allocation5 + $0x68] sm:$0xff]   ;;  %v8588_v37 = vsub.s32 %v159_v31, %v8585_v32 }
  0x64   :  { %v7495_v14 = vld [vmem:[#allocation5 + $0x18] sm:$0xff]   ;;  %v7499_v18 = vld [vmem:[#allocation5 + $0x20] sm:$0xff]   ;;  %v7502_v21 = vld [vmem:[#allocation5 + $0xe8] sm:$0xff]  }
  0x65   :  { %7113 = vmatpush3.bf16.msra.mxu0 %v7487_v6  ;;  %v7496_v15 = vld [vmem:[#allocation5 + $0x98] sm:$0xff]   ;;  %v7500_v19 = vld [vmem:[#allocation5 + $0xa0] sm:$0xff]   ;;  %v7503_v22 = vld [vmem:[#allocation5 + $0x28] sm:$0xff]  }
  0x66   :  { %7135 = vmatpush3.bf16.msra.mxu1 %v7488_v7  ;;  %7114 = vmatprep.subr.bf16.mxu0 %v7489_v8  ;;  %v7504_v23 = vld [vmem:[#allocation5 + $0xa8] sm:$0xff]   ;;  %v7505_v27 = vld [vmem:[#allocation5 + $0x70] sm:$0xff]   ;;  %v7509_v33 = vld [vmem:[#allocation5 + $0x78] sm:$0xff]  }
  0x67   :  { %7136 = vmatprep.subr.bf16.mxu1 %v7490_v9  ;;  %v7506_v28 = vld [vmem:[#allocation5 + $0xf0] sm:$0xff]   ;;  %v7510_v34 = vld [vmem:[#allocation5 + $0xf8] sm:$0xff]   ;;  %v89_v38 = vld [vmem:[#allocation2] sm:$0xff] }
  0x68   :  { %v7507_v29 = vld [vmem:[#allocation5 + $0x30] sm:$0xff]   ;;  %v7511_v35 = vld [vmem:[#allocation5 + $0x38] sm:$0xff]   ;;  %v97_v39 = vld [vmem:[#allocation2 + $0x40] sm:$0xff] }
  0x69   :  { %7115 = vmatpush3.bf16.msra.mxu0 %v7491_v10  ;;  %v7508_v30 = vld [vmem:[#allocation5 + $0xb0] sm:$0xff]   ;;  %v7512_v36 = vld [vmem:[#allocation5 + $0xb8] sm:$0xff]   ;;  %v105_v40 = vld [vmem:[#allocation2 + $0x80] sm:$0xff]  ;;  %v153_v42 = vcombine.low %v89_v38, %v97_v39  ;;  %v154_v43 = vcombine.high %v89_v38, %v97_v39 }
  0x6a   :  { %7137 = vmatpush3.bf16.msra.mxu1 %v7492_v11  ;;  %7116 = vmatprep.subr.bf16.mxu0 %v7493_v12  ;;  %v113_v41 = vld [vmem:[#allocation2 + $0xc0] sm:$0xff]  ;;  %v7517_v62 = vld [vmem:[#allocation5 + $0x148] sm:$0xff]   ;;  %v7521_v2 = vld [vmem:[#allocation5 + $0x150] sm:$0xff]  }
  0x6b   :  { %7138 = vmatprep.subr.bf16.mxu1 %v7494_v13  ;;  %v155_v44 = vcombine.low %v105_v40, %v113_v41  ;;  %v156_v45 = vcombine.high %v105_v40, %v113_v41  ;;  %v7513_v46 = vld [vmem:[#allocation5 + $0x140] sm:$0xff]   ;;  %v163_v47 = vrot.slane %v153_v42, %v8588_v37  ;;  %v170_v48 = vrot.slane %v154_v43, %v8588_v37  ;;  %v7518_v63 = vld [vmem:[#allocation5 + $0x1c8] sm:$0xff]   ;;  %v7522_v3 = vld [vmem:[#allocation5 + $0x1d0] sm:$0xff]  }
  0x6c   :  { %v7514_v49 = vld [vmem:[#allocation5 + $0x1c0] sm:$0xff]   ;;  %v7519_v0 = vld [vmem:[#allocation5 + $0x108] sm:$0xff]   ;;  %v7523_v4 = vld [vmem:[#allocation5 + $0x110] sm:$0xff]  }
  0x6d   :  { %7117 = vmatpush3.bf16.msra.mxu0 %v7495_v14  ;;  %v177_v50 = vrot.slane %v155_v44, %v8588_v37  ;;  %v184_v51 = vrot.slane %v156_v45, %v8588_v37  ;;  %v7515_v56 = vld [vmem:[#allocation5 + $0x100] sm:$0xff]   ;;  %v7520_v1 = vld [vmem:[#allocation5 + $0x188] sm:$0xff]   ;;  %v7524_v5 = vld [vmem:[#allocation5 + $0x190] sm:$0xff]  }
  0x6e   :  { %7139 = vmatpush3.bf16.msra.mxu1 %v7496_v15  ;;  %7118 = vmatprep.subr.bf16.mxu0 %v7497_v16  ;;  %v7516_v57 = vld [vmem:[#allocation5 + $0x180] sm:$0xff]   ;;  %v7525_v6 = vld [vmem:[#allocation5 + $0x158] sm:$0xff]   ;;  %v7533_v14 = vld [vmem:[#allocation5 + $0x168] sm:$0xff]  }
  0x6f   :  { %7140 = vmatprep.subr.bf16.mxu1 %v7498_v17  ;;  %v186_v52 = vcombine.high %v163_v47, %v177_v50  ;;  %v188_v53 = vcombine.high %v170_v48, %v184_v51  ;;  %v185_v54 = vcombine.low %v163_v47, %v177_v50  ;;  %v187_v55 = vcombine.low %v170_v48, %v184_v51  ;;  %v7526_v7 = vld [vmem:[#allocation5 + $0x1d8] sm:$0xff]   ;;  %v7529_v10 = vld [vmem:[#allocation5 + $0x160] sm:$0xff]   ;;  %v7534_v15 = vld [vmem:[#allocation5 + $0x1e8] sm:$0xff]  }
  0x70   :  { %v7527_v8 = vld [vmem:[#allocation5 + $0x118] sm:$0xff]   ;;  %v7530_v11 = vld [vmem:[#allocation5 + $0x1e0] sm:$0xff]   ;;  %v7535_v16 = vld [vmem:[#allocation5 + $0x128] sm:$0xff]  }
  0x71   :  { %7119 = vmatpush3.bf16.msra.mxu0 %v7499_v18  ;;  %v474_v58 = vpack.c.bf16 %v186_v52, %v186_v52  ;;  %v476_v59 = vpack.c.bf16 %v188_v53, %v188_v53  ;;  %v473_v60 = vpack.c.bf16 %v185_v54, %v185_v54  ;;  %v475_v61 = vpack.c.bf16 %v187_v55, %v187_v55  ;;  %v7528_v9 = vld [vmem:[#allocation5 + $0x198] sm:$0xff]   ;;  %v7531_v12 = vld [vmem:[#allocation5 + $0x120] sm:$0xff]   ;;  %v7536_v17 = vld [vmem:[#allocation5 + $0x1a8] sm:$0xff]  }
  0x72   :  { %7141 = vmatpush3.bf16.msra.mxu1 %v7500_v19  ;;  %7120 = vmatprep.subr.bf16.mxu0 %v7501_v20  ;;  %v7532_v13 = vld [vmem:[#allocation5 + $0x1a0] sm:$0xff]   ;;  %v7537_v18 = vld [vmem:[#allocation5 + $0x170] sm:$0xff]   ;;  %v90_v24 = vld [vmem:[#allocation2 + $0x8] sm:$0xff] }
  0x73   :  { %7142 = vmatprep.subr.bf16.mxu1 %v7502_v21  ;;  %2592 = vmatprep.mubr.bf16.mxu0 %v474_v58  ;;  %v7538_v19 = vld [vmem:[#allocation5 + $0x1f0] sm:$0xff]   ;;  %v98_v25 = vld [vmem:[#allocation2 + $0x48] sm:$0xff]  ;;  %v7543_v31 = vld [vmem:[#allocation5 + $0x138] sm:$0xff]  }
  0x74   :  { %2632 = vmatprep.mubr.bf16.mxu1 %v476_v59  ;;  %v7539_v20 = vld [vmem:[#allocation5 + $0x130] sm:$0xff]   ;;  %v7545_v41 = vld [vmem:[#allocation5 + $0x240] sm:$0xff]   ;;  %v7549_v53 = vld [vmem:[#allocation5 + $0x248] sm:$0xff]  }
  0x75   :  { %7121 = vmatpush3.bf16.msra.mxu0 %v7503_v22  ;;  %v7540_v21 = vld [vmem:[#allocation5 + $0x1b0] sm:$0xff]   ;;  %v7541_v22 = vld [vmem:[#allocation5 + $0x178] sm:$0xff]   ;;  %v7546_v42 = vld [vmem:[#allocation5 + $0x2c0] sm:$0xff]  }
  0x76   :  { %7143 = vmatpush3.bf16.msra.mxu1 %v7504_v23  ;;  %7122 = vmatprep.subr.bf16.mxu0 %v7505_v27  ;;  %v7542_v23 = vld [vmem:[#allocation5 + $0x1f8] sm:$0xff]   ;;  %v106_v27 = vld [vmem:[#allocation2 + $0x88] sm:$0xff]  ;;  %v7547_v47 = vld [vmem:[#allocation5 + $0x200] sm:$0xff]  }
  0x77   :  { %7144 = vmatprep.subr.bf16.mxu1 %v7506_v28  ;;  %v114_v28 = vld [vmem:[#allocation2 + $0xc8] sm:$0xff]  ;;  %v7548_v48 = vld [vmem:[#allocation5 + $0x280] sm:$0xff]   ;;  %v7554_v58 = vld [vmem:[#allocation5 + $0x2d0] sm:$0xff]  }
  0x78   :  { %v7550_v54 = vld [vmem:[#allocation5 + $0x2c8] sm:$0xff]   ;;  %v7555_v59 = vld [vmem:[#allocation5 + $0x210] sm:$0xff]  }
  0x79   :  { %7123 = vmatpush3.bf16.msra.mxu0 %v7507_v29  ;;  %v189_v29 = vcombine.low %v90_v24, %v98_v25  ;;  %v7551_v55 = vld [vmem:[#allocation5 + $0x208] sm:$0xff]  }
  0x7a   :  { %7145 = vmatpush3.bf16.msra.mxu1 %v7508_v30  ;;  %7124 = vmatprep.subr.bf16.mxu0 %v7509_v33  ;;  %v190_v30 = vcombine.high %v90_v24, %v98_v25  ;;  %v191_v33 = vcombine.low %v106_v27, %v114_v28  ;;  %v7577_v25 = vld [vmem:[#allocation5 + $0x340] sm:$0xff]  }
  0x7b   :  { %7146 = vmatprep.subr.bf16.mxu1 %v7510_v34  ;;  %v192_v34 = vcombine.high %v106_v27, %v114_v28 }
  0x7c   :  { %v206_v38 = vrot.slane %v190_v30, %v8588_v37  ;;  %v213_v39 = vrot.slane %v191_v33, %v8588_v37  ;;  %v7578_v30 = vld [vmem:[#allocation5 + $0x3c0] sm:$0xff]  }
  0x7d   :  { %7125 = vmatpush3.bf16.msra.mxu0 %v7511_v35  ;;  %v7544_v35 = vld [vmem:[#allocation5 + $0x1b8] sm:$0xff]   ;;  %v220_v40 = vrot.slane %v192_v34, %v8588_v37 }
  0x7e   :  { %7147 = vmatpush3.bf16.msra.mxu1 %v7512_v36  ;;  %7154 = vmatprep.subr.bf16.mxu0 %v7513_v46  ;;  %v199_v36 = vrot.slane %v189_v29, %v8588_v37 }
  0x7f   :  { %7176 = vmatprep.subr.bf16.mxu1 %v7514_v49  ;;  %v224_v44 = vcombine.high %v206_v38, %v220_v40  ;;  %v223_v46 = vcombine.low %v206_v38, %v220_v40 }
  0x80   :  { %2593 = vmatmul.mubr.bf16.vlgmr.msra.gmra.mrb[0].mxu0 %v473_v60  ;;  %v222_v43 = vcombine.high %v199_v36, %v213_v39  ;;  %v221_v45 = vcombine.low %v199_v36, %v213_v39  ;;  %v7556_v60 = vld [vmem:[#allocation5 + $0x290] sm:$0xff]   ;;  %v7580_v39 = vld [vmem:[#allocation5 + $0x380] sm:$0xff]  }
  0x81   :  { %2633 = vmatmul.mubr.bf16.vlgmr.msra.gmra.mrb[0].mxu1 %v475_v61  ;;  %7155 = vmatpush3.bf16.msra.mxu0 %v7515_v56  ;;  %v480_v50 = vpack.c.bf16 %v224_v44, %v224_v44  ;;  %v479_v52 = vpack.c.bf16 %v223_v46, %v223_v46  ;;  %v7552_v56 = vld [vmem:[#allocation5 + $0x288] sm:$0xff]   ;;  %v7557_v61 = vld [vmem:[#allocation5 + $0x258] sm:$0xff]  }
  0x82   :  { %7177 = vmatpush3.bf16.msra.mxu1 %v7516_v57  ;;  %7156 = vmatprep.subr.bf16.mxu0 %v7517_v62  ;;  %v478_v49 = vpack.c.bf16 %v222_v43, %v222_v43  ;;  %v477_v51 = vpack.c.bf16 %v221_v45, %v221_v45  ;;  %v7553_v57 = vld [vmem:[#allocation5 + $0x250] sm:$0xff]   ;;  %v7558_v62 = vld [vmem:[#allocation5 + $0x2d8] sm:$0xff]   ;;  %v7582_v45 = vld [vmem:[#allocation5 + $0x3c8] sm:$0xff]  }
  0x83   :  { %7178 = vmatprep.subr.bf16.mxu1 %v7518_v63  ;;  %2712 = vmatprep.mubr.bf16.mxu1 %v480_v50  ;;  %v7559_v63 = vld [vmem:[#allocation5 + $0x218] sm:$0xff]   ;;  %v7583_v46 = vld [vmem:[#allocation5 + $0x308] sm:$0xff]   ;;  %v7587_v50 = vld [vmem:[#allocation5 + $0x310] sm:$0xff]  }
  0x84   :  { %2672 = vmatprep.mubr.bf16.mxu0 %v478_v49  ;;  %v7586_v49 = vld [vmem:[#allocation5 + $0x3d0] sm:$0xff]  }
  0x85   :  { %7157 = vmatpush3.bf16.msra.mxu0 %v7519_v0  ;;  %v7560_v0 = vld [vmem:[#allocation5 + $0x298] sm:$0xff]  }
  0x86   :  { %7179 = vmatpush3.bf16.msra.mxu1 %v7520_v1  ;;  %7158 = vmatprep.subr.bf16.mxu0 %v7521_v2  ;;  %v7561_v1 = vld [vmem:[#allocation5 + $0x260] sm:$0xff]  }
  0x87   :  { %7180 = vmatprep.subr.bf16.mxu1 %v7522_v3  ;;  %v7562_v2 = vld [vmem:[#allocation5 + $0x2e0] sm:$0xff]  }
  0x88   :  { %v7563_v3 = vld [vmem:[#allocation5 + $0x220] sm:$0xff]  }
  0x89   :  { %7159 = vmatpush3.bf16.msra.mxu0 %v7523_v4  ;;  %v7564_v4 = vld [vmem:[#allocation5 + $0x2a0] sm:$0xff]  }
  0x8a   :  { %7181 = vmatpush3.bf16.msra.mxu1 %v7524_v5  ;;  %7160 = vmatprep.subr.bf16.mxu0 %v7525_v6  ;;  %v7565_v5 = vld [vmem:[#allocation5 + $0x268] sm:$0xff]  }
  0x8b   :  { %7182 = vmatprep.subr.bf16.mxu1 %v7526_v7  ;;  %v7566_v6 = vld [vmem:[#allocation5 + $0x2e8] sm:$0xff]  }
  0x8c   :  { %v7567_v7 = vld [vmem:[#allocation5 + $0x228] sm:$0xff]  }
  0x8d   :  { %7161 = vmatpush3.bf16.msra.mxu0 %v7527_v8  ;;  %v7568_v8 = vld [vmem:[#allocation5 + $0x2a8] sm:$0xff]  }
  0x8e   :  { %7183 = vmatpush3.bf16.msra.mxu1 %v7528_v9  ;;  %7162 = vmatprep.subr.bf16.mxu0 %v7529_v10  ;;  %v7569_v9 = vld [vmem:[#allocation5 + $0x270] sm:$0xff]  }
  0x8f   :  { %7184 = vmatprep.subr.bf16.mxu1 %v7530_v11  ;;  %v7570_v10 = vld [vmem:[#allocation5 + $0x2f0] sm:$0xff]  }
  0x90   :  { %v7571_v11 = vld [vmem:[#allocation5 + $0x230] sm:$0xff]  }
  0x91   :  { %7163 = vmatpush3.bf16.msra.mxu0 %v7531_v12  ;;  %v7572_v12 = vld [vmem:[#allocation5 + $0x2b0] sm:$0xff]  }
  0x92   :  { %7185 = vmatpush3.bf16.msra.mxu1 %v7532_v13  ;;  %7164 = vmatprep.subr.bf16.mxu0 %v7533_v14  ;;  %v7573_v13 = vld [vmem:[#allocation5 + $0x278] sm:$0xff]  }
  0x93   :  { %7186 = vmatprep.subr.bf16.mxu1 %v7534_v15  ;;  %v7574_v14 = vld [vmem:[#allocation5 + $0x2f8] sm:$0xff]   ;;  %v91_v15 = vld [vmem:[#allocation2 + $0x10] sm:$0xff] }
  0x95   :  { %7165 = vmatpush3.bf16.msra.mxu0 %v7535_v16  ;;  %v7575_v16 = vld [vmem:[#allocation5 + $0x238] sm:$0xff]  }
  0x96   :  { %7187 = vmatpush3.bf16.msra.mxu1 %v7536_v17  ;;  %7166 = vmatprep.subr.bf16.mxu0 %v7537_v18  ;;  %v99_v17 = vld [vmem:[#allocation2 + $0x50] sm:$0xff] }
  0x97   :  { %7188 = vmatprep.subr.bf16.mxu1 %v7538_v19  ;;  %v107_v18 = vld [vmem:[#allocation2 + $0x90] sm:$0xff] }
  0x98   :  { %v115_v19 = vld [vmem:[#allocation2 + $0xd0] sm:$0xff] }
  0x99   :  { %7167 = vmatpush3.bf16.msra.mxu0 %v7539_v20  ;;  %v7576_v20 = vld [vmem:[#allocation5 + $0x2b8] sm:$0xff]   ;;  %v228_v24 = vcombine.high %v107_v18, %v115_v19 }
  0x9a   :  { %7189 = vmatpush3.bf16.msra.mxu1 %v7540_v21  ;;  %7168 = vmatprep.subr.bf16.mxu0 %v7541_v22  ;;  %v225_v21 = vcombine.low %v91_v15, %v99_v17  ;;  %v227_v22 = vcombine.low %v107_v18, %v115_v19  ;;  %v7609_v18 = vld [vmem:[#allocation5 + $0x440] sm:$0xff]  }
  0x9b   :  { %7190 = vmatprep.subr.bf16.mxu1 %v7542_v23  ;;  %v226_v23 = vcombine.high %v91_v15, %v99_v17 }
  0x9c   :  { %v235_v27 = vrot.slane %v225_v21, %v8588_v37  ;;  %v249_v28 = vrot.slane %v227_v22, %v8588_v37  ;;  %v7610_v21 = vld [vmem:[#allocation5 + $0x4c0] sm:$0xff]  }
  0x9d   :  { %7169 = vmatpush3.bf16.msra.mxu0 %v7543_v31  ;;  %v242_v29 = vrot.slane %v226_v23, %v8588_v37  ;;  %v256_v31 = vrot.slane %v228_v24, %v8588_v37 }
  0x9e   :  { %7191 = vmatpush3.bf16.msra.mxu1 %v7544_v35  ;;  %7198 = vmatprep.subr.bf16.mxu0 %v7545_v41  ;;  %v258_v33 = vcombine.high %v235_v27, %v249_v28  ;;  %v257_v34 = vcombine.low %v235_v27, %v249_v28  ;;  %v7579_v35 = vld [vmem:[#allocation5 + $0x300] sm:$0xff]  }
  0x9f   :  { %7220 = vmatprep.subr.bf16.mxu1 %v7546_v42  ;;  %v260_v36 = vcombine.high %v242_v29, %v256_v31  ;;  %v259_v38 = vcombine.low %v242_v29, %v256_v31  ;;  %v7581_v42 = vld [vmem:[#allocation5 + $0x348] sm:$0xff]   ;;  %v7611_v27 = vld [vmem:[#allocation5 + $0x400] sm:$0xff]  }
  0xa0   :  { %2673 = vmatmul.mubr.bf16.vlgmr.msra.gmra.mrb[4].mxu0 %v477_v51  ;;  %v482_v40 = vpack.c.bf16 %v258_v33, %v258_v33  ;;  %v481_v41 = vpack.c.bf16 %v257_v34, %v257_v34  ;;  %v7588_v51 = vld [vmem:[#allocation5 + $0x390] sm:$0xff]   ;;  %v7612_v28 = vld [vmem:[#allocation5 + $0x480] sm:$0xff]   ;;  %v7613_v34 = vld [vmem:[#allocation5 + $0x448] sm:$0xff]  }
  0xa1   :  { %2713 = vmatmul.mubr.bf16.vlgmr.msra.gmra.mrb[4].mxu1 %v479_v52  ;;  %7199 = vmatpush3.bf16.msra.mxu0 %v7547_v47  ;;  %v484_v43 = vpack.c.bf16 %v260_v36, %v260_v36  ;;  %v483_v44 = vpack.c.bf16 %v259_v38, %v259_v38  ;;  %v7584_v47 = vld [vmem:[#allocation5 + $0x388] sm:$0xff]   ;;  %v7589_v52 = vld [vmem:[#allocation5 + $0x358] sm:$0xff]  }
  0xa2   :  { %7221 = vmatpush3.bf16.msra.mxu1 %v7548_v48  ;;  %7200 = vmatprep.subr.bf16.mxu0 %v7549_v53  ;;  %v7585_v48 = vld [vmem:[#allocation5 + $0x350] sm:$0xff]   ;;  %v7590_v53 = vld [vmem:[#allocation5 + $0x3d8] sm:$0xff]   ;;  %v7615_v36 = vld [vmem:[#allocation5 + $0x408] sm:$0xff]  }
  0xa3   :  { %7222 = vmatprep.subr.bf16.mxu1 %v7550_v54  ;;  %2752 = vmatprep.mubr.bf16.mxu0 %v482_v40  ;;  %v7591_v54 = vld [vmem:[#allocation5 + $0x318] sm:$0xff]   ;;  %v7616_v38 = vld [vmem:[#allocation5 + $0x488] sm:$0xff]   ;;  %v7618_v40 = vld [vmem:[#allocation5 + $0x4d0] sm:$0xff]  }
  0xa4   :  { %2792 = vmatprep.mubr.bf16.mxu1 %v484_v43  ;;  %v7621_v43 = vld [vmem:[#allocation5 + $0x458] sm:$0xff]  }
  0xa5   :  { %7201 = vmatpush3.bf16.msra.mxu0 %v7551_v55  ;;  %v7592_v55 = vld [vmem:[#allocation5 + $0x398] sm:$0xff]  }
  0xa6   :  { %7223 = vmatpush3.bf16.msra.mxu1 %v7552_v56  ;;  %7202 = vmatprep.subr.bf16.mxu0 %v7553_v57  ;;  %v7593_v56 = vld [vmem:[#allocation5 + $0x360] sm:$0xff]  }
  0xa7   :  { %7224 = vmatprep.subr.bf16.mxu1 %v7554_v58  ;;  %v7594_v57 = vld [vmem:[#allocation5 + $0x3e0] sm:$0xff]  }
  0xa8   :  { %v7595_v58 = vld [vmem:[#allocation5 + $0x320] sm:$0xff]  }
  0xa9   :  { %7203 = vmatpush3.bf16.msra.mxu0 %v7555_v59  ;;  %v7596_v59 = vld [vmem:[#allocation5 + $0x3a0] sm:$0xff]  }
  0xaa   :  { %7225 = vmatpush3.bf16.msra.mxu1 %v7556_v60  ;;  %7204 = vmatprep.subr.bf16.mxu0 %v7557_v61  ;;  %v7597_v60 = vld [vmem:[#allocation5 + $0x368] sm:$0xff]  }
  0xab   :  { %7226 = vmatprep.subr.bf16.mxu1 %v7558_v62  ;;  %v7598_v61 = vld [vmem:[#allocation5 + $0x3e8] sm:$0xff]  }
  0xac   :  { %v7599_v62 = vld [vmem:[#allocation5 + $0x328] sm:$0xff]  }
  0xad   :  { %7205 = vmatpush3.bf16.msra.mxu0 %v7559_v63  ;;  %v7600_v63 = vld [vmem:[#allocation5 + $0x3a8] sm:$0xff]  }
  0xae   :  { %7227 = vmatpush3.bf16.msra.mxu1 %v7560_v0  ;;  %7206 = vmatprep.subr.bf16.mxu0 %v7561_v1  ;;  %v7601_v0 = vld [vmem:[#allocation5 + $0x370] sm:$0xff]  }
  0xaf   :  { %7228 = vmatprep.subr.bf16.mxu1 %v7562_v2  ;;  %v7602_v1 = vld [vmem:[#allocation5 + $0x3f0] sm:$0xff]  }
  0xb0   :  { %v7603_v2 = vld [vmem:[#allocation5 + $0x330] sm:$0xff]  }
  0xb1   :  { %7207 = vmatpush3.bf16.msra.mxu0 %v7563_v3  ;;  %v7604_v3 = vld [vmem:[#allocation5 + $0x3b0] sm:$0xff]  }
  0xb2   :  { %7229 = vmatpush3.bf16.msra.mxu1 %v7564_v4  ;;  %7208 = vmatprep.subr.bf16.mxu0 %v7565_v5  ;;  %v7605_v4 = vld [vmem:[#allocation5 + $0x378] sm:$0xff]  }
  0xb3   :  { %7230 = vmatprep.subr.bf16.mxu1 %v7566_v6  ;;  %v7606_v5 = vld [vmem:[#allocation5 + $0x3f8] sm:$0xff]  }
  0xb4   :  { %v7607_v6 = vld [vmem:[#allocation5 + $0x338] sm:$0xff]  }
  0xb5   :  { %7209 = vmatpush3.bf16.msra.mxu0 %v7567_v7  ;;  %v92_v7 = vld [vmem:[#allocation2 + $0x18] sm:$0xff] }
  0xb6   :  { %7231 = vmatpush3.bf16.msra.mxu1 %v7568_v8  ;;  %7210 = vmatprep.subr.bf16.mxu0 %v7569_v9  ;;  %v100_v8 = vld [vmem:[#allocation2 + $0x58] sm:$0xff] }
  0xb7   :  { %7232 = vmatprep.subr.bf16.mxu1 %v7570_v10  ;;  %v108_v9 = vld [vmem:[#allocation2 + $0x98] sm:$0xff] }
  0xb8   :  { %v116_v10 = vld [vmem:[#allocation2 + $0xd8] sm:$0xff] }
  0xb9   :  { %7211 = vmatpush3.bf16.msra.mxu0 %v7571_v11  ;;  %v261_v11 = vcombine.low %v92_v7, %v100_v8  ;;  %v264_v15 = vcombine.high %v108_v9, %v116_v10 }
  0xba   :  { %7233 = vmatpush3.bf16.msra.mxu1 %v7572_v12  ;;  %7212 = vmatprep.subr.bf16.mxu0 %v7573_v13  ;;  %v262_v12 = vcombine.high %v92_v7, %v100_v8  ;;  %v7608_v13 = vld [vmem:[#allocation5 + $0x3b8] sm:$0xff]  }
  0xbb   :  { %7234 = vmatprep.subr.bf16.mxu1 %v7574_v14  ;;  %v263_v14 = vcombine.low %v108_v9, %v116_v10 }
  0xbc   :  { %v278_v17 = vrot.slane %v262_v12, %v8588_v37  ;;  %v7642_v12 = vld [vmem:[#allocation5 + $0x5c0] sm:$0xff]  }
  0xbd   :  { %7213 = vmatpush3.bf16.msra.mxu0 %v7575_v16  ;;  %v271_v16 = vrot.slane %v261_v11, %v8588_v37  ;;  %v285_v19 = vrot.slane %v263_v14, %v8588_v37  ;;  %v7641_v11 = vld [vmem:[#allocation5 + $0x540] sm:$0xff]  }
  0xbe   :  { %7235 = vmatpush3.bf16.msra.mxu1 %v7576_v20  ;;  %7242 = vmatprep.subr.bf16.mxu0 %v7577_v25  ;;  %v292_v20 = vrot.slane %v264_v15, %v8588_v37 }
  0xbf   :  { %7264 = vmatprep.subr.bf16.mxu1 %v7578_v30  ;;  %v294_v22 = vcombine.high %v271_v16, %v285_v19  ;;  %v293_v24 = vcombine.low %v271_v16, %v285_v19 }
  0xc0   :  { %2753 = vmatmul.mubr.bf16.vlgmr.msra.gmra.mrb[8].mxu0 %v481_v41  ;;  %v296_v23 = vcombine.high %v278_v17, %v292_v20  ;;  %v295_v25 = vcombine.low %v278_v17, %v292_v20  ;;  %v7619_v41 = vld [vmem:[#allocation5 + $0x410] sm:$0xff]   ;;  %v7643_v17 = vld [vmem:[#allocation5 + $0x500] sm:$0xff]  }
  0xc1   :  { %2793 = vmatmul.mubr.bf16.vlgmr.msra.gmra.mrb[8].mxu1 %v483_v44  ;;  %7243 = vmatpush3.bf16.msra.mxu0 %v7579_v35  ;;  %v486_v29 = vpack.c.bf16 %v294_v22, %v294_v22  ;;  %v485_v31 = vpack.c.bf16 %v293_v24, %v293_v24  ;;  %v7614_v35 = vld [vmem:[#allocation5 + $0x4c8] sm:$0xff]   ;;  %v7622_v44 = vld [vmem:[#allocation5 + $0x4d8] sm:$0xff]  }
  0xc2   :  { %7265 = vmatpush3.bf16.msra.mxu1 %v7580_v39  ;;  %7244 = vmatprep.subr.bf16.mxu0 %v7581_v42  ;;  %v488_v30 = vpack.c.bf16 %v296_v23, %v296_v23  ;;  %v487_v33 = vpack.c.bf16 %v295_v25, %v295_v25  ;;  %v7617_v39 = vld [vmem:[#allocation5 + $0x450] sm:$0xff]   ;;  %v7645_v23 = vld [vmem:[#allocation5 + $0x548] sm:$0xff]  }
  0xc3   :  { %7266 = vmatprep.subr.bf16.mxu1 %v7582_v45  ;;  %2832 = vmatprep.mubr.bf16.mxu0 %v486_v29  ;;  %v7620_v42 = vld [vmem:[#allocation5 + $0x490] sm:$0xff]   ;;  %v7623_v45 = vld [vmem:[#allocation5 + $0x418] sm:$0xff]   ;;  %v7646_v24 = vld [vmem:[#allocation5 + $0x5c8] sm:$0xff]  }
  0xc4   :  { %2872 = vmatprep.mubr.bf16.mxu1 %v488_v30  ;;  %v7647_v25 = vld [vmem:[#allocation5 + $0x508] sm:$0xff]   ;;  %v7650_v29 = vld [vmem:[#allocation5 + $0x5d0] sm:$0xff]  }
  0xc5   :  { %7245 = vmatpush3.bf16.msra.mxu0 %v7583_v46  ;;  %v7624_v46 = vld [vmem:[#allocation5 + $0x498] sm:$0xff]   ;;  %v7651_v30 = vld [vmem:[#allocation5 + $0x510] sm:$0xff]  }
  0xc6   :  { %7267 = vmatpush3.bf16.msra.mxu1 %v7584_v47  ;;  %7246 = vmatprep.subr.bf16.mxu0 %v7585_v48  ;;  %v7625_v47 = vld [vmem:[#allocation5 + $0x460] sm:$0xff]  }
  0xc7   :  { %7268 = vmatprep.subr.bf16.mxu1 %v7586_v49  ;;  %v7626_v48 = vld [vmem:[#allocation5 + $0x4e0] sm:$0xff]  }
  0xc8   :  { %v7627_v49 = vld [vmem:[#allocation5 + $0x420] sm:$0xff]  }
  0xc9   :  { %7247 = vmatpush3.bf16.msra.mxu0 %v7587_v50  ;;  %v7628_v50 = vld [vmem:[#allocation5 + $0x4a0] sm:$0xff]  }
  0xca   :  { %7269 = vmatpush3.bf16.msra.mxu1 %v7588_v51  ;;  %7248 = vmatprep.subr.bf16.mxu0 %v7589_v52  ;;  %v7629_v51 = vld [vmem:[#allocation5 + $0x468] sm:$0xff]  }
  0xcb   :  { %7270 = vmatprep.subr.bf16.mxu1 %v7590_v53  ;;  %v7630_v52 = vld [vmem:[#allocation5 + $0x4e8] sm:$0xff]  }
  0xcc   :  { %v7631_v53 = vld [vmem:[#allocation5 + $0x428] sm:$0xff]  }
  0xcd   :  { %7249 = vmatpush3.bf16.msra.mxu0 %v7591_v54  ;;  %v7632_v54 = vld [vmem:[#allocation5 + $0x4a8] sm:$0xff]  }
  0xce   :  { %7271 = vmatpush3.bf16.msra.mxu1 %v7592_v55  ;;  %7250 = vmatprep.subr.bf16.mxu0 %v7593_v56  ;;  %v7633_v55 = vld [vmem:[#allocation5 + $0x470] sm:$0xff]  }
  0xcf   :  { %7272 = vmatprep.subr.bf16.mxu1 %v7594_v57  ;;  %v7634_v56 = vld [vmem:[#allocation5 + $0x4f0] sm:$0xff]  }
  0xd0   :  { %v7635_v57 = vld [vmem:[#allocation5 + $0x430] sm:$0xff]  }
  0xd1   :  { %7251 = vmatpush3.bf16.msra.mxu0 %v7595_v58  ;;  %v7636_v58 = vld [vmem:[#allocation5 + $0x4b0] sm:$0xff]  }
  0xd2   :  { %7273 = vmatpush3.bf16.msra.mxu1 %v7596_v59  ;;  %7252 = vmatprep.subr.bf16.mxu0 %v7597_v60  ;;  %v7637_v59 = vld [vmem:[#allocation5 + $0x478] sm:$0xff]  }
  0xd3   :  { %7274 = vmatprep.subr.bf16.mxu1 %v7598_v61  ;;  %v7638_v60 = vld [vmem:[#allocation5 + $0x4f8] sm:$0xff]   ;;  %v93_v61 = vld [vmem:[#allocation2 + $0x20] sm:$0xff] }
  0xd5   :  { %7253 = vmatpush3.bf16.msra.mxu0 %v7599_v62  ;;  %v101_v62 = vld [vmem:[#allocation2 + $0x60] sm:$0xff] }
  0xd6   :  { %7275 = vmatpush3.bf16.msra.mxu1 %v7600_v63  ;;  %7254 = vmatprep.subr.bf16.mxu0 %v7601_v0  ;;  %v109_v63 = vld [vmem:[#allocation2 + $0xa0] sm:$0xff] }
  0xd7   :  { %7276 = vmatprep.subr.bf16.mxu1 %v7602_v1  ;;  %v117_v0 = vld [vmem:[#allocation2 + $0xe0] sm:$0xff]  ;;  %v297_v1 = vcombine.low %v93_v61, %v101_v62 }
  0xd9   :  { %7255 = vmatpush3.bf16.msra.mxu0 %v7603_v2  ;;  %v298_v2 = vcombine.high %v93_v61, %v101_v62  ;;  %v307_v7 = vrot.slane %v297_v1, %v8588_v37  ;;  %v7673_v62 = vld [vmem:[#allocation5 + $0x640] sm:$0xff]  }
  0xda   :  { %7277 = vmatpush3.bf16.msra.mxu1 %v7604_v3  ;;  %7256 = vmatprep.subr.bf16.mxu0 %v7605_v4  ;;  %v7639_v3 = vld [vmem:[#allocation5 + $0x438] sm:$0xff]   ;;  %v299_v4 = vcombine.low %v109_v63, %v117_v0 }
  0xdb   :  { %7278 = vmatprep.subr.bf16.mxu1 %v7606_v5  ;;  %v300_v5 = vcombine.high %v109_v63, %v117_v0  ;;  %v314_v8 = vrot.slane %v298_v2, %v8588_v37  ;;  %v7674_v2 = vld [vmem:[#allocation5 + $0x6c0] sm:$0xff]  }
  0xdc   :  { %v321_v9 = vrot.slane %v299_v4, %v8588_v37 }
  0xdd   :  { %7257 = vmatpush3.bf16.msra.mxu0 %v7607_v6  ;;  %v7640_v6 = vld [vmem:[#allocation5 + $0x4b8] sm:$0xff]   ;;  %v328_v10 = vrot.slane %v300_v5, %v8588_v37 }
  0xde   :  { %7279 = vmatpush3.bf16.msra.mxu1 %v7608_v13  ;;  %7286 = vmatprep.subr.bf16.mxu0 %v7609_v18  ;;  %v330_v13 = vcombine.high %v307_v7, %v321_v9  ;;  %v329_v15 = vcombine.low %v307_v7, %v321_v9  ;;  %v7644_v18 = vld [vmem:[#allocation5 + $0x580] sm:$0xff]  }
  0xdf   :  { %7308 = vmatprep.subr.bf16.mxu1 %v7610_v21  ;;  %v332_v14 = vcombine.high %v314_v8, %v328_v10  ;;  %v331_v16 = vcombine.low %v314_v8, %v328_v10  ;;  %v7676_v9 = vld [vmem:[#allocation5 + $0x680] sm:$0xff]  }
  0xe0   :  { %2833 = vmatmul.mubr.bf16.vlgmr.msra.gmra.mrb[12].mxu0 %v485_v31  ;;  %v490_v19 = vpack.c.bf16 %v330_v13, %v330_v13  ;;  %v489_v21 = vpack.c.bf16 %v329_v15, %v329_v15  ;;  %v7652_v31 = vld [vmem:[#allocation5 + $0x590] sm:$0xff]   ;;  %v7678_v15 = vld [vmem:[#allocation5 + $0x6c8] sm:$0xff]  }
  0xe1   :  { %2873 = vmatmul.mubr.bf16.vlgmr.msra.gmra.mrb[12].mxu1 %v487_v33  ;;  %7287 = vmatpush3.bf16.msra.mxu0 %v7611_v27  ;;  %v492_v20 = vpack.c.bf16 %v332_v14, %v332_v14  ;;  %v491_v22 = vpack.c.bf16 %v331_v16, %v331_v16  ;;  %v7648_v27 = vld [vmem:[#allocation5 + $0x588] sm:$0xff]   ;;  %v7653_v33 = vld [vmem:[#allocation5 + $0x558] sm:$0xff]  }
  0xe2   :  { %7309 = vmatpush3.bf16.msra.mxu1 %v7612_v28  ;;  %7288 = vmatprep.subr.bf16.mxu0 %v7613_v34  ;;  %v7649_v28 = vld [vmem:[#allocation5 + $0x550] sm:$0xff]   ;;  %v7654_v34 = vld [vmem:[#allocation5 + $0x5d8] sm:$0xff]   ;;  %v7679_v16 = vld [vmem:[#allocation5 + $0x608] sm:$0xff]  }
  0xe3   :  { %7310 = vmatprep.subr.bf16.mxu1 %v7614_v35  ;;  %2912 = vmatprep.mubr.bf16.mxu0 %v490_v19  ;;  %v7655_v35 = vld [vmem:[#allocation5 + $0x518] sm:$0xff]   ;;  %v7682_v19 = vld [vmem:[#allocation5 + $0x6d0] sm:$0xff]  }
  0xe4   :  { %2952 = vmatprep.mubr.bf16.mxu1 %v492_v20  ;;  %v7683_v20 = vld [vmem:[#allocation5 + $0x610] sm:$0xff]  }
  0xe5   :  { %7289 = vmatpush3.bf16.msra.mxu0 %v7615_v36  ;;  %v7656_v36 = vld [vmem:[#allocation5 + $0x598] sm:$0xff]  }
  0xe6   :  { %7311 = vmatpush3.bf16.msra.mxu1 %v7616_v38  ;;  %7290 = vmatprep.subr.bf16.mxu0 %v7617_v39  ;;  %v7657_v38 = vld [vmem:[#allocation5 + $0x560] sm:$0xff]  }
  0xe7   :  { %7312 = vmatprep.subr.bf16.mxu1 %v7618_v40  ;;  %v7658_v39 = vld [vmem:[#allocation5 + $0x5e0] sm:$0xff]  }
  0xe8   :  { %v7659_v40 = vld [vmem:[#allocation5 + $0x520] sm:$0xff]  }
  0xe9   :  { %7291 = vmatpush3.bf16.msra.mxu0 %v7619_v41  ;;  %v7660_v41 = vld [vmem:[#allocation5 + $0x5a0] sm:$0xff]  }
  0xea   :  { %7313 = vmatpush3.bf16.msra.mxu1 %v7620_v42  ;;  %7292 = vmatprep.subr.bf16.mxu0 %v7621_v43  ;;  %v7661_v42 = vld [vmem:[#allocation5 + $0x568] sm:$0xff]  }
  0xeb   :  { %7314 = vmatprep.subr.bf16.mxu1 %v7622_v44  ;;  %v7662_v43 = vld [vmem:[#allocation5 + $0x5e8] sm:$0xff]  }
  0xec   :  { %v7663_v44 = vld [vmem:[#allocation5 + $0x528] sm:$0xff]  }
  0xed   :  { %7293 = vmatpush3.bf16.msra.mxu0 %v7623_v45  ;;  %v7664_v45 = vld [vmem:[#allocation5 + $0x5a8] sm:$0xff]  }
  0xee   :  { %7315 = vmatpush3.bf16.msra.mxu1 %v7624_v46  ;;  %7294 = vmatprep.subr.bf16.mxu0 %v7625_v47  ;;  %v7665_v46 = vld [vmem:[#allocation5 + $0x570] sm:$0xff]  }
  0xef   :  { %7316 = vmatprep.subr.bf16.mxu1 %v7626_v48  ;;  %v7666_v47 = vld [vmem:[#allocation5 + $0x5f0] sm:$0xff]  }
  0xf0   :  { %v7667_v48 = vld [vmem:[#allocation5 + $0x530] sm:$0xff]  }
  0xf1   :  { %7295 = vmatpush3.bf16.msra.mxu0 %v7627_v49  ;;  %v7668_v49 = vld [vmem:[#allocation5 + $0x5b0] sm:$0xff]  }
  0xf2   :  { %7317 = vmatpush3.bf16.msra.mxu1 %v7628_v50  ;;  %7296 = vmatprep.subr.bf16.mxu0 %v7629_v51  ;;  %v7669_v50 = vld [vmem:[#allocation5 + $0x578] sm:$0xff]  }
  0xf3   :  { %7318 = vmatprep.subr.bf16.mxu1 %v7630_v52  ;;  %v7670_v51 = vld [vmem:[#allocation5 + $0x5f8] sm:$0xff]   ;;  %v94_v52 = vld [vmem:[#allocation2 + $0x28] sm:$0xff] }
  0xf5   :  { %7297 = vmatpush3.bf16.msra.mxu0 %v7631_v53  ;;  %v7671_v53 = vld [vmem:[#allocation5 + $0x538] sm:$0xff]  }
  0xf6   :  { %7319 = vmatpush3.bf16.msra.mxu1 %v7632_v54  ;;  %7298 = vmatprep.subr.bf16.mxu0 %v7633_v55  ;;  %v102_v54 = vld [vmem:[#allocation2 + $0x68] sm:$0xff] }
  0xf7   :  { %7320 = vmatprep.subr.bf16.mxu1 %v7634_v56  ;;  %v110_v55 = vld [vmem:[#allocation2 + $0xa8] sm:$0xff] }
  0xf8   :  { %v118_v56 = vld [vmem:[#allocation2 + $0xe8] sm:$0xff] }
  0xf9   :  { %7299 = vmatpush3.bf16.msra.mxu0 %v7635_v57  ;;  %v7672_v57 = vld [vmem:[#allocation5 + $0x5b8] sm:$0xff]   ;;  %v336_v61 = vcombine.high %v110_v55, %v118_v56 }
  0xfa   :  { %7321 = vmatpush3.bf16.msra.mxu1 %v7636_v58  ;;  %7300 = vmatprep.subr.bf16.mxu0 %v7637_v59  ;;  %v333_v58 = vcombine.low %v94_v52, %v102_v54  ;;  %v335_v59 = vcombine.low %v110_v55, %v118_v56  ;;  %v7705_v55 = vld [vmem:[#allocation5 + $0x740] sm:$0xff]  }
  0xfb   :  { %7322 = vmatprep.subr.bf16.mxu1 %v7638_v60  ;;  %v334_v60 = vcombine.high %v94_v52, %v102_v54 }
  0xfc   :  { %v343_v63 = vrot.slane %v333_v58, %v8588_v37  ;;  %v357_v0 = vrot.slane %v335_v59, %v8588_v37  ;;  %v7706_v58 = vld [vmem:[#allocation5 + $0x7c0] sm:$0xff]  }
  0xfd   :  { %7301 = vmatpush3.bf16.msra.mxu0 %v7639_v3  ;;  %v350_v1 = vrot.slane %v334_v60, %v8588_v37  ;;  %v364_v3 = vrot.slane %v336_v61, %v8588_v37 }
  0xfe   :  { %7323 = vmatpush3.bf16.msra.mxu1 %v7640_v6  ;;  %7330 = vmatprep.subr.bf16.mxu0 %v7641_v11  ;;  %v366_v4 = vcombine.high %v343_v63, %v357_v0  ;;  %v365_v5 = vcombine.low %v343_v63, %v357_v0  ;;  %v7675_v6 = vld [vmem:[#allocation5 + $0x600] sm:$0xff]  }
  0xff   :  { %7352 = vmatprep.subr.bf16.mxu1 %v7642_v12  ;;  %v368_v7 = vcombine.high %v350_v1, %v364_v3  ;;  %v367_v8 = vcombine.low %v350_v1, %v364_v3  ;;  %v7677_v12 = vld [vmem:[#allocation5 + $0x648] sm:$0xff]   ;;  %v7707_v63 = vld [vmem:[#allocation5 + $0x700] sm:$0xff]  }
 0x100   :  { %2913 = vmatmul.mubr.bf16.vlgmr.msra.gmra.mrb[16].mxu0 %v489_v21  ;;  %v494_v10 = vpack.c.bf16 %v366_v4, %v366_v4  ;;  %v493_v11 = vpack.c.bf16 %v365_v5, %v365_v5  ;;  %v7684_v21 = vld [vmem:[#allocation5 + $0x690] sm:$0xff]   ;;  %v7708_v0 = vld [vmem:[#allocation5 + $0x780] sm:$0xff]   ;;  %v7709_v5 = vld [vmem:[#allocation5 + $0x748] sm:$0xff]  }
 0x101   :  { %2953 = vmatmul.mubr.bf16.vlgmr.msra.gmra.mrb[16].mxu1 %v491_v22  ;;  %7331 = vmatpush3.bf16.msra.mxu0 %v7643_v17  ;;  %v496_v13 = vpack.c.bf16 %v368_v7, %v368_v7  ;;  %v495_v14 = vpack.c.bf16 %v367_v8, %v367_v8  ;;  %v7680_v17 = vld [vmem:[#allocation5 + $0x688] sm:$0xff]   ;;  %v7685_v22 = vld [vmem:[#allocation5 + $0x658] sm:$0xff]  }
 0x102   :  { %7353 = vmatpush3.bf16.msra.mxu1 %v7644_v18  ;;  %7332 = vmatprep.subr.bf16.mxu0 %v7645_v23  ;;  %v7681_v18 = vld [vmem:[#allocation5 + $0x650] sm:$0xff]   ;;  %v7686_v23 = vld [vmem:[#allocation5 + $0x6d8] sm:$0xff]   ;;  %v7711_v7 = vld [vmem:[#allocation5 + $0x708] sm:$0xff]  }
 0x103   :  { %7354 = vmatprep.subr.bf16.mxu1 %v7646_v24  ;;  %2992 = vmatprep.mubr.bf16.mxu0 %v494_v10  ;;  %v7687_v24 = vld [vmem:[#allocation5 + $0x618] sm:$0xff]   ;;  %v7712_v8 = vld [vmem:[#allocation5 + $0x788] sm:$0xff]   ;;  %v7714_v10 = vld [vmem:[#allocation5 + $0x7d0] sm:$0xff]  }
 0x104   :  { %3032 = vmatprep.mubr.bf16.mxu1 %v496_v13  ;;  %v7717_v13 = vld [vmem:[#allocation5 + $0x758] sm:$0xff]  }
 0x105   :  { %7333 = vmatpush3.bf16.msra.mxu0 %v7647_v25  ;;  %v7688_v25 = vld [vmem:[#allocation5 + $0x698] sm:$0xff]  }
 0x106   :  { %7355 = vmatpush3.bf16.msra.mxu1 %v7648_v27  ;;  %7334 = vmatprep.subr.bf16.mxu0 %v7649_v28  ;;  %v7689_v27 = vld [vmem:[#allocation5 + $0x660] sm:$0xff]  }
 0x107   :  { %7356 = vmatprep.subr.bf16.mxu1 %v7650_v29  ;;  %v7690_v28 = vld [vmem:[#allocation5 + $0x6e0] sm:$0xff]  }
 0x108   :  { %v7691_v29 = vld [vmem:[#allocation5 + $0x620] sm:$0xff]  }
 0x109   :  { %7335 = vmatpush3.bf16.msra.mxu0 %v7651_v30  ;;  %v7692_v30 = vld [vmem:[#allocation5 + $0x6a0] sm:$0xff]  }
 0x10a   :  { %7357 = vmatpush3.bf16.msra.mxu1 %v7652_v31  ;;  %7336 = vmatprep.subr.bf16.mxu0 %v7653_v33  ;;  %v7693_v31 = vld [vmem:[#allocation5 + $0x668] sm:$0xff]  }
 0x10b   :  { %7358 = vmatprep.subr.bf16.mxu1 %v7654_v34  ;;  %v7694_v33 = vld [vmem:[#allocation5 + $0x6e8] sm:$0xff]  }
 0x10c   :  { %v7695_v34 = vld [vmem:[#allocation5 + $0x628] sm:$0xff]  }
 0x10d   :  { %7337 = vmatpush3.bf16.msra.mxu0 %v7655_v35  ;;  %v7696_v35 = vld [vmem:[#allocation5 + $0x6a8] sm:$0xff]  }
 0x10e   :  { %7359 = vmatpush3.bf16.msra.mxu1 %v7656_v36  ;;  %7338 = vmatprep.subr.bf16.mxu0 %v7657_v38  ;;  %v7697_v36 = vld [vmem:[#allocation5 + $0x670] sm:$0xff]  }
 0x10f   :  { %7360 = vmatprep.subr.bf16.mxu1 %v7658_v39  ;;  %v7698_v38 = vld [vmem:[#allocation5 + $0x6f0] sm:$0xff]  }
 0x110   :  { %v7699_v39 = vld [vmem:[#allocation5 + $0x630] sm:$0xff]  }
 0x111   :  { %7339 = vmatpush3.bf16.msra.mxu0 %v7659_v40  ;;  %v7700_v40 = vld [vmem:[#allocation5 + $0x6b0] sm:$0xff]  }
 0x112   :  { %7361 = vmatpush3.bf16.msra.mxu1 %v7660_v41  ;;  %7340 = vmatprep.subr.bf16.mxu0 %v7661_v42  ;;  %v7701_v41 = vld [vmem:[#allocation5 + $0x678] sm:$0xff]  }
 0x113   :  { %7362 = vmatprep.subr.bf16.mxu1 %v7662_v43  ;;  %v7702_v42 = vld [vmem:[#allocation5 + $0x6f8] sm:$0xff]  }
 0x114   :  { %v7703_v43 = vld [vmem:[#allocation5 + $0x638] sm:$0xff]  }
 0x115   :  { %7341 = vmatpush3.bf16.msra.mxu0 %v7663_v44  ;;  %v95_v44 = vld [vmem:[#allocation2 + $0x30] sm:$0xff] }
 0x116   :  { %7363 = vmatpush3.bf16.msra.mxu1 %v7664_v45  ;;  %7342 = vmatprep.subr.bf16.mxu0 %v7665_v46  ;;  %v103_v45 = vld [vmem:[#allocation2 + $0x70] sm:$0xff] }
 0x117   :  { %7364 = vmatprep.subr.bf16.mxu1 %v7666_v47  ;;  %v111_v46 = vld [vmem:[#allocation2 + $0xb0] sm:$0xff] }
 0x118   :  { %v119_v47 = vld [vmem:[#allocation2 + $0xf0] sm:$0xff] }
 0x119   :  { %7343 = vmatpush3.bf16.msra.mxu0 %v7667_v48  ;;  %v369_v48 = vcombine.low %v95_v44, %v103_v45  ;;  %v372_v52 = vcombine.high %v111_v46, %v119_v47 }
 0x11a   :  { %7365 = vmatpush3.bf16.msra.mxu1 %v7668_v49  ;;  %7344 = vmatprep.subr.bf16.mxu0 %v7669_v50  ;;  %v370_v49 = vcombine.high %v95_v44, %v103_v45  ;;  %v7704_v50 = vld [vmem:[#allocation5 + $0x6b8] sm:$0xff]   ;;  %v7732_v44 = vld [vmem:[#allocation5 + $0x7b0] sm:$0xff]  }
 0x11b   :  { %7366 = vmatprep.subr.bf16.mxu1 %v7670_v51  ;;  %v371_v51 = vcombine.low %v111_v46, %v119_v47  ;;  %v7733_v45 = vld [vmem:[#allocation5 + $0x778] sm:$0xff]  }
 0x11c   :  { %v386_v54 = vrot.slane %v370_v49, %v8588_v37  ;;  %v7734_v46 = vld [vmem:[#allocation5 + $0x7f8] sm:$0xff]  }
 0x11d   :  { %7345 = vmatpush3.bf16.msra.mxu0 %v7671_v53  ;;  %v379_v53 = vrot.slane %v369_v48, %v8588_v37  ;;  %v393_v56 = vrot.slane %v371_v51, %v8588_v37  ;;  %v7735_v47 = vld [vmem:[#allocation5 + $0x738] sm:$0xff]  }
 0x11e   :  { %7367 = vmatpush3.bf16.msra.mxu1 %v7672_v57  ;;  %7374 = vmatprep.subr.bf16.mxu0 %v7673_v62  ;;  %v400_v57 = vrot.slane %v372_v52, %v8588_v37  ;;  %v7736_v48 = vld [vmem:[#allocation5 + $0x7b8] sm:$0xff]  }
 0x11f   :  { %7396 = vmatprep.subr.bf16.mxu1 %v7674_v2  ;;  %v402_v59 = vcombine.high %v379_v53, %v393_v56  ;;  %v401_v61 = vcombine.low %v379_v53, %v393_v56  ;;  %v96_v49 = vld [vmem:[#allocation2 + $0x38] sm:$0xff] }
 0x120   :  { %2993 = vmatmul.mubr.bf16.vlgmr.msra.gmra.mrb[20].mxu0 %v493_v11  ;;  %v404_v60 = vcombine.high %v386_v54, %v400_v57  ;;  %v403_v62 = vcombine.low %v386_v54, %v400_v57  ;;  %v7715_v11 = vld [vmem:[#allocation5 + $0x710] sm:$0xff]   ;;  %v112_v51 = vld [vmem:[#allocation2 + $0xb8] sm:$0xff] }
 0x121   :  { %3033 = vmatmul.mubr.bf16.vlgmr.msra.gmra.mrb[20].mxu1 %v495_v14  ;;  %7375 = vmatpush3.bf16.msra.mxu0 %v7675_v6  ;;  %v498_v1 = vpack.c.bf16 %v402_v59, %v402_v59  ;;  %v497_v3 = vpack.c.bf16 %v401_v61, %v401_v61  ;;  %v7710_v6 = vld [vmem:[#allocation5 + $0x7c8] sm:$0xff]   ;;  %v7718_v14 = vld [vmem:[#allocation5 + $0x7d8] sm:$0xff]  }
 0x122   :  { %7397 = vmatpush3.bf16.msra.mxu1 %v7676_v9  ;;  %7376 = vmatprep.subr.bf16.mxu0 %v7677_v12  ;;  %v500_v2 = vpack.c.bf16 %v404_v60, %v404_v60  ;;  %v499_v4 = vpack.c.bf16 %v403_v62, %v403_v62  ;;  %v7713_v9 = vld [vmem:[#allocation5 + $0x750] sm:$0xff]   ;;  %v120_v52 = vld [vmem:[#allocation2 + $0xf8] sm:$0xff] }
 0x123   :  { %7398 = vmatprep.subr.bf16.mxu1 %v7678_v15  ;;  %3072 = vmatprep.mubr.bf16.mxu0 %v498_v1  ;;  %v7716_v12 = vld [vmem:[#allocation5 + $0x790] sm:$0xff]   ;;  %v7719_v15 = vld [vmem:[#allocation5 + $0x718] sm:$0xff]   ;;  %v408_v56 = vcombine.high %v112_v51, %v120_v52 }
 0x124   :  { %3112 = vmatprep.mubr.bf16.mxu1 %v500_v2 }
 0x125   :  { %7377 = vmatpush3.bf16.msra.mxu0 %v7679_v16  ;;  %v7720_v16 = vld [vmem:[#allocation5 + $0x798] sm:$0xff]   ;;  %v436_v60 = vrot.slane %v408_v56, %v8588_v37 }
 0x126   :  { %7399 = vmatpush3.bf16.msra.mxu1 %v7680_v17  ;;  %7378 = vmatprep.subr.bf16.mxu0 %v7681_v18  ;;  %v7721_v17 = vld [vmem:[#allocation5 + $0x760] sm:$0xff]  }
 0x127   :  { %7400 = vmatprep.subr.bf16.mxu1 %v7682_v19  ;;  %v7722_v18 = vld [vmem:[#allocation5 + $0x7e0] sm:$0xff]  }
 0x128   :  { %v7723_v19 = vld [vmem:[#allocation5 + $0x720] sm:$0xff]  }
 0x129   :  { %7379 = vmatpush3.bf16.msra.mxu0 %v7683_v20  ;;  %v7724_v20 = vld [vmem:[#allocation5 + $0x7a0] sm:$0xff]  }
 0x12a   :  { %7401 = vmatpush3.bf16.msra.mxu1 %v7684_v21  ;;  %7380 = vmatprep.subr.bf16.mxu0 %v7685_v22  ;;  %v7760_v56 = vld [vmem:[#allocation8 + $0x36c] ss:$144 sps:$4 sm:$0xff]  }
 0x12b   :  { %7402 = vmatprep.subr.bf16.mxu1 %v7686_v23  ;;  %v6517_v23 = vld [vmem:[#allocation7] ss:$0 sm:$0xff] }
 0x12d   :  { %7381 = vmatpush3.bf16.msra.mxu0 %v7687_v24 }
 0x12e   :  { %7403 = vmatpush3.bf16.msra.mxu1 %v7688_v25  ;;  %7382 = vmatprep.subr.bf16.mxu0 %v7689_v27  ;;  %v7725_v27 = vld [vmem:[#allocation5 + $0x768] sm:$0xff]  }
 0x12f   :  { %7404 = vmatprep.subr.bf16.mxu1 %v7690_v28 }
 0x131   :  { %7383 = vmatpush3.bf16.msra.mxu0 %v7691_v29 }
 0x132   :  { %7405 = vmatpush3.bf16.msra.mxu1 %v7692_v30  ;;  %7384 = vmatprep.subr.bf16.mxu0 %v7693_v31 }
 0x133   :  { %7406 = vmatprep.subr.bf16.mxu1 %v7694_v33  ;;  %v7726_v33 = vld [vmem:[#allocation5 + $0x7e8] sm:$0xff]  }
 0x135   :  { %7385 = vmatpush3.bf16.msra.mxu0 %v7695_v34 }
 0x136   :  { %7407 = vmatpush3.bf16.msra.mxu1 %v7696_v35  ;;  %7386 = vmatprep.subr.bf16.mxu0 %v7697_v36  ;;  %v7727_v36 = vld [vmem:[#allocation5 + $0x728] sm:$0xff]  }
 0x137   :  { %7408 = vmatprep.subr.bf16.mxu1 %v7698_v38 }
 0x139   :  { %7387 = vmatpush3.bf16.msra.mxu0 %v7699_v39  ;;  %v7728_v39 = vld [vmem:[#allocation5 + $0x7a8] sm:$0xff]  }
 0x13a   :  { %7409 = vmatpush3.bf16.msra.mxu1 %v7700_v40  ;;  %7388 = vmatprep.subr.bf16.mxu0 %v7701_v41  ;;  %v7729_v41 = vld [vmem:[#allocation5 + $0x770] sm:$0xff]  }
 0x13b   :  { %7410 = vmatprep.subr.bf16.mxu1 %v7702_v42  ;;  %v7730_v42 = vld [vmem:[#allocation5 + $0x7f0] sm:$0xff]  }
 0x13d   :  { %7389 = vmatpush3.bf16.msra.mxu0 %v7703_v43  ;;  %v7731_v43 = vld [vmem:[#allocation5 + $0x730] sm:$0xff]  }
 0x13e   :  { %7411 = vmatpush3.bf16.msra.mxu1 %v7704_v50  ;;  %7418 = vmatprep.subr.bf16.mxu0 %v7705_v55  ;;  %v104_v50 = vld [vmem:[#allocation2 + $0x78] sm:$0xff]  ;;  %v407_v55 = vcombine.low %v112_v51, %v120_v52 }
 0x13f   :  { %7440 = vmatprep.subr.bf16.mxu1 %v7706_v58  ;;  %v405_v53 = vcombine.low %v96_v49, %v104_v50  ;;  %v406_v54 = vcombine.high %v96_v49, %v104_v50 }
 0x140   :  { %3073 = vmatmul.mubr.bf16.vlgmr.msra.gmra.mrb[24].mxu0 %v497_v3  ;;  %v429_v59 = vrot.slane %v407_v55, %v8588_v37  ;;  %v7757_v55 = vld [vmem:[#allocation8 + $0x364] ss:$144 sps:$4 sm:$0xff]  }
 0x141   :  { %3113 = vmatmul.mubr.bf16.vlgmr.msra.gmra.mrb[24].mxu1 %v499_v4  ;;  %7419 = vmatpush3.bf16.msra.mxu0 %v7707_v63  ;;  %v415_v57 = vrot.slane %v405_v53, %v8588_v37  ;;  %v422_v58 = vrot.slane %v406_v54, %v8588_v37 }
 0x142   :  { %7441 = vmatpush3.bf16.msra.mxu1 %v7708_v0  ;;  %7420 = vmatprep.subr.bf16.mxu0 %v7709_v5 }
 0x143   :  { %7442 = vmatprep.subr.bf16.mxu1 %v7710_v6  ;;  %v438_v61 = vcombine.high %v415_v57, %v429_v59  ;;  %v440_v62 = vcombine.high %v422_v58, %v436_v60  ;;  %v437_v63 = vcombine.low %v415_v57, %v429_v59  ;;  %v439_v0 = vcombine.low %v422_v58, %v436_v60  ;;  %v7755_v57 = vld [vmem:[#allocation8 + $0x360] ss:$144 sps:$4 sm:$0xff]   ;;  %v7758_v58 = vld [vmem:[#allocation8 + $0x368] ss:$144 sps:$4 sm:$0xff]   ;;  %v7763_v60 = vld [vmem:[#allocation8 + $0x484] ss:$144 sps:$4 sm:$0xff]  }
 0x145   :  { %7421 = vmatpush3.bf16.msra.mxu0 %v7711_v7  ;;  %v502_v1 = vpack.c.bf16 %v438_v61, %v438_v61  ;;  %v504_v2 = vpack.c.bf16 %v440_v62, %v440_v62  ;;  %v501_v3 = vpack.c.bf16 %v437_v63, %v437_v63  ;;  %v503_v4 = vpack.c.bf16 %v439_v0, %v439_v0  ;;  %v7766_v61 = vld [vmem:[#allocation8 + $0x48c] ss:$144 sps:$4 sm:$0xff]   ;;  %v7761_v62 = vld [vmem:[#allocation8 + $0x480] ss:$144 sps:$4 sm:$0xff]   ;;  %v7764_v63 = vld [vmem:[#allocation8 + $0x488] ss:$144 sps:$4 sm:$0xff]  }
 0x146   :  { %7443 = vmatpush3.bf16.msra.mxu1 %v7712_v8  ;;  %7422 = vmatprep.subr.bf16.mxu0 %v7713_v9  ;;  %v7769_v0 = vld [vmem:[#allocation8 + $0x5a4] ss:$144 sps:$4 sm:$0xff]  }
 0x147   :  { %7444 = vmatprep.subr.bf16.mxu1 %v7714_v10  ;;  %3152 = vmatprep.mubr.bf16.mxu0 %v502_v1  ;;  %v7772_v1 = vld [vmem:[#allocation8 + $0x5ac] ss:$144 sps:$4 sm:$0xff]  }
 0x148   :  { %3192 = vmatprep.mubr.bf16.mxu1 %v504_v2  ;;  %v7767_v2 = vld [vmem:[#allocation8 + $0x5a0] ss:$144 sps:$4 sm:$0xff]  }
 0x149   :  { %7423 = vmatpush3.bf16.msra.mxu0 %v7715_v11 }
 0x14a   :  { %7445 = vmatpush3.bf16.msra.mxu1 %v7716_v12  ;;  %7424 = vmatprep.subr.bf16.mxu0 %v7717_v13 }
 0x14b   :  { %7446 = vmatprep.subr.bf16.mxu1 %v7718_v14 }
 0x14d   :  { %7425 = vmatpush3.bf16.msra.mxu0 %v7719_v15 }
 0x14e   :  { %7447 = vmatpush3.bf16.msra.mxu1 %v7720_v16  ;;  %7426 = vmatprep.subr.bf16.mxu0 %v7721_v17 }
 0x14f   :  { %7448 = vmatprep.subr.bf16.mxu1 %v7722_v18 }
 0x151   :  { %7427 = vmatpush3.bf16.msra.mxu0 %v7723_v19 }
 0x152   :  { %7449 = vmatpush3.bf16.msra.mxu1 %v7724_v20  ;;  %7428 = vmatprep.subr.bf16.mxu0 %v7725_v27 }
 0x153   :  { %v7126_v21 = vpop.f32.mrb[0].mxu0  ;;  %7450 = vmatprep.subr.bf16.mxu1 %v7726_v33  ;;  %v7740_v33 = vld [vmem:[#allocation8 + $0x8] ss:$144 sps:$4 sm:$0xff]  }
 0x154   :  { %v7148_v22 = vpop.f32.mrb[0].mxu1  ;;  %v7127_v24 = vpop.f32.mrb[1].mxu0 }
 0x155   :  { %v7149_v25 = vpop.f32.mrb[1].mxu1  ;;  %v7128_v28 = vadd.f32 %v7127_v24, %v7126_v21  ;;  %v7129_v30 = vpop.f32.mrb[2].mxu0  ;;  %7429 = vmatpush3.bf16.msra.mxu0 %v7727_v36  ;;  %v7743_v36 = vld [vmem:[#allocation8 + $0x120] ss:$144 sps:$4 sm:$0xff]  }
 0x156   :  { %v7150_v29 = vadd.f32 %v7149_v25, %v7148_v22  ;;  %v7151_v31 = vpop.f32.mrb[2].mxu1  ;;  %v7130_v34 = vpop.f32.mrb[3].mxu0  ;;  %7451 = vmatpush3.bf16.msra.mxu1 %v7728_v39  ;;  %7430 = vmatprep.subr.bf16.mxu0 %v7729_v41  ;;  %v7737_v30 = vld [vmem:[#allocation8] ss:$144 sps:$4 sm:$0xff]   ;;  %v7746_v39 = vld [vmem:[#allocation8 + $0x128] ss:$144 sps:$4 sm:$0xff]  }
 0x157   :  { %v2595_v35 = vadd.f32 %v7128_v28, %v6517_v23  ;;  %v7152_v38 = vpop.f32.mrb[3].mxu1  ;;  %7452 = vmatprep.subr.bf16.mxu1 %v7730_v42  ;;  %v7739_v31 = vld [vmem:[#allocation8 + $0x4] ss:$144 sps:$4 sm:$0xff]   ;;  %v7742_v34 = vld [vmem:[#allocation8 + $0xc] ss:$144 sps:$4 sm:$0xff]  }
 0x158   :  { %v7748_v38 = vld [vmem:[#allocation8 + $0x12c] ss:$144 sps:$4 sm:$0xff]   ;;  %v7749_v42 = vld [vmem:[#allocation8 + $0x240] ss:$144 sps:$4 sm:$0xff]  }
 0x159   :  { %v2635_v40 = vadd.f32 %v7150_v29, %v2595_v35  ;;  %7431 = vmatpush3.bf16.msra.mxu0 %v7731_v43  ;;  %v7745_v35 = vld [vmem:[#allocation8 + $0x124] ss:$144 sps:$4 sm:$0xff]   ;;  %v7754_v41 = vld [vmem:[#allocation8 + $0x24c] ss:$144 sps:$4 sm:$0xff]   ;;  %v7752_v43 = vld [vmem:[#allocation8 + $0x248] ss:$144 sps:$4 sm:$0xff]  }
 0x15a   :  { %7453 = vmatpush3.bf16.msra.mxu1 %v7732_v44  ;;  %7432 = vmatprep.subr.bf16.mxu0 %v7733_v45 }
 0x15b   :  { %7454 = vmatprep.subr.bf16.mxu1 %v7734_v46 }
 0x15d   :  { %7433 = vmatpush3.bf16.msra.mxu0 %v7735_v47 }
 0x15e   :  { %7455 = vmatpush3.bf16.msra.mxu1 %v7736_v48  ;;  %5120 = vmatprep.subr.bf16.mxu0 %v7739_v31 }
 0x15f   :  { %5161 = vmatprep.subr.bf16.mxu1 %v7742_v34 }
 0x160   :  { %3153 = vmatmul.mubr.bf16.vlgmr.msra.gmra.mrb[28].mxu0 %v501_v3  ;;  %v7770_v3 = vld [vmem:[#allocation8 + $0x5a8] ss:$144 sps:$4 sm:$0xff]  }
 0x161   :  { %3193 = vmatmul.mubr.bf16.vlgmr.msra.gmra.mrb[28].mxu1 %v503_v4  ;;  %5121 = vmatpush1.bf16.msra.mxu0 %v7737_v30  ;;  %v7775_v4 = vld [vmem:[#allocation8 + $0x6c4] ss:$144 sps:$4 sm:$0xff]  }
 0x162   :  { %5162 = vmatpush1.bf16.msra.mxu1 %v7740_v33  ;;  %5122 = vmatprep.subr.bf16.mxu0 %v7745_v35 }
 0x163   :  { %5163 = vmatprep.subr.bf16.mxu1 %v7748_v38 }
 0x165   :  { %5123 = vmatpush1.bf16.msra.mxu0 %v7743_v36 }
 0x166   :  { %5164 = vmatpush1.bf16.msra.mxu1 %v7746_v39 }
 0x167   :  { %5165 = vmatprep.subr.bf16.mxu1 %v7754_v41 }
 0x16a   :  { %5166 = vmatpush1.bf16.msra.mxu1 %v7752_v43 }
 0x16b   :  { %5167 = vmatprep.subr.bf16.mxu1 %v7760_v56 }
 0x16e   :  { %5168 = vmatpush1.bf16.msra.mxu1 %v7758_v58 }
 0x16f   :  { %5169 = vmatprep.subr.bf16.mxu1 %v7766_v61 }
 0x172   :  { %5170 = vmatpush1.bf16.msra.mxu1 %v7764_v63 }
 0x173   :  { %v7170_v5 = vpop.f32.mrb[4].mxu0  ;;  %5171 = vmatprep.subr.bf16.mxu1 %v7772_v1 }
 0x174   :  { %v7192_v6 = vpop.f32.mrb[4].mxu1  ;;  %v7171_v7 = vpop.f32.mrb[5].mxu0 }
 0x175   :  { %v7193_v8 = vpop.f32.mrb[5].mxu1  ;;  %v7172_v9 = vadd.f32 %v7171_v7, %v7170_v5  ;;  %v7173_v11 = vpop.f32.mrb[6].mxu0  ;;  %v7778_v5 = vld [vmem:[#allocation8 + $0x6cc] ss:$144 sps:$4 sm:$0xff]   ;;  %v7776_v7 = vld [vmem:[#allocation8 + $0x6c8] ss:$144 sps:$4 sm:$0xff]  }
 0x176   :  { %v7194_v10 = vadd.f32 %v7193_v8, %v7192_v6  ;;  %v7195_v12 = vpop.f32.mrb[6].mxu1  ;;  %v7174_v13 = vpop.f32.mrb[7].mxu0  ;;  %5172 = vmatpush1.bf16.msra.mxu1 %v7770_v3  ;;  %v7773_v6 = vld [vmem:[#allocation8 + $0x6c0] ss:$144 sps:$4 sm:$0xff]   ;;  %v7781_v8 = vld [vmem:[#allocation8 + $0x7e4] ss:$144 sps:$4 sm:$0xff]  }
 0x177   :  { %v7196_v14 = vpop.f32.mrb[7].mxu1  ;;  %v2675_v15 = vadd.f32 %v7172_v9, %v2635_v40  ;;  %v7751_v40 = vld [vmem:[#allocation8 + $0x244] ss:$144 sps:$4 sm:$0xff]   ;;  %5173 = vmatprep.subr.bf16.mxu1 %v7778_v5  ;;  %v7784_v9 = vld [vmem:[#allocation8 + $0x7ec] ss:$144 sps:$4 sm:$0xff]  }
 0x178   :  { %5124 = vmatprep.subr.bf16.mxu0 %v7751_v40  ;;  %v7782_v11 = vld [vmem:[#allocation8 + $0x7e8] ss:$144 sps:$4 sm:$0xff]   ;;  %v7787_v12 = vld [vmem:[#allocation8 + $0x14] ss:$144 sps:$4 sm:$0xff]   ;;  %v7790_v13 = vld [vmem:[#allocation8 + $0x1c] ss:$144 sps:$4 sm:$0xff]  }
 0x179   :  { %v2715_v16 = vadd.f32 %v7194_v10, %v2675_v15  ;;  %5125 = vmatpush1.bf16.msra.mxu0 %v7749_v42  ;;  %v7779_v10 = vld [vmem:[#allocation8 + $0x7e0] ss:$144 sps:$4 sm:$0xff]   ;;  %v8478_v14 = vmov 0  }
 0x17a   :  { %5126 = vmatprep.subr.bf16.mxu0 %v7757_v55  ;;  %5174 = vmatpush1.bf16.msra.mxu1 %v7776_v7  ;;  %v7785_v3 = vld [vmem:[#allocation8 + $0x10] ss:$144 sps:$4 sm:$0xff]   ;;  %v7796_v7 = vld [vmem:[#allocation8 + $0x13c] ss:$144 sps:$4 sm:$0xff]  }
 0x17b   :  { %5175 = vmatprep.subr.bf16.mxu1 %v7784_v9  ;;  %5152 = vmatprep.mubr.bf16.mxu0 %v8478_v14  ;;  %v7794_v9 = vld [vmem:[#allocation8 + $0x138] ss:$144 sps:$4 sm:$0xff]  }
 0x17c   :  { %5193 = vmatprep.mubr.bf16.mxu1 %v8478_v14 }
 0x17d   :  { %5127 = vmatpush1.bf16.msra.mxu0 %v7755_v57 }
 0x17e   :  { %5128 = vmatprep.subr.bf16.mxu0 %v7763_v60  ;;  %5176 = vmatpush1.bf16.msra.mxu1 %v7782_v11  ;;  %v7802_v11 = vld [vmem:[#allocation8 + $0x25c] ss:$144 sps:$4 sm:$0xff]  }
 0x17f   :  { %5243 = vmatprep.subr.bf16.mxu1 %v7790_v13  ;;  %v7800_v13 = vld [vmem:[#allocation8 + $0x258] ss:$144 sps:$4 sm:$0xff]  }
 0x181   :  { %5129 = vmatpush1.bf16.msra.mxu0 %v7761_v62 }
 0x182   :  { %5130 = vmatprep.subr.bf16.mxu0 %v7769_v0 }
 0x185   :  { %5131 = vmatpush1.bf16.msra.mxu0 %v7767_v2 }
 0x186   :  { %5132 = vmatprep.subr.bf16.mxu0 %v7775_v4  ;;  %v7788_v4 = vld [vmem:[#allocation8 + $0x18] ss:$144 sps:$4 sm:$0xff]  }
 0x189   :  { %5133 = vmatpush1.bf16.msra.mxu0 %v7773_v6  ;;  %v7793_v6 = vld [vmem:[#allocation8 + $0x134] ss:$144 sps:$4 sm:$0xff]  }
 0x18a   :  { %5134 = vmatprep.subr.bf16.mxu0 %v7781_v8  ;;  %v7791_v8 = vld [vmem:[#allocation8 + $0x130] ss:$144 sps:$4 sm:$0xff]  }
 0x18d   :  { %5135 = vmatpush1.bf16.msra.mxu0 %v7779_v10  ;;  %v7799_v10 = vld [vmem:[#allocation8 + $0x254] ss:$144 sps:$4 sm:$0xff]  }
 0x18e   :  { %5202 = vmatprep.subr.bf16.mxu0 %v7787_v12  ;;  %v7797_v12 = vld [vmem:[#allocation8 + $0x250] ss:$144 sps:$4 sm:$0xff]  }
 0x193   :  { %v7214_v17 = vpop.f32.mrb[8].mxu0 }
 0x194   :  { %v7236_v18 = vpop.f32.mrb[8].mxu1  ;;  %v7215_v19 = vpop.f32.mrb[9].mxu0 }
 0x195   :  { %v7216_v20 = vadd.f32 %v7215_v19, %v7214_v17  ;;  %v7237_v21 = vpop.f32.mrb[9].mxu1  ;;  %v7217_v22 = vpop.f32.mrb[10].mxu0 }
 0x196   :  { %v7238_v23 = vadd.f32 %v7237_v21, %v7236_v18  ;;  %v7239_v24 = vpop.f32.mrb[10].mxu1  ;;  %v7218_v25 = vpop.f32.mrb[11].mxu0 }
 0x197   :  { %v2755_v27 = vadd.f32 %v7216_v20, %v2715_v16  ;;  %v7240_v28 = vpop.f32.mrb[11].mxu1 }
 0x199   :  { %v2795_v29 = vadd.f32 %v7238_v23, %v2755_v27 }
 0x1b3   :  { %v7258_v44 = vpop.f32.mrb[12].mxu0 }
 0x1b4   :  { %v7280_v45 = vpop.f32.mrb[12].mxu1  ;;  %v7259_v46 = vpop.f32.mrb[13].mxu0 }
 0x1b5   :  { %v7281_v47 = vpop.f32.mrb[13].mxu1  ;;  %v7260_v48 = vadd.f32 %v7259_v46, %v7258_v44  ;;  %v7261_v50 = vpop.f32.mrb[14].mxu0 }
 0x1b6   :  { %v7282_v49 = vadd.f32 %v7281_v47, %v7280_v45  ;;  %v7283_v51 = vpop.f32.mrb[14].mxu1  ;;  %v7262_v52 = vpop.f32.mrb[15].mxu0 }
 0x1b7   :  { %v7284_v53 = vpop.f32.mrb[15].mxu1  ;;  %v2835_v54 = vadd.f32 %v7260_v48, %v2795_v29 }
 0x1b9   :  { %v2875_v59 = vadd.f32 %v7282_v49, %v2835_v54 }
 0x1d3   :  { %v7302_v15 = vpop.f32.mrb[16].mxu0 }
 0x1d4   :  { %v7324_v16 = vpop.f32.mrb[16].mxu1  ;;  %v7303_v17 = vpop.f32.mrb[17].mxu0 }
 0x1d5   :  { %v7325_v18 = vpop.f32.mrb[17].mxu1  ;;  %v7304_v19 = vadd.f32 %v7303_v17, %v7302_v15  ;;  %v7305_v21 = vpop.f32.mrb[18].mxu0  ;;  %v7805_v15 = vld [vmem:[#allocation8 + $0x374] ss:$144 sps:$4 sm:$0xff]   ;;  %v7803_v17 = vld [vmem:[#allocation8 + $0x370] ss:$144 sps:$4 sm:$0xff]  }
 0x1d6   :  { %v7326_v20 = vadd.f32 %v7325_v18, %v7324_v16  ;;  %v7327_v22 = vpop.f32.mrb[18].mxu1  ;;  %v7306_v23 = vpop.f32.mrb[19].mxu0  ;;  %v7808_v16 = vld [vmem:[#allocation8 + $0x37c] ss:$144 sps:$4 sm:$0xff]   ;;  %v7806_v18 = vld [vmem:[#allocation8 + $0x378] ss:$144 sps:$4 sm:$0xff]  }
 0x1d7   :  { %v7328_v24 = vpop.f32.mrb[19].mxu1  ;;  %v2915_v25 = vadd.f32 %v7304_v19, %v2875_v59  ;;  %v7811_v19 = vld [vmem:[#allocation8 + $0x494] ss:$144 sps:$4 sm:$0xff]   ;;  %v7809_v21 = vld [vmem:[#allocation8 + $0x490] ss:$144 sps:$4 sm:$0xff]  }
 0x1d8   :  { %v7812_v22 = vld [vmem:[#allocation8 + $0x498] ss:$144 sps:$4 sm:$0xff]   ;;  %v7817_v23 = vld [vmem:[#allocation8 + $0x5b4] ss:$144 sps:$4 sm:$0xff]   ;;  %v7820_v24 = vld [vmem:[#allocation8 + $0x5bc] ss:$144 sps:$4 sm:$0xff]  }
 0x1d9   :  { %v2955_v27 = vadd.f32 %v7326_v20, %v2915_v25  ;;  %v7814_v20 = vld [vmem:[#allocation8 + $0x49c] ss:$144 sps:$4 sm:$0xff]   ;;  %v7815_v25 = vld [vmem:[#allocation8 + $0x5b0] ss:$144 sps:$4 sm:$0xff]  }
 0x1f3   :  { %v7346_v28 = vpop.f32.mrb[20].mxu0 }
 0x1f4   :  { %v7368_v29 = vpop.f32.mrb[20].mxu1  ;;  %v7347_v30 = vpop.f32.mrb[21].mxu0 }
 0x1f5   :  { %v7348_v31 = vadd.f32 %v7347_v30, %v7346_v28  ;;  %v7369_v33 = vpop.f32.mrb[21].mxu1  ;;  %v7349_v34 = vpop.f32.mrb[22].mxu0  ;;  %v7823_v28 = vld [vmem:[#allocation8 + $0x6d4] ss:$144 sps:$4 sm:$0xff]   ;;  %v7821_v30 = vld [vmem:[#allocation8 + $0x6d0] ss:$144 sps:$4 sm:$0xff]  }
 0x1f6   :  { %v7370_v35 = vadd.f32 %v7369_v33, %v7368_v29  ;;  %v7371_v36 = vpop.f32.mrb[22].mxu1  ;;  %v7350_v38 = vpop.f32.mrb[23].mxu0  ;;  %v7826_v29 = vld [vmem:[#allocation8 + $0x6dc] ss:$144 sps:$4 sm:$0xff]   ;;  %v7829_v33 = vld [vmem:[#allocation8 + $0x7f4] ss:$144 sps:$4 sm:$0xff]  }
 0x1f7   :  { %v2995_v39 = vadd.f32 %v7348_v31, %v2955_v27  ;;  %v7372_v40 = vpop.f32.mrb[23].mxu1  ;;  %v7818_v27 = vld [vmem:[#allocation8 + $0x5b8] ss:$144 sps:$4 sm:$0xff]   ;;  %v7832_v34 = vld [vmem:[#allocation8 + $0x7fc] ss:$144 sps:$4 sm:$0xff]  }
 0x1f8   :  { %v7824_v31 = vld [vmem:[#allocation8 + $0x6d8] ss:$144 sps:$4 sm:$0xff]   ;;  %v7835_v38 = vld [vmem:[#allocation8 + $0x24] ss:$144 sps:$4 sm:$0xff]   ;;  %v7833_v40 = vld [vmem:[#allocation8 + $0x20] ss:$144 sps:$4 sm:$0xff]  }
 0x1f9   :  { %v3035_v41 = vadd.f32 %v7370_v35, %v2995_v39  ;;  %v7827_v35 = vld [vmem:[#allocation8 + $0x7f0] ss:$144 sps:$4 sm:$0xff]   ;;  %v7830_v36 = vld [vmem:[#allocation8 + $0x7f8] ss:$144 sps:$4 sm:$0xff]   ;;  %v7838_v39 = vld [vmem:[#allocation8 + $0x2c] ss:$144 sps:$4 sm:$0xff]  }
 0x213   :  { %v7390_v42 = vpop.f32.mrb[24].mxu0 }
 0x214   :  { %v7412_v43 = vpop.f32.mrb[24].mxu1  ;;  %v7391_v44 = vpop.f32.mrb[25].mxu0 }
 0x215   :  { %v7413_v45 = vpop.f32.mrb[25].mxu1  ;;  %v7392_v46 = vadd.f32 %v7391_v44, %v7390_v42  ;;  %v7393_v48 = vpop.f32.mrb[26].mxu0  ;;  %v7841_v42 = vld [vmem:[#allocation8 + $0x144] ss:$144 sps:$4 sm:$0xff]   ;;  %v7839_v44 = vld [vmem:[#allocation8 + $0x140] ss:$144 sps:$4 sm:$0xff]  }
 0x216   :  { %v7414_v47 = vadd.f32 %v7413_v45, %v7412_v43  ;;  %v7415_v49 = vpop.f32.mrb[26].mxu1  ;;  %v7394_v50 = vpop.f32.mrb[27].mxu0  ;;  %v7844_v43 = vld [vmem:[#allocation8 + $0x14c] ss:$144 sps:$4 sm:$0xff]   ;;  %v7842_v45 = vld [vmem:[#allocation8 + $0x148] ss:$144 sps:$4 sm:$0xff]  }
 0x217   :  { %v7416_v51 = vpop.f32.mrb[27].mxu1  ;;  %v3075_v52 = vadd.f32 %v7392_v46, %v3035_v41  ;;  %v7836_v41 = vld [vmem:[#allocation8 + $0x28] ss:$144 sps:$4 sm:$0xff]   ;;  %v7847_v46 = vld [vmem:[#allocation8 + $0x264] ss:$144 sps:$4 sm:$0xff]  }
 0x218   :  { %v7845_v48 = vld [vmem:[#allocation8 + $0x260] ss:$144 sps:$4 sm:$0xff]   ;;  %v7848_v49 = vld [vmem:[#allocation8 + $0x268] ss:$144 sps:$4 sm:$0xff]   ;;  %v7853_v50 = vld [vmem:[#allocation8 + $0x384] ss:$144 sps:$4 sm:$0xff]  }
 0x219   :  { %v3115_v53 = vadd.f32 %v7414_v47, %v3075_v52  ;;  %v7850_v47 = vld [vmem:[#allocation8 + $0x26c] ss:$144 sps:$4 sm:$0xff]   ;;  %v7851_v52 = vld [vmem:[#allocation8 + $0x380] ss:$144 sps:$4 sm:$0xff]  }
 0x21a   :  { %v7856_v51 = vld [vmem:[#allocation8 + $0x38c] ss:$144 sps:$4 sm:$0xff]  }
 0x233   :  { %v7434_v54 = vpop.f32.mrb[28].mxu0 }
 0x234   :  { %v7456_v55 = vpop.f32.mrb[28].mxu1  ;;  %v7435_v56 = vpop.f32.mrb[29].mxu0 }
 0x235   :  { %v7457_v57 = vpop.f32.mrb[29].mxu1  ;;  %v7436_v58 = vadd.f32 %v7435_v56, %v7434_v54  ;;  %v7437_v60 = vpop.f32.mrb[30].mxu0  ;;  %v7859_v54 = vld [vmem:[#allocation8 + $0x4a4] ss:$144 sps:$4 sm:$0xff]   ;;  %v7857_v56 = vld [vmem:[#allocation8 + $0x4a0] ss:$144 sps:$4 sm:$0xff]  }
 0x236   :  { %v7458_v59 = vadd.f32 %v7457_v57, %v7456_v55  ;;  %v7459_v61 = vpop.f32.mrb[30].mxu1  ;;  %v7438_v62 = vpop.f32.mrb[31].mxu0  ;;  %v7862_v55 = vld [vmem:[#allocation8 + $0x4ac] ss:$144 sps:$4 sm:$0xff]   ;;  %v7860_v57 = vld [vmem:[#allocation8 + $0x4a8] ss:$144 sps:$4 sm:$0xff]  }
 0x237   :  { %v7460_v63 = vpop.f32.mrb[31].mxu1  ;;  %v3155_v0 = vadd.f32 %v7436_v58, %v3115_v53  ;;  %v7854_v53 = vld [vmem:[#allocation8 + $0x388] ss:$144 sps:$4 sm:$0xff]   ;;  %v7865_v58 = vld [vmem:[#allocation8 + $0x5c4] ss:$144 sps:$4 sm:$0xff]  }
 0x238   :  { %v7863_v60 = vld [vmem:[#allocation8 + $0x5c0] ss:$144 sps:$4 sm:$0xff]   ;;  %v7866_v61 = vld [vmem:[#allocation8 + $0x5c8] ss:$144 sps:$4 sm:$0xff]   ;;  %v7871_v62 = vld [vmem:[#allocation8 + $0x6e4] ss:$144 sps:$4 sm:$0xff]  }
 0x239   :  { %v3195_v1 = vadd.f32 %v7458_v59, %v3155_v0  ;;  %v7868_v59 = vld [vmem:[#allocation8 + $0x5cc] ss:$144 sps:$4 sm:$0xff]   ;;  %v7869_v0 = vld [vmem:[#allocation8 + $0x6e0] ss:$144 sps:$4 sm:$0xff]  }
 0x23a   :  { %v7874_v63 = vld [vmem:[#allocation8 + $0x6ec] ss:$144 sps:$4 sm:$0xff]  }
 0x23b   :  { %8169 = vtanh.f32 %v3195_v1  ;;  %v7872_v1 = vld [vmem:[#allocation8 + $0x6e8] ss:$144 sps:$4 sm:$0xff]  }
 0x245   :  { %v8170_v2 = vpop.eup %8169 }
 0x246   :  { %v8624_v5 = vpack.c.bf16 %v8170_v2, %v8170_v2  ;;  %v7877_v2 = vld [vmem:[#allocation8 + $0x804] ss:$144 sps:$4 sm:$0xff]  }
 0x248   :  { %5153 = vmatmul.mubr.bf16.vlgmr.msra.gmra.mrb[32].mxu0 %v8624_v5  ;;  %5194 = vmatmul.mubr.bf16.vlgmr.msra.gmra.mrb[32].mxu1 %v8624_v5 }
 0x249   :  { %5203 = vmatpush1.bf16.msra.mxu0 %v7785_v3  ;;  %5244 = vmatpush1.bf16.msra.mxu1 %v7788_v4  ;;  %v7880_v3 = vld [vmem:[#allocation8 + $0x80c] ss:$144 sps:$4 sm:$0xff]   ;;  %v7875_v4 = vld [vmem:[#allocation8 + $0x800] ss:$144 sps:$4 sm:$0xff]  }
 0x24a   :  { %5204 = vmatprep.subr.bf16.mxu0 %v7793_v6  ;;  %5245 = vmatprep.subr.bf16.mxu1 %v7796_v7  ;;  %v7878_v6 = vld [vmem:[#allocation8 + $0x808] ss:$144 sps:$4 sm:$0xff]   ;;  %v7883_v7 = vld [vmem:[#allocation8 + $0x34] ss:$144 sps:$4 sm:$0xff]  }
 0x24b   :  { %5234 = vmatprep.mubr.bf16.mxu0 %v8478_v14  ;;  %5275 = vmatprep.mubr.bf16.mxu1 %v8478_v14 }
 0x24d   :  { %5205 = vmatpush1.bf16.msra.mxu0 %v7791_v8  ;;  %5246 = vmatpush1.bf16.msra.mxu1 %v7794_v9  ;;  %v7886_v8 = vld [vmem:[#allocation8 + $0x3c] ss:$144 sps:$4 sm:$0xff]   ;;  %v7881_v9 = vld [vmem:[#allocation8 + $0x30] ss:$144 sps:$4 sm:$0xff]  }
 0x24e   :  { %5206 = vmatprep.subr.bf16.mxu0 %v7799_v10  ;;  %5247 = vmatprep.subr.bf16.mxu1 %v7802_v11  ;;  %v7884_v10 = vld [vmem:[#allocation8 + $0x38] ss:$144 sps:$4 sm:$0xff]   ;;  %v7889_v11 = vld [vmem:[#allocation8 + $0x154] ss:$144 sps:$4 sm:$0xff]  }
 0x251   :  { %5207 = vmatpush1.bf16.msra.mxu0 %v7797_v12  ;;  %5248 = vmatpush1.bf16.msra.mxu1 %v7800_v13  ;;  %v7892_v12 = vld [vmem:[#allocation8 + $0x15c] ss:$144 sps:$4 sm:$0xff]   ;;  %v7887_v13 = vld [vmem:[#allocation8 + $0x150] ss:$144 sps:$4 sm:$0xff]  }
 0x252   :  { %5208 = vmatprep.subr.bf16.mxu0 %v7805_v15  ;;  %5249 = vmatprep.subr.bf16.mxu1 %v7808_v16  ;;  %v7890_v15 = vld [vmem:[#allocation8 + $0x158] ss:$144 sps:$4 sm:$0xff]   ;;  %v7895_v16 = vld [vmem:[#allocation8 + $0x274] ss:$144 sps:$4 sm:$0xff]  }
 0x255   :  { %5209 = vmatpush1.bf16.msra.mxu0 %v7803_v17  ;;  %5250 = vmatpush1.bf16.msra.mxu1 %v7806_v18  ;;  %v7898_v17 = vld [vmem:[#allocation8 + $0x27c] ss:$144 sps:$4 sm:$0xff]   ;;  %v7893_v18 = vld [vmem:[#allocation8 + $0x270] ss:$144 sps:$4 sm:$0xff]  }
 0x256   :  { %5210 = vmatprep.subr.bf16.mxu0 %v7811_v19  ;;  %5251 = vmatprep.subr.bf16.mxu1 %v7814_v20  ;;  %v7896_v19 = vld [vmem:[#allocation8 + $0x278] ss:$144 sps:$4 sm:$0xff]   ;;  %v7901_v20 = vld [vmem:[#allocation8 + $0x394] ss:$144 sps:$4 sm:$0xff]  }
 0x259   :  { %5211 = vmatpush1.bf16.msra.mxu0 %v7809_v21  ;;  %5252 = vmatpush1.bf16.msra.mxu1 %v7812_v22  ;;  %v7904_v21 = vld [vmem:[#allocation8 + $0x39c] ss:$144 sps:$4 sm:$0xff]   ;;  %v7899_v22 = vld [vmem:[#allocation8 + $0x390] ss:$144 sps:$4 sm:$0xff]  }
 0x25a   :  { %5212 = vmatprep.subr.bf16.mxu0 %v7817_v23  ;;  %5253 = vmatprep.subr.bf16.mxu1 %v7820_v24  ;;  %v7902_v23 = vld [vmem:[#allocation8 + $0x398] ss:$144 sps:$4 sm:$0xff]   ;;  %v7907_v24 = vld [vmem:[#allocation8 + $0x4b4] ss:$144 sps:$4 sm:$0xff]  }
 0x25d   :  { %5213 = vmatpush1.bf16.msra.mxu0 %v7815_v25  ;;  %5254 = vmatpush1.bf16.msra.mxu1 %v7818_v27  ;;  %v7910_v25 = vld [vmem:[#allocation8 + $0x4bc] ss:$144 sps:$4 sm:$0xff]   ;;  %v7905_v27 = vld [vmem:[#allocation8 + $0x4b0] ss:$144 sps:$4 sm:$0xff]  }
 0x25e   :  { %5214 = vmatprep.subr.bf16.mxu0 %v7823_v28  ;;  %5255 = vmatprep.subr.bf16.mxu1 %v7826_v29  ;;  %v7908_v28 = vld [vmem:[#allocation8 + $0x4b8] ss:$144 sps:$4 sm:$0xff]   ;;  %v7913_v29 = vld [vmem:[#allocation8 + $0x5d4] ss:$144 sps:$4 sm:$0xff]  }
 0x261   :  { %5215 = vmatpush1.bf16.msra.mxu0 %v7821_v30  ;;  %5256 = vmatpush1.bf16.msra.mxu1 %v7824_v31  ;;  %v7916_v30 = vld [vmem:[#allocation8 + $0x5dc] ss:$144 sps:$4 sm:$0xff]   ;;  %v7911_v31 = vld [vmem:[#allocation8 + $0x5d0] ss:$144 sps:$4 sm:$0xff]  }
 0x262   :  { %5216 = vmatprep.subr.bf16.mxu0 %v7829_v33  ;;  %5257 = vmatprep.subr.bf16.mxu1 %v7832_v34  ;;  %v7914_v33 = vld [vmem:[#allocation8 + $0x5d8] ss:$144 sps:$4 sm:$0xff]   ;;  %v7919_v34 = vld [vmem:[#allocation8 + $0x6f4] ss:$144 sps:$4 sm:$0xff]  }
 0x265   :  { %5217 = vmatpush1.bf16.msra.mxu0 %v7827_v35  ;;  %5258 = vmatpush1.bf16.msra.mxu1 %v7830_v36  ;;  %v7922_v35 = vld [vmem:[#allocation8 + $0x6fc] ss:$144 sps:$4 sm:$0xff]   ;;  %v7917_v36 = vld [vmem:[#allocation8 + $0x6f0] ss:$144 sps:$4 sm:$0xff]  }
 0x266   :  { %5284 = vmatprep.subr.bf16.mxu0 %v7835_v38  ;;  %5325 = vmatprep.subr.bf16.mxu1 %v7838_v39  ;;  %v7920_v38 = vld [vmem:[#allocation8 + $0x6f8] ss:$144 sps:$4 sm:$0xff]   ;;  %v7925_v39 = vld [vmem:[#allocation8 + $0x814] ss:$144 sps:$4 sm:$0xff]  }
 0x268   :  { %5235 = vmatmul.mubr.bf16.vlgmr.msra.gmra.mrb[36].mxu0 %v8624_v5  ;;  %5276 = vmatmul.mubr.bf16.vlgmr.msra.gmra.mrb[36].mxu1 %v8624_v5 }
 0x269   :  { %5285 = vmatpush1.bf16.msra.mxu0 %v7833_v40  ;;  %5326 = vmatpush1.bf16.msra.mxu1 %v7836_v41  ;;  %v7928_v40 = vld [vmem:[#allocation8 + $0x81c] ss:$144 sps:$4 sm:$0xff]   ;;  %v7923_v41 = vld [vmem:[#allocation8 + $0x810] ss:$144 sps:$4 sm:$0xff]  }
 0x26a   :  { %5286 = vmatprep.subr.bf16.mxu0 %v7841_v42  ;;  %5327 = vmatprep.subr.bf16.mxu1 %v7844_v43  ;;  %v7926_v42 = vld [vmem:[#allocation8 + $0x818] ss:$144 sps:$4 sm:$0xff]   ;;  %v7931_v43 = vld [vmem:[#allocation8 + $0x44] ss:$144 sps:$4 sm:$0xff]  }
 0x26b   :  { %5316 = vmatprep.mubr.bf16.mxu0 %v8478_v14  ;;  %5357 = vmatprep.mubr.bf16.mxu1 %v8478_v14 }
 0x26d   :  { %5287 = vmatpush1.bf16.msra.mxu0 %v7839_v44  ;;  %5328 = vmatpush1.bf16.msra.mxu1 %v7842_v45  ;;  %v7934_v44 = vld [vmem:[#allocation8 + $0x4c] ss:$144 sps:$4 sm:$0xff]   ;;  %v7929_v45 = vld [vmem:[#allocation8 + $0x40] ss:$144 sps:$4 sm:$0xff]  }
 0x26e   :  { %5288 = vmatprep.subr.bf16.mxu0 %v7847_v46  ;;  %5329 = vmatprep.subr.bf16.mxu1 %v7850_v47  ;;  %v7932_v46 = vld [vmem:[#allocation8 + $0x48] ss:$144 sps:$4 sm:$0xff]   ;;  %v7937_v47 = vld [vmem:[#allocation8 + $0x164] ss:$144 sps:$4 sm:$0xff]  }
 0x271   :  { %5289 = vmatpush1.bf16.msra.mxu0 %v7845_v48  ;;  %5330 = vmatpush1.bf16.msra.mxu1 %v7848_v49  ;;  %v7940_v48 = vld [vmem:[#allocation8 + $0x16c] ss:$144 sps:$4 sm:$0xff]   ;;  %v7935_v49 = vld [vmem:[#allocation8 + $0x160] ss:$144 sps:$4 sm:$0xff]  }
 0x272   :  { %5290 = vmatprep.subr.bf16.mxu0 %v7853_v50  ;;  %5331 = vmatprep.subr.bf16.mxu1 %v7856_v51  ;;  %v7938_v50 = vld [vmem:[#allocation8 + $0x168] ss:$144 sps:$4 sm:$0xff]   ;;  %v7943_v51 = vld [vmem:[#allocation8 + $0x284] ss:$144 sps:$4 sm:$0xff]  }
 0x275   :  { %5291 = vmatpush1.bf16.msra.mxu0 %v7851_v52  ;;  %5332 = vmatpush1.bf16.msra.mxu1 %v7854_v53  ;;  %v7946_v52 = vld [vmem:[#allocation8 + $0x28c] ss:$144 sps:$4 sm:$0xff]   ;;  %v7941_v53 = vld [vmem:[#allocation8 + $0x280] ss:$144 sps:$4 sm:$0xff]  }
 0x276   :  { %5292 = vmatprep.subr.bf16.mxu0 %v7859_v54  ;;  %5333 = vmatprep.subr.bf16.mxu1 %v7862_v55  ;;  %v7944_v54 = vld [vmem:[#allocation8 + $0x288] ss:$144 sps:$4 sm:$0xff]   ;;  %v7949_v55 = vld [vmem:[#allocation8 + $0x3a4] ss:$144 sps:$4 sm:$0xff]  }
 0x279   :  { %5293 = vmatpush1.bf16.msra.mxu0 %v7857_v56  ;;  %5334 = vmatpush1.bf16.msra.mxu1 %v7860_v57  ;;  %v7952_v56 = vld [vmem:[#allocation8 + $0x3ac] ss:$144 sps:$4 sm:$0xff]   ;;  %v7947_v57 = vld [vmem:[#allocation8 + $0x3a0] ss:$144 sps:$4 sm:$0xff]  }
 0x27a   :  { %5294 = vmatprep.subr.bf16.mxu0 %v7865_v58  ;;  %5335 = vmatprep.subr.bf16.mxu1 %v7868_v59  ;;  %v7950_v58 = vld [vmem:[#allocation8 + $0x3a8] ss:$144 sps:$4 sm:$0xff]   ;;  %v7955_v59 = vld [vmem:[#allocation8 + $0x4c4] ss:$144 sps:$4 sm:$0xff]  }
 0x27d   :  { %5295 = vmatpush1.bf16.msra.mxu0 %v7863_v60  ;;  %5336 = vmatpush1.bf16.msra.mxu1 %v7866_v61  ;;  %v7958_v60 = vld [vmem:[#allocation8 + $0x4cc] ss:$144 sps:$4 sm:$0xff]   ;;  %v7953_v61 = vld [vmem:[#allocation8 + $0x4c0] ss:$144 sps:$4 sm:$0xff]  }
 0x27e   :  { %5296 = vmatprep.subr.bf16.mxu0 %v7871_v62  ;;  %5337 = vmatprep.subr.bf16.mxu1 %v7874_v63  ;;  %v7956_v62 = vld [vmem:[#allocation8 + $0x4c8] ss:$144 sps:$4 sm:$0xff]   ;;  %v7961_v63 = vld [vmem:[#allocation8 + $0x5e4] ss:$144 sps:$4 sm:$0xff]  }
 0x281   :  { %5297 = vmatpush1.bf16.msra.mxu0 %v7869_v0  ;;  %5338 = vmatpush1.bf16.msra.mxu1 %v7872_v1  ;;  %v7964_v0 = vld [vmem:[#allocation8 + $0x5ec] ss:$144 sps:$4 sm:$0xff]   ;;  %v7959_v1 = vld [vmem:[#allocation8 + $0x5e0] ss:$144 sps:$4 sm:$0xff]  }
 0x282   :  { %5298 = vmatprep.subr.bf16.mxu0 %v7877_v2  ;;  %5339 = vmatprep.subr.bf16.mxu1 %v7880_v3  ;;  %v7962_v2 = vld [vmem:[#allocation8 + $0x5e8] ss:$144 sps:$4 sm:$0xff]   ;;  %v7967_v3 = vld [vmem:[#allocation8 + $0x704] ss:$144 sps:$4 sm:$0xff]  }
 0x285   :  { %5299 = vmatpush1.bf16.msra.mxu0 %v7875_v4  ;;  %5340 = vmatpush1.bf16.msra.mxu1 %v7878_v6  ;;  %v7970_v4 = vld [vmem:[#allocation8 + $0x70c] ss:$144 sps:$4 sm:$0xff]   ;;  %v7965_v6 = vld [vmem:[#allocation8 + $0x700] ss:$144 sps:$4 sm:$0xff]  }
 0x286   :  { %5366 = vmatprep.subr.bf16.mxu0 %v7883_v7  ;;  %5407 = vmatprep.subr.bf16.mxu1 %v7886_v8  ;;  %v7968_v7 = vld [vmem:[#allocation8 + $0x708] ss:$144 sps:$4 sm:$0xff]   ;;  %v7973_v8 = vld [vmem:[#allocation8 + $0x824] ss:$144 sps:$4 sm:$0xff]  }
 0x288   :  { %5317 = vmatmul.mubr.bf16.vlgmr.msra.gmra.mrb[40].mxu0 %v8624_v5  ;;  %5358 = vmatmul.mubr.bf16.vlgmr.msra.gmra.mrb[40].mxu1 %v8624_v5 }
 0x289   :  { %5367 = vmatpush1.bf16.msra.mxu0 %v7881_v9  ;;  %5408 = vmatpush1.bf16.msra.mxu1 %v7884_v10  ;;  %v7976_v9 = vld [vmem:[#allocation8 + $0x82c] ss:$144 sps:$4 sm:$0xff]   ;;  %v7971_v10 = vld [vmem:[#allocation8 + $0x820] ss:$144 sps:$4 sm:$0xff]  }
 0x28a   :  { %5368 = vmatprep.subr.bf16.mxu0 %v7889_v11  ;;  %5409 = vmatprep.subr.bf16.mxu1 %v7892_v12  ;;  %v7974_v11 = vld [vmem:[#allocation8 + $0x828] ss:$144 sps:$4 sm:$0xff]   ;;  %v7979_v12 = vld [vmem:[#allocation8 + $0x54] ss:$144 sps:$4 sm:$0xff]  }
 0x28b   :  { %5398 = vmatprep.mubr.bf16.mxu0 %v8478_v14  ;;  %5439 = vmatprep.mubr.bf16.mxu1 %v8478_v14 }
 0x28d   :  { %5369 = vmatpush1.bf16.msra.mxu0 %v7887_v13  ;;  %5410 = vmatpush1.bf16.msra.mxu1 %v7890_v15  ;;  %v7982_v13 = vld [vmem:[#allocation8 + $0x5c] ss:$144 sps:$4 sm:$0xff]   ;;  %v7977_v15 = vld [vmem:[#allocation8 + $0x50] ss:$144 sps:$4 sm:$0xff]  }
 0x28e   :  { %5370 = vmatprep.subr.bf16.mxu0 %v7895_v16  ;;  %5411 = vmatprep.subr.bf16.mxu1 %v7898_v17  ;;  %v7980_v16 = vld [vmem:[#allocation8 + $0x58] ss:$144 sps:$4 sm:$0xff]   ;;  %v7985_v17 = vld [vmem:[#allocation8 + $0x174] ss:$144 sps:$4 sm:$0xff]  }
 0x291   :  { %5371 = vmatpush1.bf16.msra.mxu0 %v7893_v18  ;;  %5412 = vmatpush1.bf16.msra.mxu1 %v7896_v19  ;;  %v7988_v18 = vld [vmem:[#allocation8 + $0x17c] ss:$144 sps:$4 sm:$0xff]   ;;  %v7983_v19 = vld [vmem:[#allocation8 + $0x170] ss:$144 sps:$4 sm:$0xff]  }
 0x292   :  { %5372 = vmatprep.subr.bf16.mxu0 %v7901_v20  ;;  %5413 = vmatprep.subr.bf16.mxu1 %v7904_v21  ;;  %v7986_v20 = vld [vmem:[#allocation8 + $0x178] ss:$144 sps:$4 sm:$0xff]   ;;  %v7991_v21 = vld [vmem:[#allocation8 + $0x294] ss:$144 sps:$4 sm:$0xff]  }
 0x295   :  { %5373 = vmatpush1.bf16.msra.mxu0 %v7899_v22  ;;  %5414 = vmatpush1.bf16.msra.mxu1 %v7902_v23  ;;  %v7994_v22 = vld [vmem:[#allocation8 + $0x29c] ss:$144 sps:$4 sm:$0xff]   ;;  %v7989_v23 = vld [vmem:[#allocation8 + $0x290] ss:$144 sps:$4 sm:$0xff]  }
 0x296   :  { %5374 = vmatprep.subr.bf16.mxu0 %v7907_v24  ;;  %5415 = vmatprep.subr.bf16.mxu1 %v7910_v25  ;;  %v7992_v24 = vld [vmem:[#allocation8 + $0x298] ss:$144 sps:$4 sm:$0xff]   ;;  %v7997_v25 = vld [vmem:[#allocation8 + $0x3b4] ss:$144 sps:$4 sm:$0xff]  }
 0x299   :  { %5375 = vmatpush1.bf16.msra.mxu0 %v7905_v27  ;;  %5416 = vmatpush1.bf16.msra.mxu1 %v7908_v28  ;;  %v8000_v27 = vld [vmem:[#allocation8 + $0x3bc] ss:$144 sps:$4 sm:$0xff]   ;;  %v7995_v28 = vld [vmem:[#allocation8 + $0x3b0] ss:$144 sps:$4 sm:$0xff]  }
 0x29a   :  { %5376 = vmatprep.subr.bf16.mxu0 %v7913_v29  ;;  %5417 = vmatprep.subr.bf16.mxu1 %v7916_v30  ;;  %v7998_v29 = vld [vmem:[#allocation8 + $0x3b8] ss:$144 sps:$4 sm:$0xff]   ;;  %v8003_v30 = vld [vmem:[#allocation8 + $0x4d4] ss:$144 sps:$4 sm:$0xff]  }
 0x29d   :  { %5377 = vmatpush1.bf16.msra.mxu0 %v7911_v31  ;;  %5418 = vmatpush1.bf16.msra.mxu1 %v7914_v33  ;;  %v8006_v31 = vld [vmem:[#allocation8 + $0x4dc] ss:$144 sps:$4 sm:$0xff]   ;;  %v8001_v33 = vld [vmem:[#allocation8 + $0x4d0] ss:$144 sps:$4 sm:$0xff]  }
 0x29e   :  { %5378 = vmatprep.subr.bf16.mxu0 %v7919_v34  ;;  %5419 = vmatprep.subr.bf16.mxu1 %v7922_v35  ;;  %v8004_v34 = vld [vmem:[#allocation8 + $0x4d8] ss:$144 sps:$4 sm:$0xff]   ;;  %v8009_v35 = vld [vmem:[#allocation8 + $0x5f4] ss:$144 sps:$4 sm:$0xff]  }
 0x2a1   :  { %5379 = vmatpush1.bf16.msra.mxu0 %v7917_v36  ;;  %5420 = vmatpush1.bf16.msra.mxu1 %v7920_v38  ;;  %v8012_v36 = vld [vmem:[#allocation8 + $0x5fc] ss:$144 sps:$4 sm:$0xff]   ;;  %v8007_v38 = vld [vmem:[#allocation8 + $0x5f0] ss:$144 sps:$4 sm:$0xff]  }
 0x2a2   :  { %5380 = vmatprep.subr.bf16.mxu0 %v7925_v39  ;;  %5421 = vmatprep.subr.bf16.mxu1 %v7928_v40  ;;  %v8010_v39 = vld [vmem:[#allocation8 + $0x5f8] ss:$144 sps:$4 sm:$0xff]   ;;  %v8015_v40 = vld [vmem:[#allocation8 + $0x714] ss:$144 sps:$4 sm:$0xff]  }
 0x2a5   :  { %5381 = vmatpush1.bf16.msra.mxu0 %v7923_v41  ;;  %5422 = vmatpush1.bf16.msra.mxu1 %v7926_v42  ;;  %v8018_v41 = vld [vmem:[#allocation8 + $0x71c] ss:$144 sps:$4 sm:$0xff]   ;;  %v8013_v42 = vld [vmem:[#allocation8 + $0x710] ss:$144 sps:$4 sm:$0xff]  }
 0x2a6   :  { %5448 = vmatprep.subr.bf16.mxu0 %v7931_v43  ;;  %5489 = vmatprep.subr.bf16.mxu1 %v7934_v44  ;;  %v8016_v43 = vld [vmem:[#allocation8 + $0x718] ss:$144 sps:$4 sm:$0xff]   ;;  %v8021_v44 = vld [vmem:[#allocation8 + $0x834] ss:$144 sps:$4 sm:$0xff]  }
 0x2a8   :  { %5399 = vmatmul.mubr.bf16.vlgmr.msra.gmra.mrb[44].mxu0 %v8624_v5  ;;  %5440 = vmatmul.mubr.bf16.vlgmr.msra.gmra.mrb[44].mxu1 %v8624_v5 }
 0x2a9   :  { %5449 = vmatpush1.bf16.msra.mxu0 %v7929_v45  ;;  %5490 = vmatpush1.bf16.msra.mxu1 %v7932_v46  ;;  %v8024_v45 = vld [vmem:[#allocation8 + $0x83c] ss:$144 sps:$4 sm:$0xff]   ;;  %v8019_v46 = vld [vmem:[#allocation8 + $0x830] ss:$144 sps:$4 sm:$0xff]  }
 0x2aa   :  { %5450 = vmatprep.subr.bf16.mxu0 %v7937_v47  ;;  %5491 = vmatprep.subr.bf16.mxu1 %v7940_v48  ;;  %v8022_v47 = vld [vmem:[#allocation8 + $0x838] ss:$144 sps:$4 sm:$0xff]   ;;  %v8027_v48 = vld [vmem:[#allocation8 + $0x64] ss:$144 sps:$4 sm:$0xff]  }
 0x2ab   :  { %5480 = vmatprep.mubr.bf16.mxu0 %v8478_v14  ;;  %5521 = vmatprep.mubr.bf16.mxu1 %v8478_v14 }
 0x2ad   :  { %5451 = vmatpush1.bf16.msra.mxu0 %v7935_v49  ;;  %5492 = vmatpush1.bf16.msra.mxu1 %v7938_v50  ;;  %v8030_v49 = vld [vmem:[#allocation8 + $0x6c] ss:$144 sps:$4 sm:$0xff]   ;;  %v8025_v50 = vld [vmem:[#allocation8 + $0x60] ss:$144 sps:$4 sm:$0xff]  }
 0x2ae   :  { %5452 = vmatprep.subr.bf16.mxu0 %v7943_v51  ;;  %5493 = vmatprep.subr.bf16.mxu1 %v7946_v52  ;;  %v8028_v51 = vld [vmem:[#allocation8 + $0x68] ss:$144 sps:$4 sm:$0xff]   ;;  %v8033_v52 = vld [vmem:[#allocation8 + $0x184] ss:$144 sps:$4 sm:$0xff]  }
 0x2b1   :  { %5453 = vmatpush1.bf16.msra.mxu0 %v7941_v53  ;;  %5494 = vmatpush1.bf16.msra.mxu1 %v7944_v54  ;;  %v8036_v53 = vld [vmem:[#allocation8 + $0x18c] ss:$144 sps:$4 sm:$0xff]   ;;  %v8031_v54 = vld [vmem:[#allocation8 + $0x180] ss:$144 sps:$4 sm:$0xff]  }
 0x2b2   :  { %5454 = vmatprep.subr.bf16.mxu0 %v7949_v55  ;;  %5495 = vmatprep.subr.bf16.mxu1 %v7952_v56  ;;  %v8034_v55 = vld [vmem:[#allocation8 + $0x188] ss:$144 sps:$4 sm:$0xff]   ;;  %v8039_v56 = vld [vmem:[#allocation8 + $0x2a4] ss:$144 sps:$4 sm:$0xff]  }
 0x2b5   :  { %5455 = vmatpush1.bf16.msra.mxu0 %v7947_v57  ;;  %5496 = vmatpush1.bf16.msra.mxu1 %v7950_v58  ;;  %v8042_v57 = vld [vmem:[#allocation8 + $0x2ac] ss:$144 sps:$4 sm:$0xff]   ;;  %v8037_v58 = vld [vmem:[#allocation8 + $0x2a0] ss:$144 sps:$4 sm:$0xff]  }
 0x2b6   :  { %5456 = vmatprep.subr.bf16.mxu0 %v7955_v59  ;;  %5497 = vmatprep.subr.bf16.mxu1 %v7958_v60  ;;  %v8040_v59 = vld [vmem:[#allocation8 + $0x2a8] ss:$144 sps:$4 sm:$0xff]   ;;  %v8045_v60 = vld [vmem:[#allocation8 + $0x3c4] ss:$144 sps:$4 sm:$0xff]  }
 0x2b9   :  { %5457 = vmatpush1.bf16.msra.mxu0 %v7953_v61  ;;  %5498 = vmatpush1.bf16.msra.mxu1 %v7956_v62  ;;  %v8048_v61 = vld [vmem:[#allocation8 + $0x3cc] ss:$144 sps:$4 sm:$0xff]   ;;  %v8043_v62 = vld [vmem:[#allocation8 + $0x3c0] ss:$144 sps:$4 sm:$0xff]  }
 0x2ba   :  { %5458 = vmatprep.subr.bf16.mxu0 %v7961_v63  ;;  %5499 = vmatprep.subr.bf16.mxu1 %v7964_v0  ;;  %v8046_v63 = vld [vmem:[#allocation8 + $0x3c8] ss:$144 sps:$4 sm:$0xff]   ;;  %v8051_v0 = vld [vmem:[#allocation8 + $0x4e4] ss:$144 sps:$4 sm:$0xff]  }
 0x2bd   :  { %5459 = vmatpush1.bf16.msra.mxu0 %v7959_v1  ;;  %5500 = vmatpush1.bf16.msra.mxu1 %v7962_v2  ;;  %v8054_v1 = vld [vmem:[#allocation8 + $0x4ec] ss:$144 sps:$4 sm:$0xff]   ;;  %v8049_v2 = vld [vmem:[#allocation8 + $0x4e0] ss:$144 sps:$4 sm:$0xff]  }
 0x2be   :  { %5460 = vmatprep.subr.bf16.mxu0 %v7967_v3  ;;  %5501 = vmatprep.subr.bf16.mxu1 %v7970_v4  ;;  %v8052_v3 = vld [vmem:[#allocation8 + $0x4e8] ss:$144 sps:$4 sm:$0xff]   ;;  %v8057_v4 = vld [vmem:[#allocation8 + $0x604] ss:$144 sps:$4 sm:$0xff]  }
 0x2c1   :  { %5461 = vmatpush1.bf16.msra.mxu0 %v7965_v6  ;;  %5502 = vmatpush1.bf16.msra.mxu1 %v7968_v7  ;;  %v8060_v6 = vld [vmem:[#allocation8 + $0x60c] ss:$144 sps:$4 sm:$0xff]   ;;  %v8055_v7 = vld [vmem:[#allocation8 + $0x600] ss:$144 sps:$4 sm:$0xff]  }
 0x2c2   :  { %5462 = vmatprep.subr.bf16.mxu0 %v7973_v8  ;;  %5503 = vmatprep.subr.bf16.mxu1 %v7976_v9  ;;  %v8058_v8 = vld [vmem:[#allocation8 + $0x608] ss:$144 sps:$4 sm:$0xff]   ;;  %v8063_v9 = vld [vmem:[#allocation8 + $0x724] ss:$144 sps:$4 sm:$0xff]  }
 0x2c5   :  { %5463 = vmatpush1.bf16.msra.mxu0 %v7971_v10  ;;  %5504 = vmatpush1.bf16.msra.mxu1 %v7974_v11  ;;  %v8066_v10 = vld [vmem:[#allocation8 + $0x72c] ss:$144 sps:$4 sm:$0xff]   ;;  %v8061_v11 = vld [vmem:[#allocation8 + $0x720] ss:$144 sps:$4 sm:$0xff]  }
 0x2c6   :  { %5530 = vmatprep.subr.bf16.mxu0 %v7979_v12  ;;  %5571 = vmatprep.subr.bf16.mxu1 %v7982_v13  ;;  %v8064_v12 = vld [vmem:[#allocation8 + $0x728] ss:$144 sps:$4 sm:$0xff]   ;;  %v8069_v13 = vld [vmem:[#allocation8 + $0x844] ss:$144 sps:$4 sm:$0xff]  }
 0x2c8   :  { %5481 = vmatmul.mubr.bf16.vlgmr.msra.gmra.mrb[48].mxu0 %v8624_v5  ;;  %5522 = vmatmul.mubr.bf16.vlgmr.msra.gmra.mrb[48].mxu1 %v8624_v5 }
 0x2c9   :  { %5531 = vmatpush1.bf16.msra.mxu0 %v7977_v15  ;;  %5572 = vmatpush1.bf16.msra.mxu1 %v7980_v16  ;;  %v8072_v15 = vld [vmem:[#allocation8 + $0x84c] ss:$144 sps:$4 sm:$0xff]   ;;  %v8067_v16 = vld [vmem:[#allocation8 + $0x840] ss:$144 sps:$4 sm:$0xff]  }
 0x2ca   :  { %5532 = vmatprep.subr.bf16.mxu0 %v7985_v17  ;;  %5573 = vmatprep.subr.bf16.mxu1 %v7988_v18  ;;  %v8070_v17 = vld [vmem:[#allocation8 + $0x848] ss:$144 sps:$4 sm:$0xff]   ;;  %v8075_v18 = vld [vmem:[#allocation8 + $0x74] ss:$144 sps:$4 sm:$0xff]  }
 0x2cb   :  { %5562 = vmatprep.mubr.bf16.mxu0 %v8478_v14  ;;  %5603 = vmatprep.mubr.bf16.mxu1 %v8478_v14 }
 0x2cd   :  { %5533 = vmatpush1.bf16.msra.mxu0 %v7983_v19  ;;  %5574 = vmatpush1.bf16.msra.mxu1 %v7986_v20  ;;  %v8078_v19 = vld [vmem:[#allocation8 + $0x7c] ss:$144 sps:$4 sm:$0xff]   ;;  %v8073_v20 = vld [vmem:[#allocation8 + $0x70] ss:$144 sps:$4 sm:$0xff]  }
 0x2ce   :  { %5534 = vmatprep.subr.bf16.mxu0 %v7991_v21  ;;  %5575 = vmatprep.subr.bf16.mxu1 %v7994_v22  ;;  %v8076_v21 = vld [vmem:[#allocation8 + $0x78] ss:$144 sps:$4 sm:$0xff]   ;;  %v8081_v22 = vld [vmem:[#allocation8 + $0x194] ss:$144 sps:$4 sm:$0xff]  }
 0x2d1   :  { %5535 = vmatpush1.bf16.msra.mxu0 %v7989_v23  ;;  %5576 = vmatpush1.bf16.msra.mxu1 %v7992_v24  ;;  %v8084_v23 = vld [vmem:[#allocation8 + $0x19c] ss:$144 sps:$4 sm:$0xff]   ;;  %v8079_v24 = vld [vmem:[#allocation8 + $0x190] ss:$144 sps:$4 sm:$0xff]  }
 0x2d2   :  { %5536 = vmatprep.subr.bf16.mxu0 %v7997_v25  ;;  %5577 = vmatprep.subr.bf16.mxu1 %v8000_v27  ;;  %v8082_v25 = vld [vmem:[#allocation8 + $0x198] ss:$144 sps:$4 sm:$0xff]   ;;  %v8087_v27 = vld [vmem:[#allocation8 + $0x2b4] ss:$144 sps:$4 sm:$0xff]  }
 0x2d5   :  { %5537 = vmatpush1.bf16.msra.mxu0 %v7995_v28  ;;  %5578 = vmatpush1.bf16.msra.mxu1 %v7998_v29  ;;  %v8090_v28 = vld [vmem:[#allocation8 + $0x2bc] ss:$144 sps:$4 sm:$0xff]   ;;  %v8085_v29 = vld [vmem:[#allocation8 + $0x2b0] ss:$144 sps:$4 sm:$0xff]  }
 0x2d6   :  { %5538 = vmatprep.subr.bf16.mxu0 %v8003_v30  ;;  %5579 = vmatprep.subr.bf16.mxu1 %v8006_v31  ;;  %v8088_v30 = vld [vmem:[#allocation8 + $0x2b8] ss:$144 sps:$4 sm:$0xff]   ;;  %v8093_v31 = vld [vmem:[#allocation8 + $0x3d4] ss:$144 sps:$4 sm:$0xff]  }
 0x2d9   :  { %5539 = vmatpush1.bf16.msra.mxu0 %v8001_v33  ;;  %5580 = vmatpush1.bf16.msra.mxu1 %v8004_v34  ;;  %v8096_v33 = vld [vmem:[#allocation8 + $0x3dc] ss:$144 sps:$4 sm:$0xff]   ;;  %v8091_v34 = vld [vmem:[#allocation8 + $0x3d0] ss:$144 sps:$4 sm:$0xff]  }
 0x2da   :  { %5540 = vmatprep.subr.bf16.mxu0 %v8009_v35  ;;  %5581 = vmatprep.subr.bf16.mxu1 %v8012_v36  ;;  %v8094_v35 = vld [vmem:[#allocation8 + $0x3d8] ss:$144 sps:$4 sm:$0xff]   ;;  %v8099_v36 = vld [vmem:[#allocation8 + $0x4f4] ss:$144 sps:$4 sm:$0xff]  }
 0x2dd   :  { %5541 = vmatpush1.bf16.msra.mxu0 %v8007_v38  ;;  %5582 = vmatpush1.bf16.msra.mxu1 %v8010_v39  ;;  %v8102_v38 = vld [vmem:[#allocation8 + $0x4fc] ss:$144 sps:$4 sm:$0xff]   ;;  %v8097_v39 = vld [vmem:[#allocation8 + $0x4f0] ss:$144 sps:$4 sm:$0xff]  }
 0x2de   :  { %5542 = vmatprep.subr.bf16.mxu0 %v8015_v40  ;;  %5583 = vmatprep.subr.bf16.mxu1 %v8018_v41  ;;  %v8655_v40 = vsub.s32 0, %v8585_v32  ;;  %v8658_v41 = vsub.s32 2, %v8585_v32 }
 0x2e1   :  { %5543 = vmatpush1.bf16.msra.mxu0 %v8013_v42  ;;  %5584 = vmatpush1.bf16.msra.mxu1 %v8016_v43  ;;  %v8100_v42 = vld [vmem:[#allocation8 + $0x4f8] ss:$144 sps:$4 sm:$0xff]   ;;  %v8660_v43 = vld [vmem:[#allocation10] sm:$0xff] }
 0x2e2   :  { %5544 = vmatprep.subr.bf16.mxu0 %v8021_v44  ;;  %5585 = vmatprep.subr.bf16.mxu1 %v8024_v45  ;;  %v8663_v44 = vsub.s32 1, %v8585_v32  ;;  %v8666_v45 = vsub.s32 3, %v8585_v32 }
 0x2e5   :  { %5545 = vmatpush1.bf16.msra.mxu0 %v8019_v46  ;;  %5586 = vmatpush1.bf16.msra.mxu1 %v8022_v47  ;;  %v8105_v46 = vld [vmem:[#allocation8 + $0x614] ss:$144 sps:$4 sm:$0xff]   ;;  %v8108_v47 = vld [vmem:[#allocation8 + $0x61c] ss:$144 sps:$4 sm:$0xff]  }
 0x2e6   :  { %5612 = vmatprep.subr.bf16.mxu0 %v8027_v48  ;;  %5653 = vmatprep.subr.bf16.mxu1 %v8030_v49  ;;  %v5859_v48 = vand.u32 127, %v160_v26  ;;  %v3503_v49 = vrot.slane %v8660_v43, %v8655_v40  ;;  %v8114_v26 = vld [vmem:[#allocation8 + $0x73c] ss:$144 sps:$4 sm:$0xff]  }
 0x2e8   :  { %5563 = vmatmul.mubr.bf16.vlgmr.msra.gmra.mrb[52].mxu0 %v8624_v5  ;;  %5604 = vmatmul.mubr.bf16.vlgmr.msra.gmra.mrb[52].mxu1 %v8624_v5  ;;  %vm5860_vm0 = vcmp.lt.s32.totalorder %v5859_v48, 10 }
 0x2e9   :  { %5613 = vmatpush1.bf16.msra.mxu0 %v8025_v50  ;;  %5654 = vmatpush1.bf16.msra.mxu1 %v8028_v51  ;;  %v3511_v50 = vrot.slane %v8660_v43, %v8658_v41  ;;  %v8103_v51 = vld [vmem:[#allocation8 + $0x610] ss:$144 sps:$4 sm:$0xff]  }
 0x2ea   :  { %5614 = vmatprep.subr.bf16.mxu0 %v8033_v52  ;;  %5655 = vmatprep.subr.bf16.mxu1 %v8036_v53  ;;  %v8106_v52 = vld [vmem:[#allocation8 + $0x618] ss:$144 sps:$4 sm:$0xff]   ;;  %v3507_v53 = vrot.slane %v8660_v43, %v8663_v44 }
 0x2eb   :  { %5644 = vmatprep.mubr.bf16.mxu0 %v8478_v14  ;;  %5685 = vmatprep.mubr.bf16.mxu1 %v8478_v14 }
 0x2ed   :  { %5615 = vmatpush1.bf16.msra.mxu0 %v8031_v54  ;;  %5656 = vmatpush1.bf16.msra.mxu1 %v8034_v55  ;;  %v3515_v54 = vrot.slane %v8660_v43, %v8666_v45  ;;  %v8111_v55 = vld [vmem:[#allocation8 + $0x734] ss:$144 sps:$4 sm:$0xff]  }
 0x2ee   :  { %5616 = vmatprep.subr.bf16.mxu0 %v8039_v56  ;;  %5657 = vmatprep.subr.bf16.mxu1 %v8042_v57 }
 0x2f1   :  { %5617 = vmatpush1.bf16.msra.mxu0 %v8037_v58  ;;  %5658 = vmatpush1.bf16.msra.mxu1 %v8040_v59 }
 0x2f2   :  { %5618 = vmatprep.subr.bf16.mxu0 %v8045_v60  ;;  %5659 = vmatprep.subr.bf16.mxu1 %v8048_v61 }
 0x2f5   :  { %5619 = vmatpush1.bf16.msra.mxu0 %v8043_v62  ;;  %5660 = vmatpush1.bf16.msra.mxu1 %v8046_v63  ;;  %v8109_v62 = vld [vmem:[#allocation8 + $0x730] ss:$144 sps:$4 sm:$0xff]  }
 0x2f6   :  { %5620 = vmatprep.subr.bf16.mxu0 %v8051_v0  ;;  %5661 = vmatprep.subr.bf16.mxu1 %v8054_v1 }
 0x2f9   :  { %5621 = vmatpush1.bf16.msra.mxu0 %v8049_v2  ;;  %5662 = vmatpush1.bf16.msra.mxu1 %v8052_v3  ;;  %v8112_v3 = vld [vmem:[#allocation8 + $0x738] ss:$144 sps:$4 sm:$0xff]  }
 0x2fa   :  { %5622 = vmatprep.subr.bf16.mxu0 %v8057_v4  ;;  %5663 = vmatprep.subr.bf16.mxu1 %v8060_v6  ;;  %v8117_v4 = vld [vmem:[#allocation8 + $0x854] ss:$144 sps:$4 sm:$0xff]  }
 0x2fd   :  { %5623 = vmatpush1.bf16.msra.mxu0 %v8055_v7  ;;  %5664 = vmatpush1.bf16.msra.mxu1 %v8058_v8 }
 0x2fe   :  { %5624 = vmatprep.subr.bf16.mxu0 %v8063_v9  ;;  %5665 = vmatprep.subr.bf16.mxu1 %v8066_v10  ;;  %v8120_v9 = vld [vmem:[#allocation8 + $0x85c] ss:$144 sps:$4 sm:$0xff]  }
 0x301   :  { %5625 = vmatpush1.bf16.msra.mxu0 %v8061_v11  ;;  %5666 = vmatpush1.bf16.msra.mxu1 %v8064_v12  ;;  %v8115_v12 = vld [vmem:[#allocation8 + $0x850] ss:$144 sps:$4 sm:$0xff]  }
 0x302   :  { %5626 = vmatprep.subr.bf16.mxu0 %v8069_v13  ;;  %5667 = vmatprep.subr.bf16.mxu1 %v8072_v15  ;;  %v8118_v13 = vld [vmem:[#allocation8 + $0x858] ss:$144 sps:$4 sm:$0xff]   ;;  %v8123_v15 = vld [vmem:[#allocation8 + $0x84] ss:$144 sps:$4 sm:$0xff]  }
 0x305   :  { %5627 = vmatpush1.bf16.msra.mxu0 %v8067_v16  ;;  %5668 = vmatpush1.bf16.msra.mxu1 %v8070_v17  ;;  %v8126_v16 = vld [vmem:[#allocation8 + $0x8c] ss:$144 sps:$4 sm:$0xff]   ;;  %v8121_v17 = vld [vmem:[#allocation8 + $0x80] ss:$144 sps:$4 sm:$0xff]  }
 0x306   :  { %5694 = vmatprep.subr.bf16.mxu0 %v8075_v18  ;;  %5735 = vmatprep.subr.bf16.mxu1 %v8078_v19  ;;  %v8124_v18 = vld [vmem:[#allocation8 + $0x88] ss:$144 sps:$4 sm:$0xff]   ;;  %v8129_v19 = vld [vmem:[#allocation8 + $0x1a4] ss:$144 sps:$4 sm:$0xff]  }
 0x308   :  { %5645 = vmatmul.mubr.bf16.vlgmr.msra.gmra.mrb[56].mxu0 %v8624_v5  ;;  %5686 = vmatmul.mubr.bf16.vlgmr.msra.gmra.mrb[56].mxu1 %v8624_v5 }
 0x309   :  { %5695 = vmatpush1.bf16.msra.mxu0 %v8073_v20  ;;  %5736 = vmatpush1.bf16.msra.mxu1 %v8076_v21  ;;  %v8132_v20 = vld [vmem:[#allocation8 + $0x1ac] ss:$144 sps:$4 sm:$0xff]   ;;  %v8127_v21 = vld [vmem:[#allocation8 + $0x1a0] ss:$144 sps:$4 sm:$0xff]  }
 0x30a   :  { %5696 = vmatprep.subr.bf16.mxu0 %v8081_v22  ;;  %5737 = vmatprep.subr.bf16.mxu1 %v8084_v23  ;;  %v8130_v22 = vld [vmem:[#allocation8 + $0x1a8] ss:$144 sps:$4 sm:$0xff]   ;;  %v8135_v23 = vld [vmem:[#allocation8 + $0x2c4] ss:$144 sps:$4 sm:$0xff]  }
 0x30b   :  { %5726 = vmatprep.mubr.bf16.mxu0 %v8478_v14  ;;  %5767 = vmatprep.mubr.bf16.mxu1 %v8478_v14 }
 0x30d   :  { %5697 = vmatpush1.bf16.msra.mxu0 %v8079_v24  ;;  %5738 = vmatpush1.bf16.msra.mxu1 %v8082_v25  ;;  %v8138_v24 = vld [vmem:[#allocation8 + $0x2cc] ss:$144 sps:$4 sm:$0xff]   ;;  %v8133_v25 = vld [vmem:[#allocation8 + $0x2c0] ss:$144 sps:$4 sm:$0xff]  }
 0x30e   :  { %5698 = vmatprep.subr.bf16.mxu0 %v8087_v27  ;;  %5739 = vmatprep.subr.bf16.mxu1 %v8090_v28  ;;  %v8136_v27 = vld [vmem:[#allocation8 + $0x2c8] ss:$144 sps:$4 sm:$0xff]   ;;  %v8141_v28 = vld [vmem:[#allocation8 + $0x3e4] ss:$144 sps:$4 sm:$0xff]  }
 0x311   :  { %5699 = vmatpush1.bf16.msra.mxu0 %v8085_v29  ;;  %5740 = vmatpush1.bf16.msra.mxu1 %v8088_v30  ;;  %v8144_v29 = vld [vmem:[#allocation8 + $0x3ec] ss:$144 sps:$4 sm:$0xff]   ;;  %v8139_v30 = vld [vmem:[#allocation8 + $0x3e0] ss:$144 sps:$4 sm:$0xff]  }
 0x312   :  { %5700 = vmatprep.subr.bf16.mxu0 %v8093_v31  ;;  %5741 = vmatprep.subr.bf16.mxu1 %v8096_v33  ;;  %v8142_v31 = vld [vmem:[#allocation8 + $0x3e8] ss:$144 sps:$4 sm:$0xff]   ;;  %v8147_v33 = vld [vmem:[#allocation8 + $0x504] ss:$144 sps:$4 sm:$0xff]  }
 0x315   :  { %5701 = vmatpush1.bf16.msra.mxu0 %v8091_v34  ;;  %5742 = vmatpush1.bf16.msra.mxu1 %v8094_v35  ;;  %v8150_v34 = vld [vmem:[#allocation8 + $0x50c] ss:$144 sps:$4 sm:$0xff]   ;;  %v8696_v35 = vsub.s32 4, %v8585_v32 }
 0x316   :  { %5702 = vmatprep.subr.bf16.mxu0 %v8099_v36  ;;  %5743 = vmatprep.subr.bf16.mxu1 %v8102_v38  ;;  %v8145_v36 = vld [vmem:[#allocation8 + $0x500] ss:$144 sps:$4 sm:$0xff]   ;;  %v8148_v38 = vld [vmem:[#allocation8 + $0x508] ss:$144 sps:$4 sm:$0xff]  }
 0x317   :  { %v3519_v48 = vrot.slane %v8660_v43, %v8696_v35 }
 0x319   :  { %5703 = vmatpush1.bf16.msra.mxu0 %v8097_v39  ;;  %5744 = vmatpush1.bf16.msra.mxu1 %v8100_v42  ;;  %v8702_v39 = vsub.s32 5, %v8585_v32  ;;  %v8705_v42 = vsub.s32 7, %v8585_v32 }
 0x31a   :  { %5704 = vmatprep.subr.bf16.mxu0 %v8105_v46  ;;  %5745 = vmatprep.subr.bf16.mxu1 %v8108_v47  ;;  %v8153_v46 = vld [vmem:[#allocation8 + $0x624] ss:$144 sps:$4 sm:$0xff]   ;;  %v8156_v47 = vld [vmem:[#allocation8 + $0x62c] ss:$144 sps:$4 sm:$0xff]  }
 0x31b   :  { %v5154_v56 = vpop.f32.mrb[32].mxu0  ;;  %v5195_v57 = vpop.f32.mrb[32].mxu1 }
 0x31c   :  { %v5155_v58 = vadd.f32 %v5154_v56, %v3503_v49  ;;  %v8677_v59 = vadd.f32 %v5195_v57, %v3511_v50  ;;  %v5156_v60 = vpop.f32.mrb[33].mxu0  ;;  %v5197_v61 = vpop.f32.mrb[33].mxu1  ;;  %v3523_v50 = vrot.slane %v8660_v43, %v8702_v39 }
 0x31d   :  { %v8679_v63 = vadd.f32 %v5156_v60, %v3507_v53  ;;  %v8681_v0 = vadd.f32 %v5197_v61, %v3515_v54  ;;  %5705 = vmatpush1.bf16.msra.mxu0 %v8103_v51  ;;  %5746 = vmatpush1.bf16.msra.mxu1 %v8106_v52  ;;  %v5158_v1 = vpop.f32.mrb[34].mxu0  ;;  %v5199_v2 = vpop.f32.mrb[34].mxu1  ;;  %v3531_v51 = vrot.slane %v8660_v43, %v8705_v42  ;;  %v8151_v52 = vld [vmem:[#allocation8 + $0x620] ss:$144 sps:$4 sm:$0xff]   ;;  %v8154_v53 = vld [vmem:[#allocation8 + $0x628] ss:$144 sps:$4 sm:$0xff]  }
 0x31e   :  { %v5159_v6 = vpop.f32.mrb[35].mxu0  ;;  %v5200_v7 = vpop.f32.mrb[35].mxu1  ;;  %5706 = vmatprep.subr.bf16.mxu0 %v8111_v55  ;;  %5747 = vmatprep.subr.bf16.mxu1 %v8114_v26  ;;  %v8684_v8 = vsel %vm5860_vm0, %v5155_v58, -1e+30  ;;  %v8159_v54 = vld [vmem:[#allocation8 + $0x744] ss:$144 sps:$4 sm:$0xff]  }
 0x31f   :  { %v5880_v10 = vcombine.low %v8677_v59, %v8681_v0  ;;  %v5881_v11 = vcombine.high %v8677_v59, %v8681_v0  ;;  %5864 = vmax.xlane.f32.xlu0 %v8684_v8  ;;  %v8162_v55 = vld [vmem:[#allocation8 + $0x74c] ss:$144 sps:$4 sm:$0xff]   ;;  %v8160_v1 = vld [vmem:[#allocation8 + $0x748] ss:$144 sps:$4 sm:$0xff]  }
 0x320   :  { %v8168_v7 = vld [vmem:[#allocation8 + $0x86c] ss:$144 sps:$4 sm:$0xff]  }
 0x321   :  { %5707 = vmatpush1.bf16.msra.mxu0 %v8109_v62  ;;  %5748 = vmatpush1.bf16.msra.mxu1 %v8112_v3  ;;  %v8157_v62 = vld [vmem:[#allocation8 + $0x740] ss:$144 sps:$4 sm:$0xff]  }
 0x322   :  { %5708 = vmatprep.subr.bf16.mxu0 %v8117_v4  ;;  %5749 = vmatprep.subr.bf16.mxu1 %v8120_v9 }
 0x325   :  { %5709 = vmatpush1.bf16.msra.mxu0 %v8115_v12  ;;  %5750 = vmatpush1.bf16.msra.mxu1 %v8118_v13 }
 0x326   :  { %5776 = vmatprep.subr.bf16.mxu0 %v8123_v15  ;;  %5817 = vmatprep.subr.bf16.mxu1 %v8126_v16 }
 0x328   :  { %5727 = vmatmul.mubr.bf16.vlgmr.msra.gmra.mrb[60].mxu0 %v8624_v5  ;;  %5768 = vmatmul.mubr.bf16.vlgmr.msra.gmra.mrb[60].mxu1 %v8624_v5 }
 0x329   :  { %5777 = vmatpush1.bf16.msra.mxu0 %v8121_v17  ;;  %5818 = vmatpush1.bf16.msra.mxu1 %v8124_v18  ;;  %v8163_v18 = vld [vmem:[#allocation8 + $0x860] ss:$144 sps:$4 sm:$0xff]  }
 0x32a   :  { %5778 = vmatprep.subr.bf16.mxu0 %v8129_v19  ;;  %5819 = vmatprep.subr.bf16.mxu1 %v8132_v20  ;;  %v8166_v19 = vld [vmem:[#allocation8 + $0x868] ss:$144 sps:$4 sm:$0xff]  }
 0x32b   :  { %5808 = vmatprep.mubr.bf16.mxu0 %v8478_v14  ;;  %5849 = vmatprep.mubr.bf16.mxu1 %v8478_v14  ;;  %v8699_v14 = vsub.s32 6, %v8585_v32 }
 0x32d   :  { %5779 = vmatpush1.bf16.msra.mxu0 %v8127_v21  ;;  %5820 = vmatpush1.bf16.msra.mxu1 %v8130_v22  ;;  %v3527_v49 = vrot.slane %v8660_v43, %v8699_v14  ;;  %v8165_v43 = vld [vmem:[#allocation8 + $0x864] ss:$144 sps:$4 sm:$0xff]  }
 0x32e   :  { %5780 = vmatprep.subr.bf16.mxu0 %v8135_v23  ;;  %5821 = vmatprep.subr.bf16.mxu1 %v8138_v24 }
 0x331   :  { %5781 = vmatpush1.bf16.msra.mxu0 %v8133_v25  ;;  %5822 = vmatpush1.bf16.msra.mxu1 %v8136_v27 }
 0x332   :  { %5782 = vmatprep.subr.bf16.mxu0 %v8141_v28  ;;  %5823 = vmatprep.subr.bf16.mxu1 %v8144_v29  ;;  %v8479_v29 = vmov 1966171168  }
 0x335   :  { %5783 = vmatpush1.bf16.msra.mxu0 %v8139_v30  ;;  %5824 = vmatpush1.bf16.msra.mxu1 %v8142_v31  ;;  %v6183_v30 = vunpack.c.l.s4 %v8479_v29 }
 0x336   :  { %5784 = vmatprep.subr.bf16.mxu0 %v8147_v33  ;;  %5825 = vmatprep.subr.bf16.mxu1 %v8150_v34  ;;  %v8717_v33 = vld [vmem:[#allocation10 + $0x8] sm:$0xff] }
 0x337   :  { %v6184_v31 = vunpack.c.0.s8 %v6183_v30  ;;  %v3563_v29 = vrot.slane %v8717_v33, %v8705_v42 }
 0x339   :  { %5785 = vmatpush1.bf16.msra.mxu0 %v8145_v36  ;;  %5826 = vmatpush1.bf16.msra.mxu1 %v8148_v38  ;;  %v3535_v38 = vrot.slane %v8717_v33, %v8655_v40 }
 0x33a   :  { %5786 = vmatprep.subr.bf16.mxu0 %v8153_v46  ;;  %5827 = vmatprep.subr.bf16.mxu1 %v8156_v47  ;;  %v3543_v46 = vrot.slane %v8717_v33, %v8658_v41 }
 0x33b   :  { %v5236_v26 = vpop.f32.mrb[36].mxu0  ;;  %v5277_v56 = vpop.f32.mrb[36].mxu1 }
 0x33c   :  { %v5237_v57 = vadd.f32 %v5236_v26, %v3519_v48  ;;  %v5278_v58 = vadd.f32 %v5277_v56, %v3527_v49  ;;  %v5238_v60 = vpop.f32.mrb[37].mxu0  ;;  %v5279_v61 = vpop.f32.mrb[37].mxu1  ;;  %v3539_v48 = vrot.slane %v8717_v33, %v8663_v44  ;;  %v3547_v49 = vrot.slane %v8717_v33, %v8666_v45 }
 0x33d   :  { %v5239_v2 = vadd.f32 %v5238_v60, %v3523_v50  ;;  %v5280_v3 = vadd.f32 %v5279_v61, %v3531_v51  ;;  %v5240_v4 = vpop.f32.mrb[38].mxu0  ;;  %v5281_v6 = vpop.f32.mrb[38].mxu1  ;;  %5787 = vmatpush1.bf16.msra.mxu0 %v8151_v52  ;;  %5828 = vmatpush1.bf16.msra.mxu1 %v8154_v53 }
 0x33e   :  { %v7062_v9 = vmul.f32 -1.442695, %v5237_v57  ;;  %v7064_v12 = vmul.f32 -1.442695, %v5278_v58  ;;  %v5241_v13 = vpop.f32.mrb[39].mxu0  ;;  %v5282_v15 = vpop.f32.mrb[39].mxu1  ;;  %5788 = vmatprep.subr.bf16.mxu0 %v8159_v54  ;;  %5829 = vmatprep.subr.bf16.mxu1 %v8162_v55 }
 0x33f   :  { %v7063_v16 = vmul.f32 -1.442695, %v5239_v2  ;;  %v7065_v17 = vmul.f32 -1.442695, %v5280_v3 }
 0x340   :  { %8171 = vpow2.f32 %v7062_v9 }
 0x341   :  { %8173 = vpow2.f32 %v7064_v12  ;;  %5789 = vmatpush1.bf16.msra.mxu0 %v8157_v62  ;;  %5830 = vmatpush1.bf16.msra.mxu1 %v8160_v1 }
 0x342   :  { %8175 = vpow2.f32 %v7063_v16  ;;  %5790 = vmatprep.subr.bf16.mxu0 %v8165_v43  ;;  %5831 = vmatprep.subr.bf16.mxu1 %v8168_v7 }
 0x343   :  { %8177 = vpow2.f32 %v7065_v17 }
 0x345   :  { %5791 = vmatpush1.bf16.msra.mxu0 %v8163_v18  ;;  %5832 = vmatpush1.bf16.msra.mxu1 %v8166_v19 }
 0x348   :  { %5809 = vmatmul.mubr.bf16.vlgmr.msra.gmra.mrb[64].mxu0 %v8624_v5  ;;  %5850 = vmatmul.mubr.bf16.vlgmr.msra.gmra.mrb[64].mxu1 %v8624_v5  ;;  %v8720_v5 = vsub.s32 %v6184_v31, %v8585_v32 }
 0x34a   :  { %v8172_v20 = vpop.eup %8171 }
 0x34b   :  { %v8174_v21 = vpop.eup %8173  ;;  %v6018_v22 = vadd.f32 1.0, %v8172_v20 }
 0x34c   :  { %v8176_v23 = vpop.eup %8175  ;;  %v6020_v24 = vadd.f32 1.0, %v8174_v21 }
 0x34d   :  { %v8178_v25 = vpop.eup %8177  ;;  %8179 = vrcp.f32 %v6018_v22  ;;  %v6019_v27 = vadd.f32 1.0, %v8176_v23 }
 0x34e   :  { %8181 = vrcp.f32 %v6020_v24  ;;  %v6021_v28 = vadd.f32 1.0, %v8178_v25  ;;  %v3551_v24 = vrot.slane %v8717_v33, %v8696_v35  ;;  %v3559_v25 = vrot.slane %v8717_v33, %v8699_v14 }
 0x34f   :  { %8183 = vrcp.f32 %v6019_v27 }
 0x350   :  { %8185 = vrcp.f32 %v6021_v28  ;;  %v3555_v28 = vrot.slane %v8717_v33, %v8702_v39 }
 0x357   :  { %v8180_v34 = vpop.eup %8179 }
 0x358   :  { %v8182_v36 = vpop.eup %8181 }
 0x359   :  { %v8184_v47 = vpop.eup %8183 }
 0x35a   :  { %v8186_v50 = vpop.eup %8185  ;;  %v7094_v51 = vpack.c.bf16 %v8184_v47, %v8180_v34 }
 0x35b   :  { %v7095_v52 = vpack.c.bf16 %v8186_v50, %v8182_v36  ;;  %v5318_v53 = vpop.f32.mrb[40].mxu0  ;;  %v5359_v54 = vpop.f32.mrb[40].mxu1 }
 0x35c   :  { %v8731_v32 = vrot.slane %v7094_v51, %v8720_v5  ;;  %v5319_v55 = vadd.f32 %v5318_v53, %v3535_v38  ;;  %v5360_v26 = vadd.f32 %v5359_v54, %v3543_v46  ;;  %v5320_v56 = vpop.f32.mrb[41].mxu0  ;;  %v5361_v57 = vpop.f32.mrb[41].mxu1 }
 0x35d   :  { %v6195_v58 = vrot.slane %v7095_v52, %v8720_v5  ;;  %v5321_v60 = vadd.f32 %v5320_v56, %v3539_v48  ;;  %v5362_v61 = vadd.f32 %v5361_v57, %v3547_v49  ;;  %v5322_v62 = vpop.f32.mrb[42].mxu0  ;;  %v5363_v1 = vpop.f32.mrb[42].mxu1 }
 0x35e   :  { %v7066_v2 = vmul.f32 -1.442695, %v5319_v55  ;;  %v7068_v3 = vmul.f32 -1.442695, %v5360_v26  ;;  %v5323_v4 = vpop.f32.mrb[43].mxu0  ;;  %v5364_v6 = vpop.f32.mrb[43].mxu1 }
 0x35f   :  { %v6210_v43 = vcombine.low %v8731_v32, %v6195_v58  ;;  %v6211_v7 = vcombine.high %v8731_v32, %v6195_v58  ;;  %v7067_v9 = vmul.f32 -1.442695, %v5321_v60  ;;  %v7069_v12 = vmul.f32 -1.442695, %v5362_v61 }
 0x360   :  { %8187 = vpow2.f32 %v7066_v2 }
 0x361   :  { %8189 = vpow2.f32 %v7068_v3  ;;  %v6220_v61 = vrot.slane %v6210_v43, %v8720_v5  ;;  %v6227_v1 = vrot.slane %v6211_v7, %v8720_v5 }
 0x362   :  { %8191 = vpow2.f32 %v7067_v9 }
 0x363   :  { %8193 = vpow2.f32 %v7069_v12 }
 0x36a   :  { %v8188_v13 = vpop.eup %8187 }
 0x36b   :  { %v8190_v15 = vpop.eup %8189  ;;  %v6022_v16 = vadd.f32 1.0, %v8188_v13 }
 0x36c   :  { %v8192_v17 = vpop.eup %8191  ;;  %v6024_v18 = vadd.f32 1.0, %v8190_v15 }
 0x36d   :  { %v8194_v19 = vpop.eup %8193  ;;  %8195 = vrcp.f32 %v6022_v16  ;;  %v6023_v20 = vadd.f32 1.0, %v8192_v17 }
 0x36e   :  { %8197 = vrcp.f32 %v6024_v18  ;;  %v6025_v21 = vadd.f32 1.0, %v8194_v19 }
 0x36f   :  { %8199 = vrcp.f32 %v6023_v20  ;;  %v8750_v20 = vld [vmem:[#allocation10 + $0x10] sm:$0xff] }
 0x370   :  { %8201 = vrcp.f32 %v6025_v21 }
 0x377   :  { %v8196_v22 = vpop.eup %8195 }
 0x378   :  { %v8198_v23 = vpop.eup %8197 }
 0x379   :  { %v8200_v27 = vpop.eup %8199 }
 0x37a   :  { %v8202_v30 = vpop.eup %8201  ;;  %v7096_v31 = vpack.c.bf16 %v8200_v27, %v8196_v22  ;;  %v3571_v27 = vrot.slane %v8750_v20, %v8663_v44 }
 0x37b   :  { %v7097_v34 = vpack.c.bf16 %v8202_v30, %v8198_v23  ;;  %v5400_v36 = vpop.f32.mrb[44].mxu0  ;;  %v5441_v38 = vpop.f32.mrb[44].mxu1  ;;  %v3567_v23 = vrot.slane %v8750_v20, %v8655_v40 }
 0x37c   :  { %v6202_v46 = vrot.slane %v7096_v31, %v8720_v5  ;;  %v5401_v47 = vadd.f32 %v5400_v36, %v3551_v24  ;;  %v5442_v48 = vadd.f32 %v5441_v38, %v3559_v25  ;;  %v5402_v49 = vpop.f32.mrb[45].mxu0  ;;  %v5443_v50 = vpop.f32.mrb[45].mxu1  ;;  %v3575_v24 = vrot.slane %v8750_v20, %v8658_v41 }
 0x37d   :  { %v6209_v51 = vrot.slane %v7097_v34, %v8720_v5  ;;  %v5403_v52 = vadd.f32 %v5402_v49, %v3555_v28  ;;  %v5444_v53 = vadd.f32 %v5443_v50, %v3563_v29  ;;  %v5404_v54 = vpop.f32.mrb[46].mxu0  ;;  %v5445_v32 = vpop.f32.mrb[46].mxu1  ;;  %v3579_v28 = vrot.slane %v8750_v20, %v8666_v45 }
 0x37e   :  { %v7070_v55 = vmul.f32 -1.442695, %v5401_v47  ;;  %v7072_v26 = vmul.f32 -1.442695, %v5442_v48  ;;  %v5405_v33 = vpop.f32.mrb[47].mxu0  ;;  %v5446_v56 = vpop.f32.mrb[47].mxu1 }
 0x37f   :  { %v6212_v57 = vcombine.low %v6202_v46, %v6209_v51  ;;  %v6213_v58 = vcombine.high %v6202_v46, %v6209_v51  ;;  %v7071_v60 = vmul.f32 -1.442695, %v5403_v52  ;;  %v7073_v62 = vmul.f32 -1.442695, %v5444_v53 }
 0x380   :  { %8203 = vpow2.f32 %v7070_v55 }
 0x381   :  { %v6234_v2 = vrot.slane %v6212_v57, %v8720_v5  ;;  %v6241_v3 = vrot.slane %v6213_v58, %v8720_v5  ;;  %8205 = vpow2.f32 %v7072_v26 }
 0x382   :  { %8207 = vpow2.f32 %v7071_v60 }
 0x383   :  { %v6242_v4 = vcombine.low %v6220_v61, %v6234_v2  ;;  %v6243_v6 = vcombine.high %v6220_v61, %v6234_v2  ;;  %v6244_v9 = vcombine.low %v6227_v1, %v6241_v3  ;;  %v6245_v12 = vcombine.high %v6227_v1, %v6241_v3 }
 0x384   :  { %8209 = vpow2.f32 %v7073_v62 }
 0x385   :  { %6466 = vst [vmem:[#allocation12] sm:$0xff] %v6242_v4  ;;  %6470 = vst [vmem:[#allocation12 + $0x20] sm:$0xff] %v6244_v9 }
 0x386   :  { %6474 = vst [vmem:[#allocation12 + $0x40] sm:$0xff] %v6243_v6  ;;  %6478 = vst [vmem:[#allocation12 + $0x60] sm:$0xff] %v6245_v12 }
 0x38a   :  { %v8204_v43 = vpop.eup %8203 }
 0x38b   :  { %v8206_v13 = vpop.eup %8205  ;;  %v6026_v15 = vadd.f32 1.0, %v8204_v43 }
 0x38c   :  { %v8208_v16 = vpop.eup %8207  ;;  %v6028_v7 = vadd.f32 1.0, %v8206_v13 }
 0x38d   :  { %8211 = vrcp.f32 %v6026_v15  ;;  %v6027_v17 = vadd.f32 1.0, %v8208_v16 }
 0x38e   :  { %v8210_v18 = vpop.eup %8209  ;;  %8213 = vrcp.f32 %v6028_v7  ;;  %v3583_v7 = vrot.slane %v8750_v20, %v8696_v35 }
 0x38f   :  { %8215 = vrcp.f32 %v6027_v17  ;;  %v6029_v19 = vadd.f32 1.0, %v8210_v18  ;;  %v3591_v17 = vrot.slane %v8750_v20, %v8699_v14 }
 0x391   :  { %8217 = vrcp.f32 %v6029_v19  ;;  %v3595_v19 = vrot.slane %v8750_v20, %v8705_v42 }
 0x397   :  { %v8212_v21 = vpop.eup %8211 }
 0x398   :  { %v8214_v22 = vpop.eup %8213 }
 0x399   :  { %v8216_v25 = vpop.eup %8215 }
 0x39a   :  { %v7098_v29 = vpack.c.bf16 %v8216_v25, %v8212_v21 }
 0x39b   :  { %v8218_v30 = vpop.eup %8217  ;;  %v5482_v31 = vpop.f32.mrb[48].mxu0 }
 0x39c   :  { %v5523_v34 = vpop.f32.mrb[48].mxu1  ;;  %v8761_v36 = vrot.slane %v7098_v29, %v8720_v5  ;;  %v7099_v38 = vpack.c.bf16 %v8218_v30, %v8214_v22  ;;  %v5483_v46 = vadd.f32 %v5482_v31, %v3567_v23  ;;  %v5484_v48 = vpop.f32.mrb[49].mxu0 }
 0x39d   :  { %v5524_v47 = vadd.f32 %v5523_v34, %v3575_v24  ;;  %v5525_v49 = vpop.f32.mrb[49].mxu1  ;;  %v5485_v50 = vadd.f32 %v5484_v48, %v3571_v27  ;;  %v5486_v52 = vpop.f32.mrb[50].mxu0 }
 0x39e   :  { %v5526_v51 = vadd.f32 %v5525_v49, %v3579_v28  ;;  %v5527_v53 = vpop.f32.mrb[50].mxu1  ;;  %v8764_v54 = vrot.slane %v7099_v38, %v8720_v5  ;;  %v7074_v32 = vmul.f32 -1.442695, %v5483_v46  ;;  %v5487_v26 = vpop.f32.mrb[51].mxu0 }
 0x39f   :  { %v7076_v55 = vmul.f32 -1.442695, %v5524_v47  ;;  %v5528_v33 = vpop.f32.mrb[51].mxu1  ;;  %v7075_v56 = vmul.f32 -1.442695, %v5485_v50 }
 0x3a0   :  { %v7077_v57 = vmul.f32 -1.442695, %v5526_v51  ;;  %v6278_v58 = vcombine.low %v8761_v36, %v8764_v54  ;;  %v6279_v60 = vcombine.high %v8761_v36, %v8764_v54  ;;  %8219 = vpow2.f32 %v7074_v32 }
 0x3a1   :  { %8221 = vpow2.f32 %v7076_v55 }
 0x3a2   :  { %8223 = vpow2.f32 %v7075_v56  ;;  %v6288_v32 = vrot.slane %v6278_v58, %v8720_v5  ;;  %v6295_v26 = vrot.slane %v6279_v60, %v8720_v5 }
 0x3a3   :  { %8225 = vpow2.f32 %v7077_v57 }
 0x3aa   :  { %v8220_v61 = vpop.eup %8219 }
 0x3ab   :  { %v8222_v62 = vpop.eup %8221  ;;  %v6030_v1 = vadd.f32 1.0, %v8220_v61 }
 0x3ac   :  { %v8224_v2 = vpop.eup %8223  ;;  %v6032_v3 = vadd.f32 1.0, %v8222_v62  ;;  %v5865_v4 = vpop.xlane.xlu0 %5864 }
 0x3ad   :  { %v8226_v6 = vpop.eup %8225  ;;  %8227 = vrcp.f32 %v6030_v1  ;;  %v6031_v9 = vadd.f32 1.0, %v8224_v2  ;;  %v8771_v12 = vsub.f32 %v8684_v8, %v5865_v4  ;;  %v3587_v8 = vrot.slane %v8750_v20, %v8702_v39 }
 0x3ae   :  { %8229 = vrcp.f32 %v6032_v3  ;;  %v6033_v43 = vadd.f32 1.0, %v8226_v6 }
 0x3af   :  { %8231 = vrcp.f32 %v6031_v9  ;;  %v5867_v13 = vmul.f32 1.442695, %v8771_v12 }
 0x3b0   :  { %8233 = vrcp.f32 %v6033_v43 }
 0x3b1   :  { %8235 = vpow2.f32 %v5867_v13  ;;  %v8788_v13 = vld [vmem:[#allocation10 + $0x18] sm:$0xff] }
 0x3b7   :  { %v8228_v15 = vpop.eup %8227 }
 0x3b8   :  { %v8230_v16 = vpop.eup %8229 }
 0x3b9   :  { %v8232_v18 = vpop.eup %8231 }
 0x3ba   :  { %v8234_v21 = vpop.eup %8233  ;;  %v7100_v22 = vpack.c.bf16 %v8232_v18, %v8228_v15 }
 0x3bb   :  { %v8236_v23 = vpop.eup %8235  ;;  %v7101_v24 = vpack.c.bf16 %v8234_v21, %v8230_v16  ;;  %v5564_v25 = vpop.f32.mrb[52].mxu0 }
 0x3bc   :  { %v5605_v27 = vpop.f32.mrb[52].mxu1  ;;  %v6270_v28 = vrot.slane %v7100_v22, %v8720_v5  ;;  %v5565_v29 = vadd.f32 %v5564_v25, %v3583_v7  ;;  %v5566_v31 = vpop.f32.mrb[53].mxu0  ;;  %5869 = vadd.xlane.f32.xlu0 %v8236_v23  ;;  %v3599_v7 = vrot.slane %v8788_v13, %v8655_v40 }
 0x3bd   :  { %v5606_v30 = vadd.f32 %v5605_v27, %v3591_v17  ;;  %v5607_v34 = vpop.f32.mrb[53].mxu1  ;;  %v6277_v36 = vrot.slane %v7101_v24, %v8720_v5  ;;  %v5567_v38 = vadd.f32 %v5566_v31, %v3587_v8  ;;  %v5568_v47 = vpop.f32.mrb[54].mxu0  ;;  %v3607_v17 = vrot.slane %v8788_v13, %v8658_v41 }
 0x3be   :  { %v5608_v46 = vadd.f32 %v5607_v34, %v3595_v19  ;;  %v5609_v48 = vpop.f32.mrb[54].mxu1  ;;  %v7078_v20 = vmul.f32 -1.442695, %v5565_v29  ;;  %v5569_v50 = vpop.f32.mrb[55].mxu0  ;;  %v3603_v8 = vrot.slane %v8788_v13, %v8663_v44  ;;  %v3611_v19 = vrot.slane %v8788_v13, %v8666_v45 }
 0x3bf   :  { %v7080_v49 = vmul.f32 -1.442695, %v5606_v30  ;;  %v5610_v51 = vpop.f32.mrb[55].mxu1  ;;  %v6280_v52 = vcombine.low %v6270_v28, %v6277_v36  ;;  %v6281_v53 = vcombine.high %v6270_v28, %v6277_v36  ;;  %v7079_v54 = vmul.f32 -1.442695, %v5567_v38 }
 0x3c0   :  { %8237 = vpow2.f32 %v7078_v20  ;;  %v7081_v55 = vmul.f32 -1.442695, %v5608_v46 }
 0x3c1   :  { %v6302_v33 = vrot.slane %v6280_v52, %v8720_v5  ;;  %v6309_v56 = vrot.slane %v6281_v53, %v8720_v5  ;;  %8239 = vpow2.f32 %v7080_v49 }
 0x3c2   :  { %8241 = vpow2.f32 %v7079_v54 }
 0x3c3   :  { %v6310_v57 = vcombine.low %v6288_v32, %v6302_v33  ;;  %v6311_v61 = vcombine.high %v6288_v32, %v6302_v33  ;;  %v6312_v62 = vcombine.low %v6295_v26, %v6309_v56  ;;  %v6313_v1 = vcombine.high %v6295_v26, %v6309_v56 }
 0x3c4   :  { %8243 = vpow2.f32 %v7081_v55 }
 0x3c5   :  { %6467 = vst [vmem:[#allocation12 + $0x8] sm:$0xff] %v6310_v57  ;;  %6471 = vst [vmem:[#allocation12 + $0x28] sm:$0xff] %v6312_v62 }
 0x3c6   :  { %6475 = vst [vmem:[#allocation12 + $0x48] sm:$0xff] %v6311_v61  ;;  %6479 = vst [vmem:[#allocation12 + $0x68] sm:$0xff] %v6313_v1 }
 0x3ca   :  { %v8238_v58 = vpop.eup %8237 }
 0x3cb   :  { %v8240_v2 = vpop.eup %8239  ;;  %v6034_v3 = vadd.f32 1.0, %v8238_v58 }
 0x3cc   :  { %v8242_v4 = vpop.eup %8241  ;;  %v6036_v60 = vadd.f32 1.0, %v8240_v2  ;;  %v3615_v2 = vrot.slane %v8788_v13, %v8696_v35 }
 0x3cd   :  { %8245 = vrcp.f32 %v6034_v3  ;;  %v6035_v6 = vadd.f32 1.0, %v8242_v4  ;;  %v3623_v3 = vrot.slane %v8788_v13, %v8699_v14 }
 0x3ce   :  { %v8244_v9 = vpop.eup %8243  ;;  %8247 = vrcp.f32 %v6036_v60  ;;  %v3619_v60 = vrot.slane %v8788_v13, %v8702_v39 }
 0x3cf   :  { %8249 = vrcp.f32 %v6035_v6  ;;  %v6037_v43 = vadd.f32 1.0, %v8244_v9  ;;  %v3627_v6 = vrot.slane %v8788_v13, %v8705_v42 }
 0x3d1   :  { %8251 = vrcp.f32 %v6037_v43 }
 0x3d7   :  { %v8246_v15 = vpop.eup %8245 }
 0x3d8   :  { %v8248_v16 = vpop.eup %8247 }
 0x3d9   :  { %v8250_v18 = vpop.eup %8249 }
 0x3da   :  { %v7102_v21 = vpack.c.bf16 %v8250_v18, %v8246_v15 }
 0x3db   :  { %v8252_v22 = vpop.eup %8251  ;;  %v5646_v23 = vpop.f32.mrb[56].mxu0 }
 0x3dc   :  { %v5687_v24 = vpop.f32.mrb[56].mxu1  ;;  %v8799_v25 = vrot.slane %v7102_v21, %v8720_v5  ;;  %v7103_v27 = vpack.c.bf16 %v8252_v22, %v8248_v16  ;;  %v5647_v28 = vadd.f32 %v5646_v23, %v3599_v7  ;;  %v5648_v30 = vpop.f32.mrb[57].mxu0 }
 0x3dd   :  { %v5688_v29 = vadd.f32 %v5687_v24, %v3607_v17  ;;  %v5689_v31 = vpop.f32.mrb[57].mxu1  ;;  %v5649_v34 = vadd.f32 %v5648_v30, %v3603_v8  ;;  %v5650_v38 = vpop.f32.mrb[58].mxu0 }
 0x3de   :  { %v5690_v36 = vadd.f32 %v5689_v31, %v3611_v19  ;;  %v5691_v46 = vpop.f32.mrb[58].mxu1  ;;  %v6331_v47 = vrot.slane %v7103_v27, %v8720_v5  ;;  %v7082_v48 = vmul.f32 -1.442695, %v5647_v28  ;;  %v5651_v49 = vpop.f32.mrb[59].mxu0 }
 0x3df   :  { %v7084_v20 = vmul.f32 -1.442695, %v5688_v29  ;;  %v5692_v50 = vpop.f32.mrb[59].mxu1  ;;  %v7083_v51 = vmul.f32 -1.442695, %v5649_v34 }
 0x3e0   :  { %v7085_v52 = vmul.f32 -1.442695, %v5690_v36  ;;  %v6346_v53 = vcombine.low %v8799_v25, %v6331_v47  ;;  %v6347_v54 = vcombine.high %v8799_v25, %v6331_v47  ;;  %8253 = vpow2.f32 %v7082_v48 }
 0x3e1   :  { %8255 = vpow2.f32 %v7084_v20 }
 0x3e2   :  { %8257 = vpow2.f32 %v7083_v51  ;;  %v6356_v30 = vrot.slane %v6346_v53, %v8720_v5  ;;  %v6363_v34 = vrot.slane %v6347_v54, %v8720_v5 }
 0x3e3   :  { %8259 = vpow2.f32 %v7085_v52 }
 0x3ea   :  { %v8254_v32 = vpop.eup %8253 }
 0x3eb   :  { %v8256_v55 = vpop.eup %8255  ;;  %v6038_v26 = vadd.f32 1.0, %v8254_v32 }
 0x3ec   :  { %v8258_v33 = vpop.eup %8257  ;;  %v6040_v56 = vadd.f32 1.0, %v8256_v55 }
 0x3ed   :  { %v8260_v57 = vpop.eup %8259  ;;  %8261 = vrcp.f32 %v6038_v26  ;;  %v6039_v61 = vadd.f32 1.0, %v8258_v33  ;;  %v3494_v26 = vld [vmem:[#allocation10 + $0x20] sm:$0xf] }
 0x3ee   :  { %8263 = vrcp.f32 %v6040_v56  ;;  %v6041_v62 = vadd.f32 1.0, %v8260_v57  ;;  %v3631_v57 = vrot.slane %v3494_v26, %v8655_v40 }
 0x3ef   :  { %8265 = vrcp.f32 %v6039_v61  ;;  %v3639_v61 = vrot.slane %v3494_v26, %v8658_v41 }
 0x3f0   :  { %8267 = vrcp.f32 %v6041_v62 }
 0x3f7   :  { %v8262_v1 = vpop.eup %8261 }
 0x3f8   :  { %v8264_v58 = vpop.eup %8263 }
 0x3f9   :  { %v8266_v4 = vpop.eup %8265 }
 0x3fa   :  { %v8268_v9 = vpop.eup %8267  ;;  %v7104_v43 = vpack.c.bf16 %v8266_v4, %v8262_v1  ;;  %v3635_v1 = vrot.slane %v3494_v26, %v8663_v44 }
 0x3fb   :  { %v7105_v15 = vpack.c.bf16 %v8268_v9, %v8264_v58  ;;  %v5728_v16 = vpop.f32.mrb[60].mxu0  ;;  %v5769_v7 = vpop.f32.mrb[60].mxu1  ;;  %v3643_v58 = vrot.slane %v3494_v26, %v8666_v45 }
 0x3fc   :  { %v6338_v17 = vrot.slane %v7104_v43, %v8720_v5  ;;  %v5729_v18 = vadd.f32 %v5728_v16, %v3615_v2  ;;  %v5770_v8 = vadd.f32 %v5769_v7, %v3623_v3  ;;  %v5730_v35 = vpop.f32.mrb[61].mxu0  ;;  %v5771_v19 = vpop.f32.mrb[61].mxu1 }
 0x3fd   :  { %v6345_v14 = vrot.slane %v7105_v15, %v8720_v5  ;;  %v5731_v21 = vadd.f32 %v5730_v35, %v3619_v60  ;;  %v5772_v22 = vadd.f32 %v5771_v19, %v3627_v6  ;;  %v5732_v23 = vpop.f32.mrb[62].mxu0  ;;  %v5773_v39 = vpop.f32.mrb[62].mxu1 }
 0x3fe   :  { %v7086_v24 = vmul.f32 -1.442695, %v5729_v18  ;;  %v7088_v25 = vmul.f32 -1.442695, %v5770_v8  ;;  %v5733_v42 = vpop.f32.mrb[63].mxu0  ;;  %v5774_v13 = vpop.f32.mrb[63].mxu1 }
 0x3ff   :  { %v6348_v27 = vcombine.low %v6338_v17, %v6345_v14  ;;  %v6349_v28 = vcombine.high %v6338_v17, %v6345_v14  ;;  %v7087_v29 = vmul.f32 -1.442695, %v5731_v21  ;;  %v7089_v31 = vmul.f32 -1.442695, %v5772_v22 }
 0x400   :  { %8269 = vpow2.f32 %v7086_v24 }
 0x401   :  { %v6370_v36 = vrot.slane %v6348_v27, %v8720_v5  ;;  %v6377_v38 = vrot.slane %v6349_v28, %v8720_v5  ;;  %8271 = vpow2.f32 %v7088_v25 }
 0x402   :  { %8273 = vpow2.f32 %v7087_v29 }
 0x403   :  { %v6378_v46 = vcombine.low %v6356_v30, %v6370_v36  ;;  %v6379_v47 = vcombine.high %v6356_v30, %v6370_v36  ;;  %v6380_v48 = vcombine.low %v6363_v34, %v6377_v38  ;;  %v6381_v20 = vcombine.high %v6363_v34, %v6377_v38 }
 0x404   :  { %8275 = vpow2.f32 %v7089_v31 }
 0x405   :  { %6468 = vst [vmem:[#allocation12 + $0x10] sm:$0xff] %v6378_v46  ;;  %6472 = vst [vmem:[#allocation12 + $0x30] sm:$0xff] %v6380_v48 }
 0x406   :  { %6476 = vst [vmem:[#allocation12 + $0x50] sm:$0xff] %v6379_v47  ;;  %6480 = vst [vmem:[#allocation12 + $0x70] sm:$0xff] %v6381_v20 }
 0x40a   :  { %v8270_v49 = vpop.eup %8269 }
 0x40b   :  { %v8272_v50 = vpop.eup %8271  ;;  %v6042_v51 = vadd.f32 1.0, %v8270_v49 }
 0x40c   :  { %v8274_v52 = vpop.eup %8273  ;;  %v6044_v53 = vadd.f32 1.0, %v8272_v50 }
 0x40d   :  { %8277 = vrcp.f32 %v6042_v51  ;;  %v6043_v54 = vadd.f32 1.0, %v8274_v52 }
 0x40e   :  { %v8276_v32 = vpop.eup %8275  ;;  %8279 = vrcp.f32 %v6044_v53 }
 0x40f   :  { %8281 = vrcp.f32 %v6043_v54  ;;  %v6045_v55 = vadd.f32 1.0, %v8276_v32 }
 0x411   :  { %8283 = vrcp.f32 %v6045_v55 }
 0x417   :  { %v8278_v33 = vpop.eup %8277 }
 0x418   :  { %v8280_v56 = vpop.eup %8279 }
 0x419   :  { %v8282_v62 = vpop.eup %8281 }
 0x41a   :  { %v7106_v2 = vpack.c.bf16 %v8282_v62, %v8278_v33 }
 0x41b   :  { %v8284_v3 = vpop.eup %8283  ;;  %v5810_v4 = vpop.f32.mrb[64].mxu0 }
 0x41c   :  { %v5851_v60 = vpop.f32.mrb[64].mxu1  ;;  %v6392_v6 = vrot.slane %v7106_v2, %v8720_v5  ;;  %v7107_v9 = vpack.c.bf16 %v8284_v3, %v8280_v56  ;;  %v5811_v43 = vadd.f32 %v5810_v4, %v3631_v57  ;;  %v5812_v16 = vpop.f32.mrb[65].mxu0 }
 0x41d   :  { %v5852_v15 = vadd.f32 %v5851_v60, %v3639_v61  ;;  %v5853_v7 = vpop.f32.mrb[65].mxu1  ;;  %v5813_v17 = vadd.f32 %v5812_v16, %v3635_v1  ;;  %v5814_v18 = vpop.f32.mrb[66].mxu0 }
 0x41e   :  { %v5854_v40 = vadd.f32 %v5853_v7, %v3643_v58  ;;  %v5855_v41 = vpop.f32.mrb[66].mxu1  ;;  %v6399_v8 = vrot.slane %v7107_v9, %v8720_v5  ;;  %v7090_v44 = vmul.f32 -1.442695, %v5811_v43  ;;  %v5815_v45 = vpop.f32.mrb[67].mxu0  ;;  %v5909_v58 = vrot.slane %v5881_v11, %v8588_v37 }
 0x41f   :  { %v7092_v35 = vmul.f32 -1.442695, %v5852_v15  ;;  %v5856_v19 = vpop.f32.mrb[67].mxu1  ;;  %v7091_v14 = vmul.f32 -1.442695, %v5813_v17 }
 0x420   :  { %v7093_v21 = vmul.f32 -1.442695, %v5854_v40  ;;  %v6414_v22 = vcombine.low %v6392_v6, %v6399_v8  ;;  %v6415_v23 = vcombine.high %v6392_v6, %v6399_v8  ;;  %8285 = vpow2.f32 %v7090_v44 }
 0x421   :  { %8287 = vpow2.f32 %v7092_v35 }
 0x422   :  { %8289 = vpow2.f32 %v7091_v14  ;;  %v6424_v50 = vrot.slane %v6414_v22, %v8720_v5  ;;  %v6431_v51 = vrot.slane %v6415_v23, %v8720_v5 }
 0x423   :  { %8291 = vpow2.f32 %v7093_v21 }
 0x42a   :  { %v8286_v39 = vpop.eup %8285 }
 0x42b   :  { %v8288_v24 = vpop.eup %8287  ;;  %v6046_v25 = vadd.f32 1.0, %v8286_v39 }
 0x42c   :  { %v8290_v42 = vpop.eup %8289  ;;  %v6048_v13 = vadd.f32 1.0, %v8288_v24 }
 0x42d   :  { %v8292_v27 = vpop.eup %8291  ;;  %8293 = vrcp.f32 %v6046_v25  ;;  %v6047_v28 = vadd.f32 1.0, %v8290_v42 }
 0x42e   :  { %8295 = vrcp.f32 %v6048_v13  ;;  %v6049_v29 = vadd.f32 1.0, %v8292_v27 }
 0x42f   :  { %8297 = vrcp.f32 %v6047_v28 }
 0x430   :  { %8299 = vrcp.f32 %v6049_v29 }
 0x437   :  { %v8294_v30 = vpop.eup %8293 }
 0x438   :  { %v8296_v31 = vpop.eup %8295 }
 0x439   :  { %v8298_v34 = vpop.eup %8297 }
 0x43a   :  { %v8300_v36 = vpop.eup %8299  ;;  %v7108_v38 = vpack.c.bf16 %v8298_v34, %v8294_v30 }
 0x43b   :  { %v7109_v46 = vpack.c.bf16 %v8300_v36, %v8296_v31 }
 0x43c   :  { %v6406_v47 = vrot.slane %v7108_v38, %v8720_v5 }
 0x43d   :  { %v6413_v48 = vrot.slane %v7109_v46, %v8720_v5 }
 0x43f   :  { %v6416_v20 = vcombine.low %v6406_v47, %v6413_v48  ;;  %v6417_v49 = vcombine.high %v6406_v47, %v6413_v48 }
 0x441   :  { %v6438_v52 = vrot.slane %v6416_v20, %v8720_v5  ;;  %v6445_v53 = vrot.slane %v6417_v49, %v8720_v5  ;;  %v5902_v5 = vrot.slane %v5880_v10, %v8588_v37 }
 0x443   :  { %v6446_v54 = vcombine.low %v6424_v50, %v6438_v52  ;;  %v6447_v32 = vcombine.high %v6424_v50, %v6438_v52  ;;  %v6448_v55 = vcombine.low %v6431_v51, %v6445_v53  ;;  %v6449_v26 = vcombine.high %v6431_v51, %v6445_v53 }
 0x445   :  { %6469 = vst [vmem:[#allocation12 + $0x18] sm:$0xff] %v6446_v54  ;;  %6473 = vst [vmem:[#allocation12 + $0x38] sm:$0xff] %v6448_v55 }
 0x446   :  { %6477 = vst [vmem:[#allocation12 + $0x58] sm:$0xff] %v6447_v32  ;;  %6481 = vst [vmem:[#allocation12 + $0x78] sm:$0xff] %v6449_v26 }
 0x449   :  { %v5870_v33 = vpop.xlane.xlu0 %5869 }
 0x44a   :  { %8301 = vlog2.f32 %v5870_v33 }
 0x454   :  { %v8302_v56 = vpop.eup %8301 }
 0x455   :  { %v5872_v57 = vmul.f32 0.6931472, %v8302_v56 }
 0x457   :  { %v5873_v61 = vsub.f32 %v8771_v12, %v5872_v57 }
 0x459   :  { %v5878_v62 = vcombine.low %v5873_v61, %v8679_v63  ;;  %v5879_v1 = vcombine.high %v5873_v61, %v8679_v63 }
 0x45b   :  { %v5888_v2 = vrot.slane %v5878_v62, %v8588_v37  ;;  %v5895_v3 = vrot.slane %v5879_v1, %v8588_v37 }
 0x45d   :  { %v5910_v4 = vcombine.low %v5888_v2, %v5902_v5  ;;  %v5911_v12 = vcombine.high %v5888_v2, %v5902_v5  ;;  %v5912_v60 = vcombine.low %v5895_v3, %v5909_v58  ;;  %v5913_v6 = vcombine.high %v5895_v3, %v5909_v58 }
 0x45f   :  { %5918 = vst [vmem:[#allocation11] sm:$0xff] %v5910_v4  ;;  %5919 = vst [vmem:[#allocation11 + $0x8] sm:$0xff] %v5911_v12 }
 0x460   :  { %5920 = vst [vmem:[#allocation11 + $0x10] sm:$0xff] %v5912_v60  ;;  %5921 = vst [vmem:[#allocation11 + $0x18] sm:$0xff] %v5913_v6 }
 0x461   :  { %6486 = vsyncadd [#allocation4], 384  ;;  %s8480_s4 = smov [#allocation11]  }
 0x462   :  { %s6487_s3 = sshll.u32 %s8480_s4, 4  ;;  %s6488_s3 = int_to_ptr.vmem [resolvable:$true] %s6487_s3 }
 0x463   :  { %s8413_s12 = scalar_lea.vmem %s6488_s3, 128  ;;  %s8417_s13 = scalar_lea.vmem %s6488_s3, 512 }
 0x464   :  { %p8414_p12 = scmp.ne.s32.totalorder %s6488_s3, %s8413_s12  ;;  %p8418_p13 = scmp.lt.s32.totalorder %s6488_s3, %s6488_s3 }
 0x465   :  { %p8419_p0 = scmp.lt.s32.totalorder %s8417_s13, %s8413_s12 }
 0x467   :  { %p8420_p1 = por %p8419_p0, %p8418_p13 }
 0x469   :  { %p8421_p2 = pnand %p8420_p1, %p8414_p12 }
 0x46b   :  { %8424 = shalt.err (!%p8421_p2)
}
 0x46c   :  { %s8425_s16 = scalar_lea.hbm %s8872_s5, 128 }
 0x46d   :  { %p8426_p3 = scmp.ne.s32.totalorder %s8872_s5, %s8425_s16  ;;  %p8429_p4 = scmp.lt.u32.totalorder %s8425_s16, %s8872_s5 }
 0x46f   :  { %p8431_p5 = pnand %p8429_p4, %p8426_p3 }
 0x471   :  { %8434 = shalt.err (!%p8431_p5)
}
 0x472   :  { %s8481_s1 = smov 128   ;;  %s8482_s21 = smov 8  }
 0x473   :  { %6493 = dma.vmem_to_hbm [thread:$0]  %s6488_s3, 128, %s8872_s5, [#allocation4], %s8481_s1, %s8481_s1, %s8482_s21  }
 0x474   :  { %6498 = vsyncadd [#allocation13], 1536  ;;  %s8483_s0 = smov [#allocation12]  }
 0x475   :  { %s6499_s7 = sshll.u32 %s8483_s0, 4  ;;  %s6500_s7 = int_to_ptr.vmem [resolvable:$true] %s6499_s7 }
 0x476   :  { %s8435_s24 = scalar_lea.vmem %s6500_s7, 512  ;;  %s8439_s25 = scalar_lea.vmem %s6500_s7, 2048 }
 0x477   :  { %p8436_p6 = scmp.ne.s32.totalorder %s6500_s7, %s8435_s24  ;;  %p8440_p7 = scmp.lt.s32.totalorder %s6500_s7, %s6500_s7 }
 0x478   :  { %p8441_p8 = scmp.lt.s32.totalorder %s8439_s25, %s8435_s24 }
 0x47a   :  { %p8442_p9 = por %p8441_p8, %p8440_p7 }
 0x47c   :  { %p8443_p10 = pnand %p8442_p9, %p8436_p6 }
 0x47e   :  { %8446 = shalt.err (!%p8443_p10)
}
 0x47f   :  { %s8447_s29 = scalar_lea.hbm %s8873_s6, 512 }
 0x480   :  { %p8448_p11 = scmp.ne.s32.totalorder %s8873_s6, %s8447_s29  ;;  %p8451_p12 = scmp.lt.u32.totalorder %s8447_s29, %s8873_s6 }
 0x482   :  { %p8453_p13 = pnand %p8451_p12, %p8448_p11 }
 0x484   :  { %8456 = shalt.err (!%p8453_p13)
}
 0x485   :  { %s8484_s10 = smov 512   ;;  %s8485_s11 = smov 32  }
 0x486   :  { %6505 = dma.vmem_to_hbm [thread:$0]  %s6500_s7, 512, %s8873_s6, [#allocation13], %s8484_s10, %s8484_s10, %s8485_s11  }
 0x487   :  { %8463 = dma.done.wait [#allocation4], 512  }
 0x488   :  { %8464 = vsyncadd [#allocation4], 4294966784 }
 0x489   :  { %8465 = dma.done.wait [#allocation13], 2048  }
 0x48a   :  { %8466 = vsyncadd [#allocation13], 4294965248 }
 0x48b   :  { %6512 = vsyncpa [#allocation3], 1 }
 0x48c   :  { %6513 = vsyncpa [#allocation6], 1 }
 0x48d   :  { %6514 = vsyncpa [#allocation9], 1 }
 0x48e   :  { %6515 = vsyncpa [#allocation4], 1 }
 0x48f   :  { %6516 = vsyncpa [#allocation13], 1 }

</bundles_post_ra>
